<compile_context>
chip_gen: v7x
topology: tpu7x:2x2x1
jax: 0.10.0
libtpu: 0.0.40
codegen_flags: <defaults>
</compile_context>

<pallas_src>
import functools

import jax
import jax.numpy as jnp
from jax.experimental import pallas as pl
from jax.experimental.pallas import tpu as pltpu


def _round_up(x, m):
    return (x + m - 1) // m * m


_VMEM_LIMIT = 32 * 1024 * 1024  # fits scoped VMEM on v5e/v6e/v7x


# ----------------------------- Pallas matmul --------------------------------

def _mm_kernel(a_ref, b_ref, o_ref, acc_ref, *, post_act):
    @pl.when(pl.program_id(2) == 0)
    def _():
        acc_ref[...] = jnp.zeros_like(acc_ref)
    acc_ref[...] += jnp.dot(a_ref[...], b_ref[...],
                            preferred_element_type=jnp.float32)

    @pl.when(pl.program_id(2) == pl.num_programs(2) - 1)
    def _():
        acc = acc_ref[...]
        if post_act == "tanh":
            acc = jnp.tanh(acc)
        o_ref[...] = acc.astype(o_ref.dtype)


def _mm_kernel_bias(a_ref, b_ref, bias_ref, o_ref, acc_ref, *, post_act):
    @pl.when(pl.program_id(2) == 0)
    def _():
        acc_ref[...] = jnp.zeros_like(acc_ref)
    acc_ref[...] += jnp.dot(a_ref[...], b_ref[...],
                            preferred_element_type=jnp.float32)

    @pl.when(pl.program_id(2) == pl.num_programs(2) - 1)
    def _():
        acc = acc_ref[...] + bias_ref[...]
        if post_act == "tanh":
            acc = jnp.tanh(acc)
        o_ref[...] = acc.astype(o_ref.dtype)


def pallas_matmul(a, b, bias=None, post_act="none"):
    """out = post_act(a @ b + bias). Operands cast to bf16, f32 MXU accumulation."""
    M, K = a.shape
    K2, N = b.shape
    assert K == K2
    # Lane-dense padding of the contraction / output-channel dims (unmasked stores).
    Kp = _round_up(K, 128)
    Np = _round_up(N, 128)
    tk = 512 if Kp % 512 == 0 else (256 if Kp % 256 == 0 else 128)
    tn = 256 if Np % 256 == 0 else 128
    if M >= 512:
        tm = 512
    elif M >= 256:
        tm = 256
    else:
        tm = _round_up(M, 8)
    Mp = _round_up(M, tm)
    # VMEM budget (double-buffered bf16 A/B tiles + f32 acc + f32 out) stays well
    # under the 32 MiB scoped limit used on all generations (incl. v7x 64 MiB phys).

    a_p = jnp.pad(a.astype(jnp.bfloat16), ((0, Mp - M), (0, Kp - K)))
    b_p = jnp.pad(b.astype(jnp.bfloat16), ((0, Kp - K), (0, Np - N)))

    grid = (Mp // tm, Np // tn, Kp // tk)
    a_spec = pl.BlockSpec((tm, tk), lambda i, j, k: (i, k))
    b_spec = pl.BlockSpec((tk, tn), lambda i, j, k: (k, j))
    common = dict(
        out_shape=jax.ShapeDtypeStruct((Mp, Np), jnp.float32),
        grid=grid,
        out_specs=pl.BlockSpec((tm, tn), lambda i, j, k: (i, j)),
        scratch_shapes=[pltpu.VMEM((tm, tn), jnp.float32)],
        compiler_params=pltpu.CompilerParams(
            dimension_semantics=("parallel", "parallel", "arbitrary"),
            vmem_limit_bytes=_VMEM_LIMIT),
    )

    if bias is None:
        out = pl.pallas_call(
            functools.partial(_mm_kernel, post_act=post_act),
            in_specs=[a_spec, b_spec], **common)(a_p, b_p)
    else:
        bias_p = jnp.pad(bias.astype(jnp.float32).reshape(1, N),
                         ((0, 0), (0, Np - N)))
        bias_spec = pl.BlockSpec((1, tn), lambda i, j, k: (0, j))
        out = pl.pallas_call(
            functools.partial(_mm_kernel_bias, post_act=post_act),
            in_specs=[a_spec, b_spec, bias_spec], **common)(a_p, b_p, bias_p)
    return out[:M, :N]


# ----------------------------- BatchNorm (2-pass) ----------------------------

def _bn_stats_kernel(x_ref, sum_ref, sq_ref):
    @pl.when(pl.program_id(0) == 0)
    def _():
        sum_ref[...] = jnp.zeros_like(sum_ref)
        sq_ref[...] = jnp.zeros_like(sq_ref)
    x = x_ref[...]
    sum_ref[...] += jnp.sum(x, axis=0, keepdims=True)
    sq_ref[...] += jnp.sum(x * x, axis=0, keepdims=True)


def _bn_norm_kernel(x_ref, scale_ref, shift_ref, o_ref):
    o_ref[...] = x_ref[...] * scale_ref[...] + shift_ref[...]


def batchnorm(x, gamma, beta, eps=1e-5):
    """BatchNorm2d, training-mode (biased) batch statistics over (N,H,W). x: NHWC f32."""
    N, H, W, C = x.shape
    M = N * H * W
    x2 = x.reshape(M, C)

    tr = 512
    Mp = _round_up(M, 8)
    if Mp >= tr:
        Mp = _round_up(M, tr)
    else:
        tr = Mp
    x2p = jnp.pad(x2, ((0, Mp - M), (0, 0)))  # zero rows do not perturb sum/sumsq
    grid = (Mp // tr,)

    s, ss = pl.pallas_call(
        _bn_stats_kernel,
        out_shape=(jax.ShapeDtypeStruct((1, C), jnp.float32),
                   jax.ShapeDtypeStruct((1, C), jnp.float32)),
        grid=grid,
        in_specs=[pl.BlockSpec((tr, C), lambda i: (i, 0))],
        out_specs=(pl.BlockSpec((1, C), lambda i: (0, 0)),
                   pl.BlockSpec((1, C), lambda i: (0, 0))),
        compiler_params=pltpu.CompilerParams(
            dimension_semantics=("arbitrary",), vmem_limit_bytes=_VMEM_LIMIT),
    )(x2p)

    mean = s / M
    var = ss / M - mean * mean
    scale = gamma.reshape(1, C) * jax.lax.rsqrt(var + eps)
    shift = beta.reshape(1, C) - mean * scale

    out = pl.pallas_call(
        _bn_norm_kernel,
        out_shape=jax.ShapeDtypeStruct((Mp, C), jnp.float32),
        grid=grid,
        in_specs=[pl.BlockSpec((tr, C), lambda i: (i, 0)),
                  pl.BlockSpec((1, C), lambda i: (0, 0)),
                  pl.BlockSpec((1, C), lambda i: (0, 0))],
        out_specs=pl.BlockSpec((tr, C), lambda i: (i, 0)),
        compiler_params=pltpu.CompilerParams(
            dimension_semantics=("parallel",), vmem_limit_bytes=_VMEM_LIMIT),
    )(x2p, scale, shift)
    return out[:M].reshape(N, H, W, C)


# --------------------------- conv helpers (glue) -----------------------------

def _im2col_k4_s2(xp):
    """xp: NHWC already padded by 1; returns ([N*Ho*Wo, 16*C], N, Ho, Wo)."""
    N, H, W, C = xp.shape
    Ho = (H - 4) // 2 + 1
    Wo = (W - 4) // 2 + 1
    cols = []
    for kh in range(4):
        for kw in range(4):
            cols.append(xp[:, kh:kh + 2 * Ho:2, kw:kw + 2 * Wo:2, :])
    patches = jnp.concatenate(cols, axis=-1)            # [N, Ho, Wo, 16*C]
    return patches.reshape(N * Ho * Wo, 16 * C), N, Ho, Wo


def conv_down(x, w, act=None):
    """Conv2d(Cin->Cout, k=4, s=2, p=1, bias=False). x NHWC f32, w [Cout, Cin, 4, 4]."""
    if act == "lrelu":          # LeakyReLU(0.2) applied once per element, pre-im2col
        x = jnp.where(x > 0, x, 0.2 * x)
    elif act == "relu":
        x = jnp.maximum(x, 0.0)
    xb = x.astype(jnp.bfloat16)
    xp = jnp.pad(xb, ((0, 0), (1, 1), (1, 1), (0, 0)))
    patches, N, Ho, Wo = _im2col_k4_s2(xp)
    Cout = w.shape[0]
    wm = jnp.transpose(w, (2, 3, 1, 0)).reshape(-1, Cout).astype(jnp.bfloat16)
    out = pallas_matmul(patches, wm)
    return out.reshape(N, Ho, Wo, Cout)


def conv_transpose_up(x, w, bias=None, pre_act="relu", post_act="none"):
    """ConvTranspose2d(Cin->Cout, k=4, s=2, p=1) via polyphase decomposition.

    x NHWC f32, w [Cin, Cout, 4, 4]. Output phase (r, c) (r, c in {0,1}) is a
    stride-1 2x2 conv over x with sub-kernel taps w[:, :, 3-2a-r, 3-2b-c],
    a, b in {0,1}: no zero-dilated input, no structural-zero FLOPs.
    """
    N, H, W, Cin = x.shape
    Cout = w.shape[1]
    if pre_act == "relu":
        x = jnp.maximum(x, 0.0)
    xb = x.astype(jnp.bfloat16)
    xp = jnp.pad(xb, ((0, 0), (1, 1), (1, 1), (0, 0)))   # (N, H+2, W+2, Cin)

    phase_rows = []
    for r in range(2):
        row = []
        for c in range(2):
            taps, wcols = [], []
            for a in range(2):
                for b in range(2):
                    taps.append(xp[:, r + a:r + a + H, c + b:c + b + W, :])
                    wcols.append(w[:, :, 3 - 2 * a - r, 3 - 2 * b - c])  # [Cin, Cout]
            patches = jnp.concatenate(taps, axis=-1).reshape(N * H * W, 4 * Cin)
            wm = jnp.concatenate(wcols, axis=0).astype(jnp.bfloat16)     # [4*Cin, Cout]
            o = pallas_matmul(patches, wm, bias=bias, post_act=post_act)
            row.append(o.reshape(N, H, W, Cout))
        phase_rows.append(row)

    # Interleave phases: out[n, 2i+r, 2j+c] = phase[r][c][n, i, j]
    y = jnp.stack([jnp.stack(phase_rows[0], axis=3),
                   jnp.stack(phase_rows[1], axis=3)], axis=2)  # (N, H, 2, W, 2, Cout)
    return y.reshape(N, 2 * H, 2 * W, Cout)


# ---------------------------- U-Net structure --------------------------------

def _make_block(key, outer_nc, inner_nc, kind, sub=None):
    k = jax.random.split(key, 3)
    scale = 0.05
    p = {"kind": kind, "sub": sub}
    # dConv: Conv2d(outer_nc -> inner_nc), bias=False (BatchNorm case)
    p["dconv_w"] = scale * jax.random.normal(k[0], (inner_nc, outer_nc, 4, 4), jnp.float32)
    if kind == "outermost":
        p["uconv_w"] = scale * jax.random.normal(k[1], (inner_nc * 2, outer_nc, 4, 4), jnp.float32)
        p["uconv_b"] = scale * jax.random.normal(k[2], (outer_nc,), jnp.float32)
    elif kind == "innermost":
        p["uconv_w"] = scale * jax.random.normal(k[1], (inner_nc, outer_nc, 4, 4), jnp.float32)
        p["unorm_g"] = jnp.ones((outer_nc,), jnp.float32)
        p["unorm_b"] = jnp.zeros((outer_nc,), jnp.float32)
    else:
        p["dnorm_g"] = jnp.ones((inner_nc,), jnp.float32)
        p["dnorm_b"] = jnp.zeros((inner_nc,), jnp.float32)
        p["uconv_w"] = scale * jax.random.normal(k[1], (inner_nc * 2, outer_nc, 4, 4), jnp.float32)
        p["unorm_g"] = jnp.ones((outer_nc,), jnp.float32)
        p["unorm_b"] = jnp.zeros((outer_nc,), jnp.float32)
    return p


def init_unet_params(key, input_nc, output_nc, num_downs, ngf):
    assert input_nc == output_nc
    keys = iter(jax.random.split(key, 4 + num_downs))
    blk = _make_block(next(keys), ngf * 8, ngf * 8, "innermost")
    for _ in range(num_downs - 5):
        blk = _make_block(next(keys), ngf * 8, ngf * 8, "middle", blk)
    blk = _make_block(next(keys), ngf * 4, ngf * 8, "middle", blk)
    blk = _make_block(next(keys), ngf * 2, ngf * 4, "middle", blk)
    blk = _make_block(next(keys), ngf, ngf * 2, "middle", blk)
    blk = _make_block(next(keys), output_nc, ngf, "outermost", blk)
    return blk


def _block_forward(x, p):
    kind = p["kind"]
    if kind == "outermost":
        d = conv_down(x, p["dconv_w"], act=None)                 # dModel = [dConv]
        s = _block_forward(d, p["sub"])
        # uModel = [ReLU, ConvTranspose(bias=True), Tanh]
        return conv_transpose_up(s, p["uconv_w"], bias=p["uconv_b"],
                                 pre_act="relu", post_act="tanh")
    elif kind == "innermost":
        d = conv_down(x, p["dconv_w"], act="lrelu")              # [LeakyReLU, dConv]
        u = conv_transpose_up(d, p["uconv_w"], pre_act="relu")   # [ReLU, uConv]
        u = batchnorm(u, p["unorm_g"], p["unorm_b"])             # uNorm
        return jnp.concatenate([u, x], axis=-1)                  # skip concat (channels)
    else:
        d = conv_down(x, p["dconv_w"], act="lrelu")              # [LeakyReLU, dConv]
        d = batchnorm(d, p["dnorm_g"], p["dnorm_b"])             # dNorm
        s = _block_forward(d, p["sub"])
        u = conv_transpose_up(s, p["uconv_w"], pre_act="relu")   # [ReLU, uConv]
        u = batchnorm(u, p["unorm_g"], p["unorm_b"])             # uNorm
        return jnp.concatenate([u, x], axis=-1)                  # skip concat (channels)
    # TODO(synk): optional nn.Dropout(0.5) (use_dropout=True) is not implemented;
    # the reference default config has use_dropout=False.


def unet_generator_forward(x_nchw, params, learn_residual=False):
    """x_nchw: [N, C, H, W] (PyTorch layout). Returns [N, C, H, W]."""
    x = jnp.transpose(x_nchw, (0, 2, 3, 1))          # -> NHWC
    out = _block_forward(x, params)
    out = jnp.transpose(out, (0, 3, 1, 2))           # -> NCHW
    if learn_residual:
        out = jnp.clip(x_nchw + out, -1.0, 1.0)
    return out


# --------------------------------- main --------------------------------------

if __name__ == "__main__":
    key = jax.random.PRNGKey(0)
    k_param, k_input = jax.random.split(key)

    # Small but structurally faithful config: num_downs=5 (minimum), ngf=8,
    # input_nc = output_nc = 3, spatial 32x32 -> 1x1 bottleneck.
    input_nc = output_nc = 3
    num_downs = 5
    ngf = 8
    params = init_unet_params(k_param, input_nc, output_nc, num_downs, ngf)

    x = jax.random.normal(k_input, (2, input_nc, 32, 32), jnp.float32)

    fwd = jax.jit(lambda inp: unet_generator_forward(inp, params, learn_residual=False))
    out = jax.block_until_ready(fwd(x))

    assert out.shape == (2, output_nc, 32, 32), out.shape
    assert bool(jnp.all(jnp.isfinite(out)))
    print("KERNEL_OK")
</pallas_src>

<mosaic_0001>
module attributes {stable_mosaic.version = 11 : i64} {
  func.func @_mm_kernel(%arg0: i32, %arg1: i32, %arg2: i32, %arg3: memref<512x128xbf16, #tpu.memory_space<vmem>>, %arg4: memref<128x128xbf16, #tpu.memory_space<vmem>>, %arg5: memref<512x128xf32, #tpu.memory_space<vmem>>, %arg6: memref<512x128xf32, #tpu.memory_space<vmem>>) attributes {dimension_semantics = [#tpu.dimension_semantics<parallel>, #tpu.dimension_semantics<parallel>, #tpu.dimension_semantics<arbitrary>], iteration_bounds = array<i64: 1, 1, 1>, scalar_prefetch = 0 : i64, scratch_operands = 1 : i64, tpu.core_type = #tpu.core_type<tc>, window_params = [{transform_indices = @transform_0, window_bounds = array<i64: 512, 128>}, {transform_indices = @transform_1, window_bounds = array<i64: 128, 128>}, {transform_indices = @transform_2, window_bounds = array<i64: 512, 128>}]} {
    %c0_i32 = arith.constant 0 : i32
    %0 = arith.cmpi eq, %arg2, %c0_i32 : i32
    %1 = arith.extui %0 : i1 to i32
    %c0_i32_0 = arith.constant 0 : i32
    %2 = arith.cmpi ne, %1, %c0_i32_0 : i32
    scf.if %2 {
      %cst_10 = arith.constant 0.000000e+00 : f32
      %12 = vector.broadcast %cst_10 : f32 to vector<512x128xf32>
      %c0_11 = arith.constant 0 : index
      %c0_12 = arith.constant 0 : index
      %13 = vector.load %arg6[%c0_11, %c0_12] : memref<512x128xf32, #tpu.memory_space<vmem>>, vector<512x128xf32>
      tpu.vector_store %arg6[%c0_11, %c0_12], %12 {strides = array<i32>} : memref<512x128xf32, #tpu.memory_space<vmem>>, vector<512x128xf32>,
    } else {
    }
    %c0 = arith.constant 0 : index
    %c0_1 = arith.constant 0 : index
    %3 = vector.load %arg6[%c0, %c0_1] : memref<512x128xf32, #tpu.memory_space<vmem>>, vector<512x128xf32>
    %c0_2 = arith.constant 0 : index
    %c0_3 = arith.constant 0 : index
    %4 = vector.load %arg3[%c0_2, %c0_3] : memref<512x128xbf16, #tpu.memory_space<vmem>>, vector<512x128xbf16>
    %c0_4 = arith.constant 0 : index
    %c0_5 = arith.constant 0 : index
    %5 = vector.load %arg4[%c0_4, %c0_5] : memref<128x128xbf16, #tpu.memory_space<vmem>>, vector<128x128xbf16>
    %cst = arith.constant dense<0.000000e+00> : vector<512x128xf32>
    %6 = tpu.matmul %4, %5, %cst {dimension_numbers = #tpu.dot_dimension_numbers<[1], [0], [0], [1], [0, 0, 1, 1], [], []>} : vector<512x128xbf16>, vector<128x128xbf16>, vector<512x128xf32> -> vector<512x128xf32>
    %7 = arith.addf %3, %6 : vector<512x128xf32>
    %c0_6 = arith.constant 0 : index
    %c0_7 = arith.constant 0 : index
    %8 = vector.load %arg6[%c0_6, %c0_7] : memref<512x128xf32, #tpu.memory_space<vmem>>, vector<512x128xf32>
    tpu.vector_store %arg6[%c0_6, %c0_7], %7 {strides = array<i32>} : memref<512x128xf32, #tpu.memory_space<vmem>>, vector<512x128xf32>,
    %c0_i32_8 = arith.constant 0 : i32
    %9 = arith.cmpi eq, %arg2, %c0_i32_8 : i32
    %10 = arith.extui %9 : i1 to i32
    %c0_i32_9 = arith.constant 0 : i32
    %11 = arith.cmpi ne, %10, %c0_i32_9 : i32
    scf.if %11 {
      %c0_10 = arith.constant 0 : index
      %c0_11 = arith.constant 0 : index
      %12 = vector.load %arg6[%c0_10, %c0_11] : memref<512x128xf32, #tpu.memory_space<vmem>>, vector<512x128xf32>
      %c0_12 = arith.constant 0 : index
      %c0_13 = arith.constant 0 : index
      %13 = vector.load %arg5[%c0_12, %c0_13] : memref<512x128xf32, #tpu.memory_space<vmem>>, vector<512x128xf32>
      tpu.vector_store %arg5[%c0_12, %c0_13], %12 {strides = array<i32>} : memref<512x128xf32, #tpu.memory_space<vmem>>, vector<512x128xf32>,
    } else {
    }
    return
  }
  func.func @transform_0(%arg0: i32, %arg1: i32, %arg2: i32) -> (i32, i32) {
    %c0_i32 = arith.constant 0 : i32
    return %arg0, %arg2 : i32, i32
  }
  func.func @transform_1(%arg0: i32, %arg1: i32, %arg2: i32) -> (i32, i32) {
    %c0_i32 = arith.constant 0 : i32
    return %arg2, %arg1 : i32, i32
  }
  func.func @transform_2(%arg0: i32, %arg1: i32, %arg2: i32) -> (i32, i32) {
    %c0_i32 = arith.constant 0 : i32
    return %arg0, %arg1 : i32, i32
  }
}

module attributes {stable_mosaic.version = 11 : i64} {
  func.func @_mm_kernel(%arg0: i32, %arg1: i32, %arg2: i32, %arg3: memref<128x128xbf16, #tpu.memory_space<vmem>>, %arg4: memref<128x128xbf16, #tpu.memory_space<vmem>>, %arg5: memref<128x128xf32, #tpu.memory_space<vmem>>, %arg6: memref<128x128xf32, #tpu.memory_space<vmem>>) attributes {dimension_semantics = [#tpu.dimension_semantics<parallel>, #tpu.dimension_semantics<parallel>, #tpu.dimension_semantics<arbitrary>], iteration_bounds = array<i64: 1, 1, 1>, scalar_prefetch = 0 : i64, scratch_operands = 1 : i64, tpu.core_type = #tpu.core_type<tc>, window_params = [{transform_indices = @transform_0, window_bounds = array<i64: 128, 128>}, {transform_indices = @transform_1, window_bounds = array<i64: 128, 128>}, {transform_indices = @transform_2, window_bounds = array<i64: 128, 128>}]} {
    %c0_i32 = arith.constant 0 : i32
    %0 = arith.cmpi eq, %arg2, %c0_i32 : i32
    %1 = arith.extui %0 : i1 to i32
    %c0_i32_0 = arith.constant 0 : i32
    %2 = arith.cmpi ne, %1, %c0_i32_0 : i32
    scf.if %2 {
      %cst_10 = arith.constant 0.000000e+00 : f32
      %12 = vector.broadcast %cst_10 : f32 to vector<128x128xf32>
      %c0_11 = arith.constant 0 : index
      %c0_12 = arith.constant 0 : index
      %13 = vector.load %arg6[%c0_11, %c0_12] : memref<128x128xf32, #tpu.memory_space<vmem>>, vector<128x128xf32>
      tpu.vector_store %arg6[%c0_11, %c0_12], %12 {strides = array<i32>} : memref<128x128xf32, #tpu.memory_space<vmem>>, vector<128x128xf32>,
    } else {
    }
    %c0 = arith.constant 0 : index
    %c0_1 = arith.constant 0 : index
    %3 = vector.load %arg6[%c0, %c0_1] : memref<128x128xf32, #tpu.memory_space<vmem>>, vector<128x128xf32>
    %c0_2 = arith.constant 0 : index
    %c0_3 = arith.constant 0 : index
    %4 = vector.load %arg3[%c0_2, %c0_3] : memref<128x128xbf16, #tpu.memory_space<vmem>>, vector<128x128xbf16>
    %c0_4 = arith.constant 0 : index
    %c0_5 = arith.constant 0 : index
    %5 = vector.load %arg4[%c0_4, %c0_5] : memref<128x128xbf16, #tpu.memory_space<vmem>>, vector<128x128xbf16>
    %cst = arith.constant dense<0.000000e+00> : vector<128x128xf32>
    %6 = tpu.matmul %4, %5, %cst {dimension_numbers = #tpu.dot_dimension_numbers<[1], [0], [0], [1], [0, 0, 1, 1], [], []>} : vector<128x128xbf16>, vector<128x128xbf16>, vector<128x128xf32> -> vector<128x128xf32>
    %7 = arith.addf %3, %6 : vector<128x128xf32>
    %c0_6 = arith.constant 0 : index
    %c0_7 = arith.constant 0 : index
    %8 = vector.load %arg6[%c0_6, %c0_7] : memref<128x128xf32, #tpu.memory_space<vmem>>, vector<128x128xf32>
    tpu.vector_store %arg6[%c0_6, %c0_7], %7 {strides = array<i32>} : memref<128x128xf32, #tpu.memory_space<vmem>>, vector<128x128xf32>,
    %c0_i32_8 = arith.constant 0 : i32
    %9 = arith.cmpi eq, %arg2, %c0_i32_8 : i32
    %10 = arith.extui %9 : i1 to i32
    %c0_i32_9 = arith.constant 0 : i32
    %11 = arith.cmpi ne, %10, %c0_i32_9 : i32
    scf.if %11 {
      %c0_10 = arith.constant 0 : index
      %c0_11 = arith.constant 0 : index
      %12 = vector.load %arg6[%c0_10, %c0_11] : memref<128x128xf32, #tpu.memory_space<vmem>>, vector<128x128xf32>
      %c0_12 = arith.constant 0 : index
      %c0_13 = arith.constant 0 : index
      %13 = vector.load %arg5[%c0_12, %c0_13] : memref<128x128xf32, #tpu.memory_space<vmem>>, vector<128x128xf32>
      tpu.vector_store %arg5[%c0_12, %c0_13], %12 {strides = array<i32>} : memref<128x128xf32, #tpu.memory_space<vmem>>, vector<128x128xf32>,
    } else {
    }
    return
  }
  func.func @transform_0(%arg0: i32, %arg1: i32, %arg2: i32) -> (i32, i32) {
    %c0_i32 = arith.constant 0 : i32
    return %arg0, %arg2 : i32, i32
  }
  func.func @transform_1(%arg0: i32, %arg1: i32, %arg2: i32) -> (i32, i32) {
    %c0_i32 = arith.constant 0 : i32
    return %arg2, %arg1 : i32, i32
  }
  func.func @transform_2(%arg0: i32, %arg1: i32, %arg2: i32) -> (i32, i32) {
    %c0_i32 = arith.constant 0 : i32
    return %arg0, %arg1 : i32, i32
  }
}

module attributes {stable_mosaic.version = 11 : i64} {
  func.func @_bn_stats_kernel(%arg0: i32, %arg1: memref<128x16xf32, #tpu.memory_space<vmem>>, %arg2: memref<1x16xf32, #tpu.memory_space<vmem>>, %arg3: memref<1x16xf32, #tpu.memory_space<vmem>>) attributes {dimension_semantics = [#tpu.dimension_semantics<arbitrary>], iteration_bounds = array<i64: 1>, scalar_prefetch = 0 : i64, scratch_operands = 0 : i64, tpu.core_type = #tpu.core_type<tc>, window_params = [{transform_indices = @transform_0, window_bounds = array<i64: 128, 16>}, {pipeline_mode = #tpu.pipeline_mode<synchronous>, transform_indices = @transform_1, window_bounds = array<i64: 1, 16>}, {pipeline_mode = #tpu.pipeline_mode<synchronous>, transform_indices = @transform_2, window_bounds = array<i64: 1, 16>}]} {
    %c0_i32 = arith.constant 0 : i32
    %0 = arith.cmpi eq, %arg0, %c0_i32 : i32
    %1 = arith.extui %0 : i1 to i32
    %c0_i32_0 = arith.constant 0 : i32
    %2 = arith.cmpi ne, %1, %c0_i32_0 : i32
    scf.if %2 {
      %cst_11 = arith.constant 0.000000e+00 : f32
      %15 = vector.broadcast %cst_11 : f32 to vector<1x16xf32>
      %c0_12 = arith.constant 0 : index
      %c0_13 = arith.constant 0 : index
      %16 = vector.load %arg2[%c0_12, %c0_13] : memref<1x16xf32, #tpu.memory_space<vmem>>, vector<1x16xf32>
      tpu.vector_store %arg2[%c0_12, %c0_13], %15 {strides = array<i32>} : memref<1x16xf32, #tpu.memory_space<vmem>>, vector<1x16xf32>,
      %cst_14 = arith.constant 0.000000e+00 : f32
      %17 = vector.broadcast %cst_14 : f32 to vector<1x16xf32>
      %c0_15 = arith.constant 0 : index
      %c0_16 = arith.constant 0 : index
      %18 = vector.load %arg3[%c0_15, %c0_16] : memref<1x16xf32, #tpu.memory_space<vmem>>, vector<1x16xf32>
      tpu.vector_store %arg3[%c0_15, %c0_16], %17 {strides = array<i32>} : memref<1x16xf32, #tpu.memory_space<vmem>>, vector<1x16xf32>,
    } else {
    }
    %c0 = arith.constant 0 : index
    %c0_1 = arith.constant 0 : index
    %3 = vector.load %arg1[%c0, %c0_1] : memref<128x16xf32, #tpu.memory_space<vmem>>, vector<128x16xf32>
    %c0_2 = arith.constant 0 : index
    %c0_3 = arith.constant 0 : index
    %4 = vector.load %arg2[%c0_2, %c0_3] : memref<1x16xf32, #tpu.memory_space<vmem>>, vector<1x16xf32>
    %cst = arith.constant dense<0.000000e+00> : vector<16xf32>
    %5 = vector.multi_reduction <add>, %3, %cst [0] : vector<128x16xf32> to vector<16xf32>
    %6 = vector.shape_cast %5 : vector<16xf32> to vector<1x16xf32>
    %7 = arith.addf %4, %6 : vector<1x16xf32>
    %c0_4 = arith.constant 0 : index
    %c0_5 = arith.constant 0 : index
    %8 = vector.load %arg2[%c0_4, %c0_5] : memref<1x16xf32, #tpu.memory_space<vmem>>, vector<1x16xf32>
    tpu.vector_store %arg2[%c0_4, %c0_5], %7 {strides = array<i32>} : memref<1x16xf32, #tpu.memory_space<vmem>>, vector<1x16xf32>,
    %c0_6 = arith.constant 0 : index
    %c0_7 = arith.constant 0 : index
    %9 = vector.load %arg3[%c0_6, %c0_7] : memref<1x16xf32, #tpu.memory_space<vmem>>, vector<1x16xf32>
    %10 = arith.mulf %3, %3 : vector<128x16xf32>
    %cst_8 = arith.constant dense<0.000000e+00> : vector<16xf32>
    %11 = vector.multi_reduction <add>, %10, %cst_8 [0] : vector<128x16xf32> to vector<16xf32>
    %12 = vector.shape_cast %11 : vector<16xf32> to vector<1x16xf32>
    %13 = arith.addf %9, %12 : vector<1x16xf32>
    %c0_9 = arith.constant 0 : index
    %c0_10 = arith.constant 0 : index
    %14 = vector.load %arg3[%c0_9, %c0_10] : memref<1x16xf32, #tpu.memory_space<vmem>>, vector<1x16xf32>
    tpu.vector_store %arg3[%c0_9, %c0_10], %13 {strides = array<i32>} : memref<1x16xf32, #tpu.memory_space<vmem>>, vector<1x16xf32>,
    return
  }
  func.func @transform_0(%arg0: i32) -> (i32, i32) {
    %c0_i32 = arith.constant 0 : i32
    %c0_i32_0 = arith.constant 0 : i32
    return %arg0, %c0_i32 : i32, i32
  }
  func.func @transform_1(%arg0: i32) -> (i32, i32) {
    %c0_i32 = arith.constant 0 : i32
    %c0_i32_0 = arith.constant 0 : i32
    %c0_i32_1 = arith.constant 0 : i32
    return %c0_i32, %c0_i32_0 : i32, i32
  }
  func.func @transform_2(%arg0: i32) -> (i32, i32) {
    %c0_i32 = arith.constant 0 : i32
    %c0_i32_0 = arith.constant 0 : i32
    %c0_i32_1 = arith.constant 0 : i32
    return %c0_i32, %c0_i32_0 : i32, i32
  }
}

module attributes {stable_mosaic.version = 11 : i64} {
  func.func @_bn_norm_kernel(%arg0: i32, %arg1: memref<128x16xf32, #tpu.memory_space<vmem>>, %arg2: memref<1x16xf32, #tpu.memory_space<vmem>>, %arg3: memref<1x16xf32, #tpu.memory_space<vmem>>, %arg4: memref<128x16xf32, #tpu.memory_space<vmem>>) attributes {dimension_semantics = [#tpu.dimension_semantics<parallel>], iteration_bounds = array<i64: 1>, scalar_prefetch = 0 : i64, scratch_operands = 0 : i64, tpu.core_type = #tpu.core_type<tc>, window_params = [{transform_indices = @transform_0, window_bounds = array<i64: 128, 16>}, {pipeline_mode = #tpu.pipeline_mode<synchronous>, transform_indices = @transform_1, window_bounds = array<i64: 1, 16>}, {pipeline_mode = #tpu.pipeline_mode<synchronous>, transform_indices = @transform_2, window_bounds = array<i64: 1, 16>}, {transform_indices = @transform_3, window_bounds = array<i64: 128, 16>}]} {
    %c0 = arith.constant 0 : index
    %c0_0 = arith.constant 0 : index
    %0 = vector.load %arg1[%c0, %c0_0] : memref<128x16xf32, #tpu.memory_space<vmem>>, vector<128x16xf32>
    %c0_1 = arith.constant 0 : index
    %c0_2 = arith.constant 0 : index
    %1 = vector.load %arg2[%c0_1, %c0_2] : memref<1x16xf32, #tpu.memory_space<vmem>>, vector<1x16xf32>
    %2 = vector.broadcast %1 : vector<1x16xf32> to vector<128x16xf32>
    %3 = arith.mulf %0, %2 : vector<128x16xf32>
    %c0_3 = arith.constant 0 : index
    %c0_4 = arith.constant 0 : index
    %4 = vector.load %arg3[%c0_3, %c0_4] : memref<1x16xf32, #tpu.memory_space<vmem>>, vector<1x16xf32>
    %5 = vector.broadcast %4 : vector<1x16xf32> to vector<128x16xf32>
    %6 = arith.addf %3, %5 : vector<128x16xf32>
    %c0_5 = arith.constant 0 : index
    %c0_6 = arith.constant 0 : index
    %7 = vector.load %arg4[%c0_5, %c0_6] : memref<128x16xf32, #tpu.memory_space<vmem>>, vector<128x16xf32>
    tpu.vector_store %arg4[%c0_5, %c0_6], %6 {strides = array<i32>} : memref<128x16xf32, #tpu.memory_space<vmem>>, vector<128x16xf32>,
    return
  }
  func.func @transform_0(%arg0: i32) -> (i32, i32) {
    %c0_i32 = arith.constant 0 : i32
    %c0_i32_0 = arith.constant 0 : i32
    return %arg0, %c0_i32 : i32, i32
  }
  func.func @transform_1(%arg0: i32) -> (i32, i32) {
    %c0_i32 = arith.constant 0 : i32
    %c0_i32_0 = arith.constant 0 : i32
    %c0_i32_1 = arith.constant 0 : i32
    return %c0_i32, %c0_i32_0 : i32, i32
  }
  func.func @transform_2(%arg0: i32) -> (i32, i32) {
    %c0_i32 = arith.constant 0 : i32
    %c0_i32_0 = arith.constant 0 : i32
    %c0_i32_1 = arith.constant 0 : i32
    return %c0_i32, %c0_i32_0 : i32, i32
  }
  func.func @transform_3(%arg0: i32) -> (i32, i32) {
    %c0_i32 = arith.constant 0 : i32
    %c0_i32_0 = arith.constant 0 : i32
    return %arg0, %c0_i32 : i32, i32
  }
}

module attributes {stable_mosaic.version = 11 : i64} {
  func.func @_mm_kernel(%arg0: i32, %arg1: i32, %arg2: i32, %arg3: memref<32x256xbf16, #tpu.memory_space<vmem>>, %arg4: memref<256x128xbf16, #tpu.memory_space<vmem>>, %arg5: memref<32x128xf32, #tpu.memory_space<vmem>>, %arg6: memref<32x128xf32, #tpu.memory_space<vmem>>) attributes {dimension_semantics = [#tpu.dimension_semantics<parallel>, #tpu.dimension_semantics<parallel>, #tpu.dimension_semantics<arbitrary>], iteration_bounds = array<i64: 1, 1, 1>, scalar_prefetch = 0 : i64, scratch_operands = 1 : i64, tpu.core_type = #tpu.core_type<tc>, window_params = [{transform_indices = @transform_0, window_bounds = array<i64: 32, 256>}, {transform_indices = @transform_1, window_bounds = array<i64: 256, 128>}, {transform_indices = @transform_2, window_bounds = array<i64: 32, 128>}]} {
    %c0_i32 = arith.constant 0 : i32
    %0 = arith.cmpi eq, %arg2, %c0_i32 : i32
    %1 = arith.extui %0 : i1 to i32
    %c0_i32_0 = arith.constant 0 : i32
    %2 = arith.cmpi ne, %1, %c0_i32_0 : i32
    scf.if %2 {
      %cst_10 = arith.constant 0.000000e+00 : f32
      %12 = vector.broadcast %cst_10 : f32 to vector<32x128xf32>
      %c0_11 = arith.constant 0 : index
      %c0_12 = arith.constant 0 : index
      %13 = vector.load %arg6[%c0_11, %c0_12] : memref<32x128xf32, #tpu.memory_space<vmem>>, vector<32x128xf32>
      tpu.vector_store %arg6[%c0_11, %c0_12], %12 {strides = array<i32>} : memref<32x128xf32, #tpu.memory_space<vmem>>, vector<32x128xf32>,
    } else {
    }
    %c0 = arith.constant 0 : index
    %c0_1 = arith.constant 0 : index
    %3 = vector.load %arg6[%c0, %c0_1] : memref<32x128xf32, #tpu.memory_space<vmem>>, vector<32x128xf32>
    %c0_2 = arith.constant 0 : index
    %c0_3 = arith.constant 0 : index
    %4 = vector.load %arg3[%c0_2, %c0_3] : memref<32x256xbf16, #tpu.memory_space<vmem>>, vector<32x256xbf16>
    %c0_4 = arith.constant 0 : index
    %c0_5 = arith.constant 0 : index
    %5 = vector.load %arg4[%c0_4, %c0_5] : memref<256x128xbf16, #tpu.memory_space<vmem>>, vector<256x128xbf16>
    %cst = arith.constant dense<0.000000e+00> : vector<32x128xf32>
    %6 = tpu.matmul %4, %5, %cst {dimension_numbers = #tpu.dot_dimension_numbers<[1], [0], [0], [1], [0, 0, 1, 1], [], []>} : vector<32x256xbf16>, vector<256x128xbf16>, vector<32x128xf32> -> vector<32x128xf32>
    %7 = arith.addf %3, %6 : vector<32x128xf32>
    %c0_6 = arith.constant 0 : index
    %c0_7 = arith.constant 0 : index
    %8 = vector.load %arg6[%c0_6, %c0_7] : memref<32x128xf32, #tpu.memory_space<vmem>>, vector<32x128xf32>
    tpu.vector_store %arg6[%c0_6, %c0_7], %7 {strides = array<i32>} : memref<32x128xf32, #tpu.memory_space<vmem>>, vector<32x128xf32>,
    %c0_i32_8 = arith.constant 0 : i32
    %9 = arith.cmpi eq, %arg2, %c0_i32_8 : i32
    %10 = arith.extui %9 : i1 to i32
    %c0_i32_9 = arith.constant 0 : i32
    %11 = arith.cmpi ne, %10, %c0_i32_9 : i32
    scf.if %11 {
      %c0_10 = arith.constant 0 : index
      %c0_11 = arith.constant 0 : index
      %12 = vector.load %arg6[%c0_10, %c0_11] : memref<32x128xf32, #tpu.memory_space<vmem>>, vector<32x128xf32>
      %c0_12 = arith.constant 0 : index
      %c0_13 = arith.constant 0 : index
      %13 = vector.load %arg5[%c0_12, %c0_13] : memref<32x128xf32, #tpu.memory_space<vmem>>, vector<32x128xf32>
      tpu.vector_store %arg5[%c0_12, %c0_13], %12 {strides = array<i32>} : memref<32x128xf32, #tpu.memory_space<vmem>>, vector<32x128xf32>,
    } else {
    }
    return
  }
  func.func @transform_0(%arg0: i32, %arg1: i32, %arg2: i32) -> (i32, i32) {
    %c0_i32 = arith.constant 0 : i32
    return %arg0, %arg2 : i32, i32
  }
  func.func @transform_1(%arg0: i32, %arg1: i32, %arg2: i32) -> (i32, i32) {
    %c0_i32 = arith.constant 0 : i32
    return %arg2, %arg1 : i32, i32
  }
  func.func @transform_2(%arg0: i32, %arg1: i32, %arg2: i32) -> (i32, i32) {
    %c0_i32 = arith.constant 0 : i32
    return %arg0, %arg1 : i32, i32
  }
}

module attributes {stable_mosaic.version = 11 : i64} {
  func.func @_bn_stats_kernel(%arg0: i32, %arg1: memref<32x32xf32, #tpu.memory_space<vmem>>, %arg2: memref<1x32xf32, #tpu.memory_space<vmem>>, %arg3: memref<1x32xf32, #tpu.memory_space<vmem>>) attributes {dimension_semantics = [#tpu.dimension_semantics<arbitrary>], iteration_bounds = array<i64: 1>, scalar_prefetch = 0 : i64, scratch_operands = 0 : i64, tpu.core_type = #tpu.core_type<tc>, window_params = [{transform_indices = @transform_0, window_bounds = array<i64: 32, 32>}, {pipeline_mode = #tpu.pipeline_mode<synchronous>, transform_indices = @transform_1, window_bounds = array<i64: 1, 32>}, {pipeline_mode = #tpu.pipeline_mode<synchronous>, transform_indices = @transform_2, window_bounds = array<i64: 1, 32>}]} {
    %c0_i32 = arith.constant 0 : i32
    %0 = arith.cmpi eq, %arg0, %c0_i32 : i32
    %1 = arith.extui %0 : i1 to i32
    %c0_i32_0 = arith.constant 0 : i32
    %2 = arith.cmpi ne, %1, %c0_i32_0 : i32
    scf.if %2 {
      %cst_11 = arith.constant 0.000000e+00 : f32
      %15 = vector.broadcast %cst_11 : f32 to vector<1x32xf32>
      %c0_12 = arith.constant 0 : index
      %c0_13 = arith.constant 0 : index
      %16 = vector.load %arg2[%c0_12, %c0_13] : memref<1x32xf32, #tpu.memory_space<vmem>>, vector<1x32xf32>
      tpu.vector_store %arg2[%c0_12, %c0_13], %15 {strides = array<i32>} : memref<1x32xf32, #tpu.memory_space<vmem>>, vector<1x32xf32>,
      %cst_14 = arith.constant 0.000000e+00 : f32
      %17 = vector.broadcast %cst_14 : f32 to vector<1x32xf32>
      %c0_15 = arith.constant 0 : index
      %c0_16 = arith.constant 0 : index
      %18 = vector.load %arg3[%c0_15, %c0_16] : memref<1x32xf32, #tpu.memory_space<vmem>>, vector<1x32xf32>
      tpu.vector_store %arg3[%c0_15, %c0_16], %17 {strides = array<i32>} : memref<1x32xf32, #tpu.memory_space<vmem>>, vector<1x32xf32>,
    } else {
    }
    %c0 = arith.constant 0 : index
    %c0_1 = arith.constant 0 : index
    %3 = vector.load %arg1[%c0, %c0_1] : memref<32x32xf32, #tpu.memory_space<vmem>>, vector<32x32xf32>
    %c0_2 = arith.constant 0 : index
    %c0_3 = arith.constant 0 : index
    %4 = vector.load %arg2[%c0_2, %c0_3] : memref<1x32xf32, #tpu.memory_space<vmem>>, vector<1x32xf32>
    %cst = arith.constant dense<0.000000e+00> : vector<32xf32>
    %5 = vector.multi_reduction <add>, %3, %cst [0] : vector<32x32xf32> to vector<32xf32>
    %6 = vector.shape_cast %5 : vector<32xf32> to vector<1x32xf32>
    %7 = arith.addf %4, %6 : vector<1x32xf32>
    %c0_4 = arith.constant 0 : index
    %c0_5 = arith.constant 0 : index
    %8 = vector.load %arg2[%c0_4, %c0_5] : memref<1x32xf32, #tpu.memory_space<vmem>>, vector<1x32xf32>
    tpu.vector_store %arg2[%c0_4, %c0_5], %7 {strides = array<i32>} : memref<1x32xf32, #tpu.memory_space<vmem>>, vector<1x32xf32>,
    %c0_6 = arith.constant 0 : index
    %c0_7 = arith.constant 0 : index
    %9 = vector.load %arg3[%c0_6, %c0_7] : memref<1x32xf32, #tpu.memory_space<vmem>>, vector<1x32xf32>
    %10 = arith.mulf %3, %3 : vector<32x32xf32>
    %cst_8 = arith.constant dense<0.000000e+00> : vector<32xf32>
    %11 = vector.multi_reduction <add>, %10, %cst_8 [0] : vector<32x32xf32> to vector<32xf32>
    %12 = vector.shape_cast %11 : vector<32xf32> to vector<1x32xf32>
    %13 = arith.addf %9, %12 : vector<1x32xf32>
    %c0_9 = arith.constant 0 : index
    %c0_10 = arith.constant 0 : index
    %14 = vector.load %arg3[%c0_9, %c0_10] : memref<1x32xf32, #tpu.memory_space<vmem>>, vector<1x32xf32>
    tpu.vector_store %arg3[%c0_9, %c0_10], %13 {strides = array<i32>} : memref<1x32xf32, #tpu.memory_space<vmem>>, vector<1x32xf32>,
    return
  }
  func.func @transform_0(%arg0: i32) -> (i32, i32) {
    %c0_i32 = arith.constant 0 : i32
    %c0_i32_0 = arith.constant 0 : i32
    return %arg0, %c0_i32 : i32, i32
  }
  func.func @transform_1(%arg0: i32) -> (i32, i32) {
    %c0_i32 = arith.constant 0 : i32
    %c0_i32_0 = arith.constant 0 : i32
    %c0_i32_1 = arith.constant 0 : i32
    return %c0_i32, %c0_i32_0 : i32, i32
  }
  func.func @transform_2(%arg0: i32) -> (i32, i32) {
    %c0_i32 = arith.constant 0 : i32
    %c0_i32_0 = arith.constant 0 : i32
    %c0_i32_1 = arith.constant 0 : i32
    return %c0_i32, %c0_i32_0 : i32, i32
  }
}

module attributes {stable_mosaic.version = 11 : i64} {
  func.func @_bn_norm_kernel(%arg0: i32, %arg1: memref<32x32xf32, #tpu.memory_space<vmem>>, %arg2: memref<1x32xf32, #tpu.memory_space<vmem>>, %arg3: memref<1x32xf32, #tpu.memory_space<vmem>>, %arg4: memref<32x32xf32, #tpu.memory_space<vmem>>) attributes {dimension_semantics = [#tpu.dimension_semantics<parallel>], iteration_bounds = array<i64: 1>, scalar_prefetch = 0 : i64, scratch_operands = 0 : i64, tpu.core_type = #tpu.core_type<tc>, window_params = [{transform_indices = @transform_0, window_bounds = array<i64: 32, 32>}, {pipeline_mode = #tpu.pipeline_mode<synchronous>, transform_indices = @transform_1, window_bounds = array<i64: 1, 32>}, {pipeline_mode = #tpu.pipeline_mode<synchronous>, transform_indices = @transform_2, window_bounds = array<i64: 1, 32>}, {transform_indices = @transform_3, window_bounds = array<i64: 32, 32>}]} {
    %c0 = arith.constant 0 : index
    %c0_0 = arith.constant 0 : index
    %0 = vector.load %arg1[%c0, %c0_0] : memref<32x32xf32, #tpu.memory_space<vmem>>, vector<32x32xf32>
    %c0_1 = arith.constant 0 : index
    %c0_2 = arith.constant 0 : index
    %1 = vector.load %arg2[%c0_1, %c0_2] : memref<1x32xf32, #tpu.memory_space<vmem>>, vector<1x32xf32>
    %2 = vector.broadcast %1 : vector<1x32xf32> to vector<32x32xf32>
    %3 = arith.mulf %0, %2 : vector<32x32xf32>
    %c0_3 = arith.constant 0 : index
    %c0_4 = arith.constant 0 : index
    %4 = vector.load %arg3[%c0_3, %c0_4] : memref<1x32xf32, #tpu.memory_space<vmem>>, vector<1x32xf32>
    %5 = vector.broadcast %4 : vector<1x32xf32> to vector<32x32xf32>
    %6 = arith.addf %3, %5 : vector<32x32xf32>
    %c0_5 = arith.constant 0 : index
    %c0_6 = arith.constant 0 : index
    %7 = vector.load %arg4[%c0_5, %c0_6] : memref<32x32xf32, #tpu.memory_space<vmem>>, vector<32x32xf32>
    tpu.vector_store %arg4[%c0_5, %c0_6], %6 {strides = array<i32>} : memref<32x32xf32, #tpu.memory_space<vmem>>, vector<32x32xf32>,
    return
  }
  func.func @transform_0(%arg0: i32) -> (i32, i32) {
    %c0_i32 = arith.constant 0 : i32
    %c0_i32_0 = arith.constant 0 : i32
    return %arg0, %c0_i32 : i32, i32
  }
  func.func @transform_1(%arg0: i32) -> (i32, i32) {
    %c0_i32 = arith.constant 0 : i32
    %c0_i32_0 = arith.constant 0 : i32
    %c0_i32_1 = arith.constant 0 : i32
    return %c0_i32, %c0_i32_0 : i32, i32
  }
  func.func @transform_2(%arg0: i32) -> (i32, i32) {
    %c0_i32 = arith.constant 0 : i32
    %c0_i32_0 = arith.constant 0 : i32
    %c0_i32_1 = arith.constant 0 : i32
    return %c0_i32, %c0_i32_0 : i32, i32
  }
  func.func @transform_3(%arg0: i32) -> (i32, i32) {
    %c0_i32 = arith.constant 0 : i32
    %c0_i32_0 = arith.constant 0 : i32
    return %arg0, %c0_i32 : i32, i32
  }
}

module attributes {stable_mosaic.version = 11 : i64} {
  func.func @_bn_stats_kernel(%arg0: i32, %arg1: memref<8x64xf32, #tpu.memory_space<vmem>>, %arg2: memref<1x64xf32, #tpu.memory_space<vmem>>, %arg3: memref<1x64xf32, #tpu.memory_space<vmem>>) attributes {dimension_semantics = [#tpu.dimension_semantics<arbitrary>], iteration_bounds = array<i64: 1>, scalar_prefetch = 0 : i64, scratch_operands = 0 : i64, tpu.core_type = #tpu.core_type<tc>, window_params = [{transform_indices = @transform_0, window_bounds = array<i64: 8, 64>}, {pipeline_mode = #tpu.pipeline_mode<synchronous>, transform_indices = @transform_1, window_bounds = array<i64: 1, 64>}, {pipeline_mode = #tpu.pipeline_mode<synchronous>, transform_indices = @transform_2, window_bounds = array<i64: 1, 64>}]} {
    %c0_i32 = arith.constant 0 : i32
    %0 = arith.cmpi eq, %arg0, %c0_i32 : i32
    %1 = arith.extui %0 : i1 to i32
    %c0_i32_0 = arith.constant 0 : i32
    %2 = arith.cmpi ne, %1, %c0_i32_0 : i32
    scf.if %2 {
      %cst_11 = arith.constant 0.000000e+00 : f32
      %15 = vector.broadcast %cst_11 : f32 to vector<1x64xf32>
      %c0_12 = arith.constant 0 : index
      %c0_13 = arith.constant 0 : index
      %16 = vector.load %arg2[%c0_12, %c0_13] : memref<1x64xf32, #tpu.memory_space<vmem>>, vector<1x64xf32>
      tpu.vector_store %arg2[%c0_12, %c0_13], %15 {strides = array<i32>} : memref<1x64xf32, #tpu.memory_space<vmem>>, vector<1x64xf32>,
      %cst_14 = arith.constant 0.000000e+00 : f32
      %17 = vector.broadcast %cst_14 : f32 to vector<1x64xf32>
      %c0_15 = arith.constant 0 : index
      %c0_16 = arith.constant 0 : index
      %18 = vector.load %arg3[%c0_15, %c0_16] : memref<1x64xf32, #tpu.memory_space<vmem>>, vector<1x64xf32>
      tpu.vector_store %arg3[%c0_15, %c0_16], %17 {strides = array<i32>} : memref<1x64xf32, #tpu.memory_space<vmem>>, vector<1x64xf32>,
    } else {
    }
    %c0 = arith.constant 0 : index
    %c0_1 = arith.constant 0 : index
    %3 = vector.load %arg1[%c0, %c0_1] : memref<8x64xf32, #tpu.memory_space<vmem>>, vector<8x64xf32>
    %c0_2 = arith.constant 0 : index
    %c0_3 = arith.constant 0 : index
    %4 = vector.load %arg2[%c0_2, %c0_3] : memref<1x64xf32, #tpu.memory_space<vmem>>, vector<1x64xf32>
    %cst = arith.constant dense<0.000000e+00> : vector<64xf32>
    %5 = vector.multi_reduction <add>, %3, %cst [0] : vector<8x64xf32> to vector<64xf32>
    %6 = vector.shape_cast %5 : vector<64xf32> to vector<1x64xf32>
    %7 = arith.addf %4, %6 : vector<1x64xf32>
    %c0_4 = arith.constant 0 : index
    %c0_5 = arith.constant 0 : index
    %8 = vector.load %arg2[%c0_4, %c0_5] : memref<1x64xf32, #tpu.memory_space<vmem>>, vector<1x64xf32>
    tpu.vector_store %arg2[%c0_4, %c0_5], %7 {strides = array<i32>} : memref<1x64xf32, #tpu.memory_space<vmem>>, vector<1x64xf32>,
    %c0_6 = arith.constant 0 : index
    %c0_7 = arith.constant 0 : index
    %9 = vector.load %arg3[%c0_6, %c0_7] : memref<1x64xf32, #tpu.memory_space<vmem>>, vector<1x64xf32>
    %10 = arith.mulf %3, %3 : vector<8x64xf32>
    %cst_8 = arith.constant dense<0.000000e+00> : vector<64xf32>
    %11 = vector.multi_reduction <add>, %10, %cst_8 [0] : vector<8x64xf32> to vector<64xf32>
    %12 = vector.shape_cast %11 : vector<64xf32> to vector<1x64xf32>
    %13 = arith.addf %9, %12 : vector<1x64xf32>
    %c0_9 = arith.constant 0 : index
    %c0_10 = arith.constant 0 : index
    %14 = vector.load %arg3[%c0_9, %c0_10] : memref<1x64xf32, #tpu.memory_space<vmem>>, vector<1x64xf32>
    tpu.vector_store %arg3[%c0_9, %c0_10], %13 {strides = array<i32>} : memref<1x64xf32, #tpu.memory_space<vmem>>, vector<1x64xf32>,
    return
  }
  func.func @transform_0(%arg0: i32) -> (i32, i32) {
    %c0_i32 = arith.constant 0 : i32
    %c0_i32_0 = arith.constant 0 : i32
    return %arg0, %c0_i32 : i32, i32
  }
  func.func @transform_1(%arg0: i32) -> (i32, i32) {
    %c0_i32 = arith.constant 0 : i32
    %c0_i32_0 = arith.constant 0 : i32
    %c0_i32_1 = arith.constant 0 : i32
    return %c0_i32, %c0_i32_0 : i32, i32
  }
  func.func @transform_2(%arg0: i32) -> (i32, i32) {
    %c0_i32 = arith.constant 0 : i32
    %c0_i32_0 = arith.constant 0 : i32
    %c0_i32_1 = arith.constant 0 : i32
    return %c0_i32, %c0_i32_0 : i32, i32
  }
}

module attributes {stable_mosaic.version = 11 : i64} {
  func.func @_mm_kernel(%arg0: i32, %arg1: i32, %arg2: i32, %arg3: memref<8x512xbf16, #tpu.memory_space<vmem>>, %arg4: memref<512x128xbf16, #tpu.memory_space<vmem>>, %arg5: memref<8x128xf32, #tpu.memory_space<vmem>>, %arg6: memref<8x128xf32, #tpu.memory_space<vmem>>) attributes {dimension_semantics = [#tpu.dimension_semantics<parallel>, #tpu.dimension_semantics<parallel>, #tpu.dimension_semantics<arbitrary>], iteration_bounds = array<i64: 1, 1, 1>, scalar_prefetch = 0 : i64, scratch_operands = 1 : i64, tpu.core_type = #tpu.core_type<tc>, window_params = [{transform_indices = @transform_0, window_bounds = array<i64: 8, 512>}, {transform_indices = @transform_1, window_bounds = array<i64: 512, 128>}, {transform_indices = @transform_2, window_bounds = array<i64: 8, 128>}]} {
    %c0_i32 = arith.constant 0 : i32
    %0 = arith.cmpi eq, %arg2, %c0_i32 : i32
    %1 = arith.extui %0 : i1 to i32
    %c0_i32_0 = arith.constant 0 : i32
    %2 = arith.cmpi ne, %1, %c0_i32_0 : i32
    scf.if %2 {
      %cst_10 = arith.constant 0.000000e+00 : f32
      %12 = vector.broadcast %cst_10 : f32 to vector<8x128xf32>
      %c0_11 = arith.constant 0 : index
      %c0_12 = arith.constant 0 : index
      %13 = vector.load %arg6[%c0_11, %c0_12] : memref<8x128xf32, #tpu.memory_space<vmem>>, vector<8x128xf32>
      tpu.vector_store %arg6[%c0_11, %c0_12], %12 {strides = array<i32>} : memref<8x128xf32, #tpu.memory_space<vmem>>, vector<8x128xf32>,
    } else {
    }
    %c0 = arith.constant 0 : index
    %c0_1 = arith.constant 0 : index
    %3 = vector.load %arg6[%c0, %c0_1] : memref<8x128xf32, #tpu.memory_space<vmem>>, vector<8x128xf32>
    %c0_2 = arith.constant 0 : index
    %c0_3 = arith.constant 0 : index
    %4 = vector.load %arg3[%c0_2, %c0_3] : memref<8x512xbf16, #tpu.memory_space<vmem>>, vector<8x512xbf16>
    %c0_4 = arith.constant 0 : index
    %c0_5 = arith.constant 0 : index
    %5 = vector.load %arg4[%c0_4, %c0_5] : memref<512x128xbf16, #tpu.memory_space<vmem>>, vector<512x128xbf16>
    %cst = arith.constant dense<0.000000e+00> : vector<8x128xf32>
    %6 = tpu.matmul %4, %5, %cst {dimension_numbers = #tpu.dot_dimension_numbers<[1], [0], [0], [1], [0, 0, 1, 1], [], []>} : vector<8x512xbf16>, vector<512x128xbf16>, vector<8x128xf32> -> vector<8x128xf32>
    %7 = arith.addf %3, %6 : vector<8x128xf32>
    %c0_6 = arith.constant 0 : index
    %c0_7 = arith.constant 0 : index
    %8 = vector.load %arg6[%c0_6, %c0_7] : memref<8x128xf32, #tpu.memory_space<vmem>>, vector<8x128xf32>
    tpu.vector_store %arg6[%c0_6, %c0_7], %7 {strides = array<i32>} : memref<8x128xf32, #tpu.memory_space<vmem>>, vector<8x128xf32>,
    %c0_i32_8 = arith.constant 0 : i32
    %9 = arith.cmpi eq, %arg2, %c0_i32_8 : i32
    %10 = arith.extui %9 : i1 to i32
    %c0_i32_9 = arith.constant 0 : i32
    %11 = arith.cmpi ne, %10, %c0_i32_9 : i32
    scf.if %11 {
      %c0_10 = arith.constant 0 : index
      %c0_11 = arith.constant 0 : index
      %12 = vector.load %arg6[%c0_10, %c0_11] : memref<8x128xf32, #tpu.memory_space<vmem>>, vector<8x128xf32>
      %c0_12 = arith.constant 0 : index
      %c0_13 = arith.constant 0 : index
      %13 = vector.load %arg5[%c0_12, %c0_13] : memref<8x128xf32, #tpu.memory_space<vmem>>, vector<8x128xf32>
      tpu.vector_store %arg5[%c0_12, %c0_13], %12 {strides = array<i32>} : memref<8x128xf32, #tpu.memory_space<vmem>>, vector<8x128xf32>,
    } else {
    }
    return
  }
  func.func @transform_0(%arg0: i32, %arg1: i32, %arg2: i32) -> (i32, i32) {
    %c0_i32 = arith.constant 0 : i32
    return %arg0, %arg2 : i32, i32
  }
  func.func @transform_1(%arg0: i32, %arg1: i32, %arg2: i32) -> (i32, i32) {
    %c0_i32 = arith.constant 0 : i32
    return %arg2, %arg1 : i32, i32
  }
  func.func @transform_2(%arg0: i32, %arg1: i32, %arg2: i32) -> (i32, i32) {
    %c0_i32 = arith.constant 0 : i32
    return %arg0, %arg1 : i32, i32
  }
}

module attributes {stable_mosaic.version = 11 : i64} {
  func.func @_bn_norm_kernel(%arg0: i32, %arg1: memref<8x64xf32, #tpu.memory_space<vmem>>, %arg2: memref<1x64xf32, #tpu.memory_space<vmem>>, %arg3: memref<1x64xf32, #tpu.memory_space<vmem>>, %arg4: memref<8x64xf32, #tpu.memory_space<vmem>>) attributes {dimension_semantics = [#tpu.dimension_semantics<parallel>], iteration_bounds = array<i64: 1>, scalar_prefetch = 0 : i64, scratch_operands = 0 : i64, tpu.core_type = #tpu.core_type<tc>, window_params = [{transform_indices = @transform_0, window_bounds = array<i64: 8, 64>}, {pipeline_mode = #tpu.pipeline_mode<synchronous>, transform_indices = @transform_1, window_bounds = array<i64: 1, 64>}, {pipeline_mode = #tpu.pipeline_mode<synchronous>, transform_indices = @transform_2, window_bounds = array<i64: 1, 64>}, {transform_indices = @transform_3, window_bounds = array<i64: 8, 64>}]} {
    %c0 = arith.constant 0 : index
    %c0_0 = arith.constant 0 : index
    %0 = vector.load %arg1[%c0, %c0_0] : memref<8x64xf32, #tpu.memory_space<vmem>>, vector<8x64xf32>
    %c0_1 = arith.constant 0 : index
    %c0_2 = arith.constant 0 : index
    %1 = vector.load %arg2[%c0_1, %c0_2] : memref<1x64xf32, #tpu.memory_space<vmem>>, vector<1x64xf32>
    %2 = vector.broadcast %1 : vector<1x64xf32> to vector<8x64xf32>
    %3 = arith.mulf %0, %2 : vector<8x64xf32>
    %c0_3 = arith.constant 0 : index
    %c0_4 = arith.constant 0 : index
    %4 = vector.load %arg3[%c0_3, %c0_4] : memref<1x64xf32, #tpu.memory_space<vmem>>, vector<1x64xf32>
    %5 = vector.broadcast %4 : vector<1x64xf32> to vector<8x64xf32>
    %6 = arith.addf %3, %5 : vector<8x64xf32>
    %c0_5 = arith.constant 0 : index
    %c0_6 = arith.constant 0 : index
    %7 = vector.load %arg4[%c0_5, %c0_6] : memref<8x64xf32, #tpu.memory_space<vmem>>, vector<8x64xf32>
    tpu.vector_store %arg4[%c0_5, %c0_6], %6 {strides = array<i32>} : memref<8x64xf32, #tpu.memory_space<vmem>>, vector<8x64xf32>,
    return
  }
  func.func @transform_0(%arg0: i32) -> (i32, i32) {
    %c0_i32 = arith.constant 0 : i32
    %c0_i32_0 = arith.constant 0 : i32
    return %arg0, %c0_i32 : i32, i32
  }
  func.func @transform_1(%arg0: i32) -> (i32, i32) {
    %c0_i32 = arith.constant 0 : i32
    %c0_i32_0 = arith.constant 0 : i32
    %c0_i32_1 = arith.constant 0 : i32
    return %c0_i32, %c0_i32_0 : i32, i32
  }
  func.func @transform_2(%arg0: i32) -> (i32, i32) {
    %c0_i32 = arith.constant 0 : i32
    %c0_i32_0 = arith.constant 0 : i32
    %c0_i32_1 = arith.constant 0 : i32
    return %c0_i32, %c0_i32_0 : i32, i32
  }
  func.func @transform_3(%arg0: i32) -> (i32, i32) {
    %c0_i32 = arith.constant 0 : i32
    %c0_i32_0 = arith.constant 0 : i32
    return %arg0, %c0_i32 : i32, i32
  }
}

module attributes {stable_mosaic.version = 11 : i64} {
  func.func @_mm_kernel(%arg0: i32, %arg1: i32, %arg2: i32, %arg3: memref<8x512xbf16, #tpu.memory_space<vmem>>, %arg4: memref<512x128xbf16, #tpu.memory_space<vmem>>, %arg5: memref<8x128xf32, #tpu.memory_space<vmem>>, %arg6: memref<8x128xf32, #tpu.memory_space<vmem>>) attributes {dimension_semantics = [#tpu.dimension_semantics<parallel>, #tpu.dimension_semantics<parallel>, #tpu.dimension_semantics<arbitrary>], iteration_bounds = array<i64: 1, 1, 2>, scalar_prefetch = 0 : i64, scratch_operands = 1 : i64, tpu.core_type = #tpu.core_type<tc>, window_params = [{transform_indices = @transform_0, window_bounds = array<i64: 8, 512>}, {transform_indices = @transform_1, window_bounds = array<i64: 512, 128>}, {transform_indices = @transform_2, window_bounds = array<i64: 8, 128>}]} {
    %c0_i32 = arith.constant 0 : i32
    %0 = arith.cmpi eq, %arg2, %c0_i32 : i32
    %1 = arith.extui %0 : i1 to i32
    %c0_i32_0 = arith.constant 0 : i32
    %2 = arith.cmpi ne, %1, %c0_i32_0 : i32
    scf.if %2 {
      %cst_9 = arith.constant 0.000000e+00 : f32
      %12 = vector.broadcast %cst_9 : f32 to vector<8x128xf32>
      %c0_10 = arith.constant 0 : index
      %c0_11 = arith.constant 0 : index
      %13 = vector.load %arg6[%c0_10, %c0_11] : memref<8x128xf32, #tpu.memory_space<vmem>>, vector<8x128xf32>
      tpu.vector_store %arg6[%c0_10, %c0_11], %12 {strides = array<i32>} : memref<8x128xf32, #tpu.memory_space<vmem>>, vector<8x128xf32>,
    } else {
    }
    %c0 = arith.constant 0 : index
    %c0_1 = arith.constant 0 : index
    %3 = vector.load %arg6[%c0, %c0_1] : memref<8x128xf32, #tpu.memory_space<vmem>>, vector<8x128xf32>
    %c0_2 = arith.constant 0 : index
    %c0_3 = arith.constant 0 : index
    %4 = vector.load %arg3[%c0_2, %c0_3] : memref<8x512xbf16, #tpu.memory_space<vmem>>, vector<8x512xbf16>
    %c0_4 = arith.constant 0 : index
    %c0_5 = arith.constant 0 : index
    %5 = vector.load %arg4[%c0_4, %c0_5] : memref<512x128xbf16, #tpu.memory_space<vmem>>, vector<512x128xbf16>
    %cst = arith.constant dense<0.000000e+00> : vector<8x128xf32>
    %6 = tpu.matmul %4, %5, %cst {dimension_numbers = #tpu.dot_dimension_numbers<[1], [0], [0], [1], [0, 0, 1, 1], [], []>} : vector<8x512xbf16>, vector<512x128xbf16>, vector<8x128xf32> -> vector<8x128xf32>
    %7 = arith.addf %3, %6 : vector<8x128xf32>
    %c0_6 = arith.constant 0 : index
    %c0_7 = arith.constant 0 : index
    %8 = vector.load %arg6[%c0_6, %c0_7] : memref<8x128xf32, #tpu.memory_space<vmem>>, vector<8x128xf32>
    tpu.vector_store %arg6[%c0_6, %c0_7], %7 {strides = array<i32>} : memref<8x128xf32, #tpu.memory_space<vmem>>, vector<8x128xf32>,
    %c1_i32 = arith.constant 1 : i32
    %9 = arith.cmpi eq, %arg2, %c1_i32 : i32
    %10 = arith.extui %9 : i1 to i32
    %c0_i32_8 = arith.constant 0 : i32
    %11 = arith.cmpi ne, %10, %c0_i32_8 : i32
    scf.if %11 {
      %c0_9 = arith.constant 0 : index
      %c0_10 = arith.constant 0 : index
      %12 = vector.load %arg6[%c0_9, %c0_10] : memref<8x128xf32, #tpu.memory_space<vmem>>, vector<8x128xf32>
      %c0_11 = arith.constant 0 : index
      %c0_12 = arith.constant 0 : index
      %13 = vector.load %arg5[%c0_11, %c0_12] : memref<8x128xf32, #tpu.memory_space<vmem>>, vector<8x128xf32>
      tpu.vector_store %arg5[%c0_11, %c0_12], %12 {strides = array<i32>} : memref<8x128xf32, #tpu.memory_space<vmem>>, vector<8x128xf32>,
    } else {
    }
    return
  }
  func.func @transform_0(%arg0: i32, %arg1: i32, %arg2: i32) -> (i32, i32) {
    %c0_i32 = arith.constant 0 : i32
    return %arg0, %arg2 : i32, i32
  }
  func.func @transform_1(%arg0: i32, %arg1: i32, %arg2: i32) -> (i32, i32) {
    %c0_i32 = arith.constant 0 : i32
    return %arg2, %arg1 : i32, i32
  }
  func.func @transform_2(%arg0: i32, %arg1: i32, %arg2: i32) -> (i32, i32) {
    %c0_i32 = arith.constant 0 : i32
    return %arg0, %arg1 : i32, i32
  }
}

module attributes {stable_mosaic.version = 11 : i64} {
  func.func @_mm_kernel(%arg0: i32, %arg1: i32, %arg2: i32, %arg3: memref<8x256xbf16, #tpu.memory_space<vmem>>, %arg4: memref<256x128xbf16, #tpu.memory_space<vmem>>, %arg5: memref<8x128xf32, #tpu.memory_space<vmem>>, %arg6: memref<8x128xf32, #tpu.memory_space<vmem>>) attributes {dimension_semantics = [#tpu.dimension_semantics<parallel>, #tpu.dimension_semantics<parallel>, #tpu.dimension_semantics<arbitrary>], iteration_bounds = array<i64: 1, 1, 1>, scalar_prefetch = 0 : i64, scratch_operands = 1 : i64, tpu.core_type = #tpu.core_type<tc>, window_params = [{transform_indices = @transform_0, window_bounds = array<i64: 8, 256>}, {transform_indices = @transform_1, window_bounds = array<i64: 256, 128>}, {transform_indices = @transform_2, window_bounds = array<i64: 8, 128>}]} {
    %c0_i32 = arith.constant 0 : i32
    %0 = arith.cmpi eq, %arg2, %c0_i32 : i32
    %1 = arith.extui %0 : i1 to i32
    %c0_i32_0 = arith.constant 0 : i32
    %2 = arith.cmpi ne, %1, %c0_i32_0 : i32
    scf.if %2 {
      %cst_10 = arith.constant 0.000000e+00 : f32
      %12 = vector.broadcast %cst_10 : f32 to vector<8x128xf32>
      %c0_11 = arith.constant 0 : index
      %c0_12 = arith.constant 0 : index
      %13 = vector.load %arg6[%c0_11, %c0_12] : memref<8x128xf32, #tpu.memory_space<vmem>>, vector<8x128xf32>
      tpu.vector_store %arg6[%c0_11, %c0_12], %12 {strides = array<i32>} : memref<8x128xf32, #tpu.memory_space<vmem>>, vector<8x128xf32>,
    } else {
    }
    %c0 = arith.constant 0 : index
    %c0_1 = arith.constant 0 : index
    %3 = vector.load %arg6[%c0, %c0_1] : memref<8x128xf32, #tpu.memory_space<vmem>>, vector<8x128xf32>
    %c0_2 = arith.constant 0 : index
    %c0_3 = arith.constant 0 : index
    %4 = vector.load %arg3[%c0_2, %c0_3] : memref<8x256xbf16, #tpu.memory_space<vmem>>, vector<8x256xbf16>
    %c0_4 = arith.constant 0 : index
    %c0_5 = arith.constant 0 : index
    %5 = vector.load %arg4[%c0_4, %c0_5] : memref<256x128xbf16, #tpu.memory_space<vmem>>, vector<256x128xbf16>
    %cst = arith.constant dense<0.000000e+00> : vector<8x128xf32>
    %6 = tpu.matmul %4, %5, %cst {dimension_numbers = #tpu.dot_dimension_numbers<[1], [0], [0], [1], [0, 0, 1, 1], [], []>} : vector<8x256xbf16>, vector<256x128xbf16>, vector<8x128xf32> -> vector<8x128xf32>
    %7 = arith.addf %3, %6 : vector<8x128xf32>
    %c0_6 = arith.constant 0 : index
    %c0_7 = arith.constant 0 : index
    %8 = vector.load %arg6[%c0_6, %c0_7] : memref<8x128xf32, #tpu.memory_space<vmem>>, vector<8x128xf32>
    tpu.vector_store %arg6[%c0_6, %c0_7], %7 {strides = array<i32>} : memref<8x128xf32, #tpu.memory_space<vmem>>, vector<8x128xf32>,
    %c0_i32_8 = arith.constant 0 : i32
    %9 = arith.cmpi eq, %arg2, %c0_i32_8 : i32
    %10 = arith.extui %9 : i1 to i32
    %c0_i32_9 = arith.constant 0 : i32
    %11 = arith.cmpi ne, %10, %c0_i32_9 : i32
    scf.if %11 {
      %c0_10 = arith.constant 0 : index
      %c0_11 = arith.constant 0 : index
      %12 = vector.load %arg6[%c0_10, %c0_11] : memref<8x128xf32, #tpu.memory_space<vmem>>, vector<8x128xf32>
      %c0_12 = arith.constant 0 : index
      %c0_13 = arith.constant 0 : index
      %13 = vector.load %arg5[%c0_12, %c0_13] : memref<8x128xf32, #tpu.memory_space<vmem>>, vector<8x128xf32>
      tpu.vector_store %arg5[%c0_12, %c0_13], %12 {strides = array<i32>} : memref<8x128xf32, #tpu.memory_space<vmem>>, vector<8x128xf32>,
    } else {
    }
    return
  }
  func.func @transform_0(%arg0: i32, %arg1: i32, %arg2: i32) -> (i32, i32) {
    %c0_i32 = arith.constant 0 : i32
    return %arg0, %arg2 : i32, i32
  }
  func.func @transform_1(%arg0: i32, %arg1: i32, %arg2: i32) -> (i32, i32) {
    %c0_i32 = arith.constant 0 : i32
    return %arg2, %arg1 : i32, i32
  }
  func.func @transform_2(%arg0: i32, %arg1: i32, %arg2: i32) -> (i32, i32) {
    %c0_i32 = arith.constant 0 : i32
    return %arg0, %arg1 : i32, i32
  }
}

module attributes {stable_mosaic.version = 11 : i64} {
  func.func @_bn_stats_kernel(%arg0: i32, %arg1: memref<512x8xf32, #tpu.memory_space<vmem>>, %arg2: memref<1x8xf32, #tpu.memory_space<vmem>>, %arg3: memref<1x8xf32, #tpu.memory_space<vmem>>) attributes {dimension_semantics = [#tpu.dimension_semantics<arbitrary>], iteration_bounds = array<i64: 1>, scalar_prefetch = 0 : i64, scratch_operands = 0 : i64, tpu.core_type = #tpu.core_type<tc>, window_params = [{transform_indices = @transform_0, window_bounds = array<i64: 512, 8>}, {pipeline_mode = #tpu.pipeline_mode<synchronous>, transform_indices = @transform_1, window_bounds = array<i64: 1, 8>}, {pipeline_mode = #tpu.pipeline_mode<synchronous>, transform_indices = @transform_2, window_bounds = array<i64: 1, 8>}]} {
    %c0_i32 = arith.constant 0 : i32
    %0 = arith.cmpi eq, %arg0, %c0_i32 : i32
    %1 = arith.extui %0 : i1 to i32
    %c0_i32_0 = arith.constant 0 : i32
    %2 = arith.cmpi ne, %1, %c0_i32_0 : i32
    scf.if %2 {
      %cst_11 = arith.constant 0.000000e+00 : f32
      %15 = vector.broadcast %cst_11 : f32 to vector<1x8xf32>
      %c0_12 = arith.constant 0 : index
      %c0_13 = arith.constant 0 : index
      %16 = vector.load %arg2[%c0_12, %c0_13] : memref<1x8xf32, #tpu.memory_space<vmem>>, vector<1x8xf32>
      tpu.vector_store %arg2[%c0_12, %c0_13], %15 {strides = array<i32>} : memref<1x8xf32, #tpu.memory_space<vmem>>, vector<1x8xf32>,
      %cst_14 = arith.constant 0.000000e+00 : f32
      %17 = vector.broadcast %cst_14 : f32 to vector<1x8xf32>
      %c0_15 = arith.constant 0 : index
      %c0_16 = arith.constant 0 : index
      %18 = vector.load %arg3[%c0_15, %c0_16] : memref<1x8xf32, #tpu.memory_space<vmem>>, vector<1x8xf32>
      tpu.vector_store %arg3[%c0_15, %c0_16], %17 {strides = array<i32>} : memref<1x8xf32, #tpu.memory_space<vmem>>, vector<1x8xf32>,
    } else {
    }
    %c0 = arith.constant 0 : index
    %c0_1 = arith.constant 0 : index
    %3 = vector.load %arg1[%c0, %c0_1] : memref<512x8xf32, #tpu.memory_space<vmem>>, vector<512x8xf32>
    %c0_2 = arith.constant 0 : index
    %c0_3 = arith.constant 0 : index
    %4 = vector.load %arg2[%c0_2, %c0_3] : memref<1x8xf32, #tpu.memory_space<vmem>>, vector<1x8xf32>
    %cst = arith.constant dense<0.000000e+00> : vector<8xf32>
    %5 = vector.multi_reduction <add>, %3, %cst [0] : vector<512x8xf32> to vector<8xf32>
    %6 = vector.shape_cast %5 : vector<8xf32> to vector<1x8xf32>
    %7 = arith.addf %4, %6 : vector<1x8xf32>
    %c0_4 = arith.constant 0 : index
    %c0_5 = arith.constant 0 : index
    %8 = vector.load %arg2[%c0_4, %c0_5] : memref<1x8xf32, #tpu.memory_space<vmem>>, vector<1x8xf32>
    tpu.vector_store %arg2[%c0_4, %c0_5], %7 {strides = array<i32>} : memref<1x8xf32, #tpu.memory_space<vmem>>, vector<1x8xf32>,
    %c0_6 = arith.constant 0 : index
    %c0_7 = arith.constant 0 : index
    %9 = vector.load %arg3[%c0_6, %c0_7] : memref<1x8xf32, #tpu.memory_space<vmem>>, vector<1x8xf32>
    %10 = arith.mulf %3, %3 : vector<512x8xf32>
    %cst_8 = arith.constant dense<0.000000e+00> : vector<8xf32>
    %11 = vector.multi_reduction <add>, %10, %cst_8 [0] : vector<512x8xf32> to vector<8xf32>
    %12 = vector.shape_cast %11 : vector<8xf32> to vector<1x8xf32>
    %13 = arith.addf %9, %12 : vector<1x8xf32>
    %c0_9 = arith.constant 0 : index
    %c0_10 = arith.constant 0 : index
    %14 = vector.load %arg3[%c0_9, %c0_10] : memref<1x8xf32, #tpu.memory_space<vmem>>, vector<1x8xf32>
    tpu.vector_store %arg3[%c0_9, %c0_10], %13 {strides = array<i32>} : memref<1x8xf32, #tpu.memory_space<vmem>>, vector<1x8xf32>,
    return
  }
  func.func @transform_0(%arg0: i32) -> (i32, i32) {
    %c0_i32 = arith.constant 0 : i32
    %c0_i32_0 = arith.constant 0 : i32
    return %arg0, %c0_i32 : i32, i32
  }
  func.func @transform_1(%arg0: i32) -> (i32, i32) {
    %c0_i32 = arith.constant 0 : i32
    %c0_i32_0 = arith.constant 0 : i32
    %c0_i32_1 = arith.constant 0 : i32
    return %c0_i32, %c0_i32_0 : i32, i32
  }
  func.func @transform_2(%arg0: i32) -> (i32, i32) {
    %c0_i32 = arith.constant 0 : i32
    %c0_i32_0 = arith.constant 0 : i32
    %c0_i32_1 = arith.constant 0 : i32
    return %c0_i32, %c0_i32_0 : i32, i32
  }
}

module attributes {stable_mosaic.version = 11 : i64} {
  func.func @_bn_norm_kernel(%arg0: i32, %arg1: memref<512x8xf32, #tpu.memory_space<vmem>>, %arg2: memref<1x8xf32, #tpu.memory_space<vmem>>, %arg3: memref<1x8xf32, #tpu.memory_space<vmem>>, %arg4: memref<512x8xf32, #tpu.memory_space<vmem>>) attributes {dimension_semantics = [#tpu.dimension_semantics<parallel>], iteration_bounds = array<i64: 1>, scalar_prefetch = 0 : i64, scratch_operands = 0 : i64, tpu.core_type = #tpu.core_type<tc>, window_params = [{transform_indices = @transform_0, window_bounds = array<i64: 512, 8>}, {pipeline_mode = #tpu.pipeline_mode<synchronous>, transform_indices = @transform_1, window_bounds = array<i64: 1, 8>}, {pipeline_mode = #tpu.pipeline_mode<synchronous>, transform_indices = @transform_2, window_bounds = array<i64: 1, 8>}, {transform_indices = @transform_3, window_bounds = array<i64: 512, 8>}]} {
    %c0 = arith.constant 0 : index
    %c0_0 = arith.constant 0 : index
    %0 = vector.load %arg1[%c0, %c0_0] : memref<512x8xf32, #tpu.memory_space<vmem>>, vector<512x8xf32>
    %c0_1 = arith.constant 0 : index
    %c0_2 = arith.constant 0 : index
    %1 = vector.load %arg2[%c0_1, %c0_2] : memref<1x8xf32, #tpu.memory_space<vmem>>, vector<1x8xf32>
    %2 = vector.broadcast %1 : vector<1x8xf32> to vector<512x8xf32>
    %3 = arith.mulf %0, %2 : vector<512x8xf32>
    %c0_3 = arith.constant 0 : index
    %c0_4 = arith.constant 0 : index
    %4 = vector.load %arg3[%c0_3, %c0_4] : memref<1x8xf32, #tpu.memory_space<vmem>>, vector<1x8xf32>
    %5 = vector.broadcast %4 : vector<1x8xf32> to vector<512x8xf32>
    %6 = arith.addf %3, %5 : vector<512x8xf32>
    %c0_5 = arith.constant 0 : index
    %c0_6 = arith.constant 0 : index
    %7 = vector.load %arg4[%c0_5, %c0_6] : memref<512x8xf32, #tpu.memory_space<vmem>>, vector<512x8xf32>
    tpu.vector_store %arg4[%c0_5, %c0_6], %6 {strides = array<i32>} : memref<512x8xf32, #tpu.memory_space<vmem>>, vector<512x8xf32>,
    return
  }
  func.func @transform_0(%arg0: i32) -> (i32, i32) {
    %c0_i32 = arith.constant 0 : i32
    %c0_i32_0 = arith.constant 0 : i32
    return %arg0, %c0_i32 : i32, i32
  }
  func.func @transform_1(%arg0: i32) -> (i32, i32) {
    %c0_i32 = arith.constant 0 : i32
    %c0_i32_0 = arith.constant 0 : i32
    %c0_i32_1 = arith.constant 0 : i32
    return %c0_i32, %c0_i32_0 : i32, i32
  }
  func.func @transform_2(%arg0: i32) -> (i32, i32) {
    %c0_i32 = arith.constant 0 : i32
    %c0_i32_0 = arith.constant 0 : i32
    %c0_i32_1 = arith.constant 0 : i32
    return %c0_i32, %c0_i32_0 : i32, i32
  }
  func.func @transform_3(%arg0: i32) -> (i32, i32) {
    %c0_i32 = arith.constant 0 : i32
    %c0_i32_0 = arith.constant 0 : i32
    return %arg0, %c0_i32 : i32, i32
  }
}

module attributes {stable_mosaic.version = 11 : i64} {
  func.func @_mm_kernel_bias(%arg0: i32, %arg1: i32, %arg2: i32, %arg3: memref<512x128xbf16, #tpu.memory_space<vmem>>, %arg4: memref<128x128xbf16, #tpu.memory_space<vmem>>, %arg5: memref<1x128xf32, #tpu.memory_space<vmem>>, %arg6: memref<512x128xf32, #tpu.memory_space<vmem>>, %arg7: memref<512x128xf32, #tpu.memory_space<vmem>>) attributes {dimension_semantics = [#tpu.dimension_semantics<parallel>, #tpu.dimension_semantics<parallel>, #tpu.dimension_semantics<arbitrary>], iteration_bounds = array<i64: 1, 1, 1>, scalar_prefetch = 0 : i64, scratch_operands = 1 : i64, tpu.core_type = #tpu.core_type<tc>, window_params = [{transform_indices = @transform_0, window_bounds = array<i64: 512, 128>}, {transform_indices = @transform_1, window_bounds = array<i64: 128, 128>}, {transform_indices = @transform_2, window_bounds = array<i64: 1, 128>}, {transform_indices = @transform_3, window_bounds = array<i64: 512, 128>}]} {
    %c0_i32 = arith.constant 0 : i32
    %0 = arith.cmpi eq, %arg2, %c0_i32 : i32
    %1 = arith.extui %0 : i1 to i32
    %c0_i32_0 = arith.constant 0 : i32
    %2 = arith.cmpi ne, %1, %c0_i32_0 : i32
    scf.if %2 {
      %cst_10 = arith.constant 0.000000e+00 : f32
      %12 = vector.broadcast %cst_10 : f32 to vector<512x128xf32>
      %c0_11 = arith.constant 0 : index
      %c0_12 = arith.constant 0 : index
      %13 = vector.load %arg7[%c0_11, %c0_12] : memref<512x128xf32, #tpu.memory_space<vmem>>, vector<512x128xf32>
      tpu.vector_store %arg7[%c0_11, %c0_12], %12 {strides = array<i32>} : memref<512x128xf32, #tpu.memory_space<vmem>>, vector<512x128xf32>,
    } else {
    }
    %c0 = arith.constant 0 : index
    %c0_1 = arith.constant 0 : index
    %3 = vector.load %arg7[%c0, %c0_1] : memref<512x128xf32, #tpu.memory_space<vmem>>, vector<512x128xf32>
    %c0_2 = arith.constant 0 : index
    %c0_3 = arith.constant 0 : index
    %4 = vector.load %arg3[%c0_2, %c0_3] : memref<512x128xbf16, #tpu.memory_space<vmem>>, vector<512x128xbf16>
    %c0_4 = arith.constant 0 : index
    %c0_5 = arith.constant 0 : index
    %5 = vector.load %arg4[%c0_4, %c0_5] : memref<128x128xbf16, #tpu.memory_space<vmem>>, vector<128x128xbf16>
    %cst = arith.constant dense<0.000000e+00> : vector<512x128xf32>
    %6 = tpu.matmul %4, %5, %cst {dimension_numbers = #tpu.dot_dimension_numbers<[1], [0], [0], [1], [0, 0, 1, 1], [], []>} : vector<512x128xbf16>, vector<128x128xbf16>, vector<512x128xf32> -> vector<512x128xf32>
    %7 = arith.addf %3, %6 : vector<512x128xf32>
    %c0_6 = arith.constant 0 : index
    %c0_7 = arith.constant 0 : index
    %8 = vector.load %arg7[%c0_6, %c0_7] : memref<512x128xf32, #tpu.memory_space<vmem>>, vector<512x128xf32>
    tpu.vector_store %arg7[%c0_6, %c0_7], %7 {strides = array<i32>} : memref<512x128xf32, #tpu.memory_space<vmem>>, vector<512x128xf32>,
    %c0_i32_8 = arith.constant 0 : i32
    %9 = arith.cmpi eq, %arg2, %c0_i32_8 : i32
    %10 = arith.extui %9 : i1 to i32
    %c0_i32_9 = arith.constant 0 : i32
    %11 = arith.cmpi ne, %10, %c0_i32_9 : i32
    scf.if %11 {
      %c0_10 = arith.constant 0 : index
      %c0_11 = arith.constant 0 : index
      %12 = vector.load %arg7[%c0_10, %c0_11] : memref<512x128xf32, #tpu.memory_space<vmem>>, vector<512x128xf32>
      %c0_12 = arith.constant 0 : index
      %c0_13 = arith.constant 0 : index
      %13 = vector.load %arg5[%c0_12, %c0_13] : memref<1x128xf32, #tpu.memory_space<vmem>>, vector<1x128xf32>
      %14 = vector.broadcast %13 : vector<1x128xf32> to vector<512x128xf32>
      %15 = arith.addf %12, %14 : vector<512x128xf32>
      %16 = math.tanh %15 : vector<512x128xf32>
      %c0_14 = arith.constant 0 : index
      %c0_15 = arith.constant 0 : index
      %17 = vector.load %arg6[%c0_14, %c0_15] : memref<512x128xf32, #tpu.memory_space<vmem>>, vector<512x128xf32>
      tpu.vector_store %arg6[%c0_14, %c0_15], %16 {strides = array<i32>} : memref<512x128xf32, #tpu.memory_space<vmem>>, vector<512x128xf32>,
    } else {
    }
    return
  }
  func.func @transform_0(%arg0: i32, %arg1: i32, %arg2: i32) -> (i32, i32) {
    %c0_i32 = arith.constant 0 : i32
    return %arg0, %arg2 : i32, i32
  }
  func.func @transform_1(%arg0: i32, %arg1: i32, %arg2: i32) -> (i32, i32) {
    %c0_i32 = arith.constant 0 : i32
    return %arg2, %arg1 : i32, i32
  }
  func.func @transform_2(%arg0: i32, %arg1: i32, %arg2: i32) -> (i32, i32) {
    %c0_i32 = arith.constant 0 : i32
    %c0_i32_0 = arith.constant 0 : i32
    return %c0_i32, %arg1 : i32, i32
  }
  func.func @transform_3(%arg0: i32, %arg1: i32, %arg2: i32) -> (i32, i32) {
    %c0_i32 = arith.constant 0 : i32
    return %arg0, %arg1 : i32, i32
  }
}

</mosaic_0001>

<bundles_post_ra>
// kernel: _lambda_.39
= control target key start
LH: loop header
LB: loop body
LE: loop exit
PB: predicated region body
PF: predicated region fallthrough
CT: control target
= control target key end

     0   :  { %s1559_s1 = inlined_call_operand.vmem [shape: bf16[128,128], index: 1, kind: input, shape index: {}]   ;;  %s1560_s0 = inlined_call_operand.vmem [shape: bf16[512,128], index: 0, kind: input, shape index: {}]   ;;  %s1561_s2 = inlined_call_operand.vmem [shape: f32[512,128], index: 2, kind: output, shape index: {}]  }
   0x1   :  { %v1192_v0 = vld [vmem:[%s1559_s1] sm:$0xff]   ;;  %v1193_v1 = vld [vmem:[%s1559_s1 + $0x8] sm:$0xff]   ;;  %v1194_v2 = vld [vmem:[%s1559_s1 + $0x10] sm:$0xff]  }
   0x2   :  { %1096 = vmatprep.subr.bf16.mxu0 %v1192_v0  ;;  %1176 = vmatprep.subr.bf16.mxu1 %v1192_v0  ;;  %v1195_v3 = vld [vmem:[%s1559_s1 + $0x18] sm:$0xff]   ;;  %v1200_v4 = vld [vmem:[%s1560_s0] sm:$0xff]   ;;  %v1197_v7 = vld [vmem:[%s1559_s1 + $0x28] sm:$0xff]  }
   0x3   :  { %1097 = vmatpush3.bf16.msra.mxu0 %v1192_v0  ;;  %1184 = vmatpush3.bf16.msra.mxu1 %v1192_v0  ;;  %v1201_v5 = vld [vmem:[%s1560_s0 + $0x80] sm:$0xff]   ;;  %v1198_v8 = vld [vmem:[%s1559_s1 + $0x30] sm:$0xff]   ;;  %v1199_v9 = vld [vmem:[%s1559_s1 + $0x38] sm:$0xff]  }
   0x4   :  { %1098 = vmatprep.subr.bf16.mxu0 %v1193_v1  ;;  %1177 = vmatprep.subr.bf16.mxu1 %v1193_v1  ;;  %v1196_v6 = vld [vmem:[%s1559_s1 + $0x20] sm:$0xff]   ;;  %v1202_v10 = vld [vmem:[%s1560_s0 + $0x8] sm:$0xff]   ;;  %v1204_v12 = vld [vmem:[%s1560_s0 + $0x10] sm:$0xff]  }
   0x5   :  { %1112 = vmatprep.mubr.bf16.mxu0 %v1200_v4  ;;  %1144 = vmatprep.mubr.bf16.mxu1 %v1201_v5  ;;  %v1203_v11 = vld [vmem:[%s1560_s0 + $0x88] sm:$0xff]   ;;  %v1205_v13 = vld [vmem:[%s1560_s0 + $0x90] sm:$0xff]   ;;  %v1206_v14 = vld [vmem:[%s1560_s0 + $0x18] sm:$0xff]  }
   0x6   :  { %v1207_v15 = vld [vmem:[%s1560_s0 + $0x98] sm:$0xff]   ;;  %v1208_v16 = vld [vmem:[%s1560_s0 + $0x20] sm:$0xff]   ;;  %v1210_v18 = vld [vmem:[%s1560_s0 + $0x28] sm:$0xff]  }
   0x7   :  { %1099 = vmatpush3.bf16.msra.mxu0 %v1193_v1  ;;  %1185 = vmatpush3.bf16.msra.mxu1 %v1193_v1  ;;  %v1209_v17 = vld [vmem:[%s1560_s0 + $0xa0] sm:$0xff]   ;;  %v1211_v19 = vld [vmem:[%s1560_s0 + $0xa8] sm:$0xff]   ;;  %v1212_v20 = vld [vmem:[%s1560_s0 + $0x30] sm:$0xff]  }
   0x8   :  { %1100 = vmatprep.subr.bf16.mxu0 %v1194_v2  ;;  %1178 = vmatprep.subr.bf16.mxu1 %v1194_v2  ;;  %v1213_v21 = vld [vmem:[%s1560_s0 + $0xb0] sm:$0xff]   ;;  %v1214_v22 = vld [vmem:[%s1560_s0 + $0x38] sm:$0xff]   ;;  %v1216_v24 = vld [vmem:[%s1560_s0 + $0x40] sm:$0xff]  }
   0x9   :  { %v1215_v23 = vld [vmem:[%s1560_s0 + $0xb8] sm:$0xff]   ;;  %v1217_v25 = vld [vmem:[%s1560_s0 + $0xc0] sm:$0xff]   ;;  %v1218_v26 = vld [vmem:[%s1560_s0 + $0x48] sm:$0xff]  }
   0xa   :  { %v1219_v27 = vld [vmem:[%s1560_s0 + $0xc8] sm:$0xff]   ;;  %v1220_v28 = vld [vmem:[%s1560_s0 + $0x50] sm:$0xff]   ;;  %v1222_v30 = vld [vmem:[%s1560_s0 + $0x58] sm:$0xff]  }
   0xb   :  { %1101 = vmatpush3.bf16.msra.mxu0 %v1194_v2  ;;  %1186 = vmatpush3.bf16.msra.mxu1 %v1194_v2  ;;  %v1221_v29 = vld [vmem:[%s1560_s0 + $0xd0] sm:$0xff]   ;;  %v1223_v31 = vld [vmem:[%s1560_s0 + $0xd8] sm:$0xff]   ;;  %v1224_v32 = vld [vmem:[%s1560_s0 + $0x60] sm:$0xff]  }
   0xc   :  { %1102 = vmatprep.subr.bf16.mxu0 %v1195_v3  ;;  %1179 = vmatprep.subr.bf16.mxu1 %v1195_v3  ;;  %v1225_v33 = vld [vmem:[%s1560_s0 + $0xe0] sm:$0xff]   ;;  %v1226_v34 = vld [vmem:[%s1560_s0 + $0x68] sm:$0xff]   ;;  %v1228_v36 = vld [vmem:[%s1560_s0 + $0x70] sm:$0xff]  }
   0xd   :  { %v1227_v35 = vld [vmem:[%s1560_s0 + $0xe8] sm:$0xff]   ;;  %v1229_v37 = vld [vmem:[%s1560_s0 + $0xf0] sm:$0xff]   ;;  %v1230_v38 = vld [vmem:[%s1560_s0 + $0x78] sm:$0xff]  }
   0xe   :  { %v1231_v39 = vld [vmem:[%s1560_s0 + $0xf8] sm:$0xff]  }
   0xf   :  { %1103 = vmatpush3.bf16.msra.mxu0 %v1195_v3  ;;  %1187 = vmatpush3.bf16.msra.mxu1 %v1195_v3 }
  0x10   :  { %1104 = vmatprep.subr.bf16.mxu0 %v1196_v6  ;;  %1180 = vmatprep.subr.bf16.mxu1 %v1196_v6 }
  0x13   :  { %1105 = vmatpush3.bf16.msra.mxu0 %v1196_v6  ;;  %1188 = vmatpush3.bf16.msra.mxu1 %v1196_v6 }
  0x14   :  { %1106 = vmatprep.subr.bf16.mxu0 %v1197_v7  ;;  %1181 = vmatprep.subr.bf16.mxu1 %v1197_v7 }
  0x17   :  { %1107 = vmatpush3.bf16.msra.mxu0 %v1197_v7  ;;  %1189 = vmatpush3.bf16.msra.mxu1 %v1197_v7 }
  0x18   :  { %1108 = vmatprep.subr.bf16.mxu0 %v1198_v8  ;;  %1182 = vmatprep.subr.bf16.mxu1 %v1198_v8 }
  0x1b   :  { %1109 = vmatpush3.bf16.msra.mxu0 %v1198_v8  ;;  %1190 = vmatpush3.bf16.msra.mxu1 %v1198_v8 }
  0x1c   :  { %1110 = vmatprep.subr.bf16.mxu0 %v1199_v9  ;;  %1183 = vmatprep.subr.bf16.mxu1 %v1199_v9 }
  0x1f   :  { %1111 = vmatpush3.bf16.msra.mxu0 %v1199_v9  ;;  %1191 = vmatpush3.bf16.msra.mxu1 %v1199_v9 }
  0x22   :  { %1113 = vmatmul.mubr.bf16.vlgmr.msra.gmra.mrb[0].mxu0 %v1202_v10  ;;  %1145 = vmatmul.mubr.bf16.vlgmr.msra.gmra.mrb[0].mxu1 %v1203_v11 }
  0x23   :  { %1116 = vmatprep.mubr.bf16.mxu0 %v1204_v12  ;;  %1148 = vmatprep.mubr.bf16.mxu1 %v1205_v13 }
  0x2a   :  { %1117 = vmatmul.mubr.bf16.gmra.mrb[4].mxu0 %v1206_v14  ;;  %1149 = vmatmul.mubr.bf16.gmra.mrb[4].mxu1 %v1207_v15 }
  0x2b   :  { %1120 = vmatprep.mubr.bf16.mxu0 %v1208_v16  ;;  %1152 = vmatprep.mubr.bf16.mxu1 %v1209_v17 }
  0x32   :  { %1121 = vmatmul.mubr.bf16.gmra.mrb[8].mxu0 %v1210_v18  ;;  %1153 = vmatmul.mubr.bf16.gmra.mrb[8].mxu1 %v1211_v19 }
  0x33   :  { %1124 = vmatprep.mubr.bf16.mxu0 %v1212_v20  ;;  %1156 = vmatprep.mubr.bf16.mxu1 %v1213_v21 }
  0x3a   :  { %1125 = vmatmul.mubr.bf16.gmra.mrb[12].mxu0 %v1214_v22  ;;  %1157 = vmatmul.mubr.bf16.gmra.mrb[12].mxu1 %v1215_v23 }
  0x3b   :  { %1128 = vmatprep.mubr.bf16.mxu0 %v1216_v24  ;;  %1160 = vmatprep.mubr.bf16.mxu1 %v1217_v25 }
  0x42   :  { %1129 = vmatmul.mubr.bf16.gmra.mrb[16].mxu0 %v1218_v26  ;;  %1161 = vmatmul.mubr.bf16.gmra.mrb[16].mxu1 %v1219_v27 }
  0x43   :  { %1132 = vmatprep.mubr.bf16.mxu0 %v1220_v28  ;;  %1164 = vmatprep.mubr.bf16.mxu1 %v1221_v29 }
  0x4a   :  { %1133 = vmatmul.mubr.bf16.gmra.mrb[20].mxu0 %v1222_v30  ;;  %1165 = vmatmul.mubr.bf16.gmra.mrb[20].mxu1 %v1223_v31 }
  0x4b   :  { %1136 = vmatprep.mubr.bf16.mxu0 %v1224_v32  ;;  %1168 = vmatprep.mubr.bf16.mxu1 %v1225_v33 }
  0x52   :  { %1137 = vmatmul.mubr.bf16.gmra.mrb[24].mxu0 %v1226_v34  ;;  %1169 = vmatmul.mubr.bf16.gmra.mrb[24].mxu1 %v1227_v35 }
  0x53   :  { %1140 = vmatprep.mubr.bf16.mxu0 %v1228_v36  ;;  %1172 = vmatprep.mubr.bf16.mxu1 %v1229_v37 }
  0x5a   :  { %1141 = vmatmul.mubr.bf16.gmra.mrb[28].mxu0 %v1230_v38  ;;  %1173 = vmatmul.mubr.bf16.gmra.mrb[28].mxu1 %v1231_v39 }
  0xf5   :  { %v1114_v40 = vpop.f32.mrb[0].mxu0  ;;  %v1146_v41 = vpop.f32.mrb[0].mxu1 }
  0xf6   :  { %950 = vst [vmem:[%s1561_s2 + $0x10] sm:$0xff] %v1114_v40  ;;  %982 = vst [vmem:[%s1561_s2 + $0x110] sm:$0xff] %v1146_v41  ;;  %v498_v42 = vpop.f32.mrb[1].mxu0  ;;  %v626_v43 = vpop.f32.mrb[1].mxu1 }
  0xf7   :  { %948 = vst [vmem:[%s1561_s2] sm:$0xff] %v498_v42  ;;  %980 = vst [vmem:[%s1561_s2 + $0x100] sm:$0xff] %v626_v43  ;;  %v1115_v44 = vpop.f32.mrb[2].mxu0  ;;  %v1147_v45 = vpop.f32.mrb[2].mxu1 }
  0xf8   :  { %951 = vst [vmem:[%s1561_s2 + $0x18] sm:$0xff] %v1115_v44  ;;  %983 = vst [vmem:[%s1561_s2 + $0x118] sm:$0xff] %v1147_v45  ;;  %v501_v46 = vpop.f32.mrb[3].mxu0  ;;  %v629_v47 = vpop.f32.mrb[3].mxu1 }
  0xf9   :  { %949 = vst [vmem:[%s1561_s2 + $0x8] sm:$0xff] %v501_v46  ;;  %981 = vst [vmem:[%s1561_s2 + $0x108] sm:$0xff] %v629_v47 }
  0xfd   :  { %v1118_v48 = vpop.f32.mrb[4].mxu0  ;;  %v1150_v49 = vpop.f32.mrb[4].mxu1 }
  0xfe   :  { %954 = vst [vmem:[%s1561_s2 + $0x30] sm:$0xff] %v1118_v48  ;;  %986 = vst [vmem:[%s1561_s2 + $0x130] sm:$0xff] %v1150_v49  ;;  %v514_v50 = vpop.f32.mrb[5].mxu0  ;;  %v642_v51 = vpop.f32.mrb[5].mxu1 }
  0xff   :  { %952 = vst [vmem:[%s1561_s2 + $0x20] sm:$0xff] %v514_v50  ;;  %984 = vst [vmem:[%s1561_s2 + $0x120] sm:$0xff] %v642_v51  ;;  %v1119_v52 = vpop.f32.mrb[6].mxu0  ;;  %v1151_v53 = vpop.f32.mrb[6].mxu1 }
 0x100   :  { %955 = vst [vmem:[%s1561_s2 + $0x38] sm:$0xff] %v1119_v52  ;;  %987 = vst [vmem:[%s1561_s2 + $0x138] sm:$0xff] %v1151_v53  ;;  %v517_v54 = vpop.f32.mrb[7].mxu0  ;;  %v645_v55 = vpop.f32.mrb[7].mxu1 }
 0x101   :  { %953 = vst [vmem:[%s1561_s2 + $0x28] sm:$0xff] %v517_v54  ;;  %985 = vst [vmem:[%s1561_s2 + $0x128] sm:$0xff] %v645_v55 }
 0x105   :  { %v1122_v56 = vpop.f32.mrb[8].mxu0  ;;  %v1154_v57 = vpop.f32.mrb[8].mxu1 }
 0x106   :  { %958 = vst [vmem:[%s1561_s2 + $0x50] sm:$0xff] %v1122_v56  ;;  %990 = vst [vmem:[%s1561_s2 + $0x150] sm:$0xff] %v1154_v57  ;;  %v530_v58 = vpop.f32.mrb[9].mxu0  ;;  %v658_v59 = vpop.f32.mrb[9].mxu1 }
 0x107   :  { %956 = vst [vmem:[%s1561_s2 + $0x40] sm:$0xff] %v530_v58  ;;  %988 = vst [vmem:[%s1561_s2 + $0x140] sm:$0xff] %v658_v59  ;;  %v1123_v60 = vpop.f32.mrb[10].mxu0  ;;  %v1155_v61 = vpop.f32.mrb[10].mxu1 }
 0x108   :  { %959 = vst [vmem:[%s1561_s2 + $0x58] sm:$0xff] %v1123_v60  ;;  %991 = vst [vmem:[%s1561_s2 + $0x158] sm:$0xff] %v1155_v61  ;;  %v533_v62 = vpop.f32.mrb[11].mxu0  ;;  %v661_v63 = vpop.f32.mrb[11].mxu1 }
 0x109   :  { %957 = vst [vmem:[%s1561_s2 + $0x48] sm:$0xff] %v533_v62  ;;  %989 = vst [vmem:[%s1561_s2 + $0x148] sm:$0xff] %v661_v63 }
 0x10d   :  { %v1126_v0 = vpop.f32.mrb[12].mxu0  ;;  %v1158_v1 = vpop.f32.mrb[12].mxu1 }
 0x10e   :  { %962 = vst [vmem:[%s1561_s2 + $0x70] sm:$0xff] %v1126_v0  ;;  %994 = vst [vmem:[%s1561_s2 + $0x170] sm:$0xff] %v1158_v1  ;;  %v546_v2 = vpop.f32.mrb[13].mxu0  ;;  %v674_v3 = vpop.f32.mrb[13].mxu1 }
 0x10f   :  { %960 = vst [vmem:[%s1561_s2 + $0x60] sm:$0xff] %v546_v2  ;;  %992 = vst [vmem:[%s1561_s2 + $0x160] sm:$0xff] %v674_v3  ;;  %v1127_v4 = vpop.f32.mrb[14].mxu0  ;;  %v1159_v5 = vpop.f32.mrb[14].mxu1 }
 0x110   :  { %963 = vst [vmem:[%s1561_s2 + $0x78] sm:$0xff] %v1127_v4  ;;  %995 = vst [vmem:[%s1561_s2 + $0x178] sm:$0xff] %v1159_v5  ;;  %v549_v6 = vpop.f32.mrb[15].mxu0  ;;  %v677_v7 = vpop.f32.mrb[15].mxu1 }
 0x111   :  { %961 = vst [vmem:[%s1561_s2 + $0x68] sm:$0xff] %v549_v6  ;;  %993 = vst [vmem:[%s1561_s2 + $0x168] sm:$0xff] %v677_v7 }
 0x115   :  { %v1130_v8 = vpop.f32.mrb[16].mxu0  ;;  %v1162_v9 = vpop.f32.mrb[16].mxu1 }
 0x116   :  { %966 = vst [vmem:[%s1561_s2 + $0x90] sm:$0xff] %v1130_v8  ;;  %998 = vst [vmem:[%s1561_s2 + $0x190] sm:$0xff] %v1162_v9  ;;  %v562_v10 = vpop.f32.mrb[17].mxu0  ;;  %v690_v11 = vpop.f32.mrb[17].mxu1 }
 0x117   :  { %964 = vst [vmem:[%s1561_s2 + $0x80] sm:$0xff] %v562_v10  ;;  %996 = vst [vmem:[%s1561_s2 + $0x180] sm:$0xff] %v690_v11  ;;  %v1131_v12 = vpop.f32.mrb[18].mxu0  ;;  %v1163_v13 = vpop.f32.mrb[18].mxu1 }
 0x118   :  { %967 = vst [vmem:[%s1561_s2 + $0x98] sm:$0xff] %v1131_v12  ;;  %999 = vst [vmem:[%s1561_s2 + $0x198] sm:$0xff] %v1163_v13  ;;  %v565_v14 = vpop.f32.mrb[19].mxu0  ;;  %v693_v15 = vpop.f32.mrb[19].mxu1 }
 0x119   :  { %965 = vst [vmem:[%s1561_s2 + $0x88] sm:$0xff] %v565_v14  ;;  %997 = vst [vmem:[%s1561_s2 + $0x188] sm:$0xff] %v693_v15 }
 0x11d   :  { %v1134_v16 = vpop.f32.mrb[20].mxu0  ;;  %v1166_v17 = vpop.f32.mrb[20].mxu1 }
 0x11e   :  { %970 = vst [vmem:[%s1561_s2 + $0xb0] sm:$0xff] %v1134_v16  ;;  %1002 = vst [vmem:[%s1561_s2 + $0x1b0] sm:$0xff] %v1166_v17  ;;  %v578_v18 = vpop.f32.mrb[21].mxu0  ;;  %v706_v19 = vpop.f32.mrb[21].mxu1 }
 0x11f   :  { %968 = vst [vmem:[%s1561_s2 + $0xa0] sm:$0xff] %v578_v18  ;;  %1000 = vst [vmem:[%s1561_s2 + $0x1a0] sm:$0xff] %v706_v19  ;;  %v1135_v20 = vpop.f32.mrb[22].mxu0  ;;  %v1167_v21 = vpop.f32.mrb[22].mxu1 }
 0x120   :  { %971 = vst [vmem:[%s1561_s2 + $0xb8] sm:$0xff] %v1135_v20  ;;  %1003 = vst [vmem:[%s1561_s2 + $0x1b8] sm:$0xff] %v1167_v21  ;;  %v581_v22 = vpop.f32.mrb[23].mxu0  ;;  %v709_v23 = vpop.f32.mrb[23].mxu1 }
 0x121   :  { %969 = vst [vmem:[%s1561_s2 + $0xa8] sm:$0xff] %v581_v22  ;;  %1001 = vst [vmem:[%s1561_s2 + $0x1a8] sm:$0xff] %v709_v23 }
 0x125   :  { %v1138_v24 = vpop.f32.mrb[24].mxu0  ;;  %v1170_v25 = vpop.f32.mrb[24].mxu1 }
 0x126   :  { %974 = vst [vmem:[%s1561_s2 + $0xd0] sm:$0xff] %v1138_v24  ;;  %1006 = vst [vmem:[%s1561_s2 + $0x1d0] sm:$0xff] %v1170_v25  ;;  %v594_v26 = vpop.f32.mrb[25].mxu0  ;;  %v722_v27 = vpop.f32.mrb[25].mxu1 }
 0x127   :  { %972 = vst [vmem:[%s1561_s2 + $0xc0] sm:$0xff] %v594_v26  ;;  %1004 = vst [vmem:[%s1561_s2 + $0x1c0] sm:$0xff] %v722_v27  ;;  %v1139_v28 = vpop.f32.mrb[26].mxu0  ;;  %v1171_v29 = vpop.f32.mrb[26].mxu1 }
 0x128   :  { %975 = vst [vmem:[%s1561_s2 + $0xd8] sm:$0xff] %v1139_v28  ;;  %1007 = vst [vmem:[%s1561_s2 + $0x1d8] sm:$0xff] %v1171_v29  ;;  %v597_v30 = vpop.f32.mrb[27].mxu0  ;;  %v725_v31 = vpop.f32.mrb[27].mxu1 }
 0x129   :  { %973 = vst [vmem:[%s1561_s2 + $0xc8] sm:$0xff] %v597_v30  ;;  %1005 = vst [vmem:[%s1561_s2 + $0x1c8] sm:$0xff] %v725_v31 }
 0x12d   :  { %v1142_v32 = vpop.f32.mrb[28].mxu0  ;;  %v1174_v33 = vpop.f32.mrb[28].mxu1 }
 0x12e   :  { %978 = vst [vmem:[%s1561_s2 + $0xf0] sm:$0xff] %v1142_v32  ;;  %1010 = vst [vmem:[%s1561_s2 + $0x1f0] sm:$0xff] %v1174_v33  ;;  %v610_v34 = vpop.f32.mrb[29].mxu0  ;;  %v738_v35 = vpop.f32.mrb[29].mxu1 }
 0x12f   :  { %976 = vst [vmem:[%s1561_s2 + $0xe0] sm:$0xff] %v610_v34  ;;  %1008 = vst [vmem:[%s1561_s2 + $0x1e0] sm:$0xff] %v738_v35  ;;  %v1143_v36 = vpop.f32.mrb[30].mxu0  ;;  %v1175_v37 = vpop.f32.mrb[30].mxu1 }
 0x130   :  { %979 = vst [vmem:[%s1561_s2 + $0xf8] sm:$0xff] %v1143_v36  ;;  %1011 = vst [vmem:[%s1561_s2 + $0x1f8] sm:$0xff] %v1175_v37  ;;  %v613_v38 = vpop.f32.mrb[31].mxu0  ;;  %v741_v39 = vpop.f32.mrb[31].mxu1 }
 0x131   :  { %977 = vst [vmem:[%s1561_s2 + $0xe8] sm:$0xff] %v613_v38  ;;  %1009 = vst [vmem:[%s1561_s2 + $0x1e8] sm:$0xff] %v741_v39 }

// kernel: _lambda_.40
= control target key start
LH: loop header
LB: loop body
LE: loop exit
PB: predicated region body
PF: predicated region fallthrough
CT: control target
= control target key end

     0   :  { %s551_s1 = inlined_call_operand.vmem [shape: bf16[128,128], index: 1, kind: input, shape index: {}]   ;;  %s552_s0 = inlined_call_operand.vmem [shape: bf16[128,128], index: 0, kind: input, shape index: {}]   ;;  %s553_s2 = inlined_call_operand.vmem [shape: f32[128,128], index: 2, kind: output, shape index: {}]  }
   0x1   :  { %v424_v0 = vld [vmem:[%s551_s1] sm:$0xff]   ;;  %v425_v1 = vld [vmem:[%s551_s1 + $0x8] sm:$0xff]   ;;  %v426_v2 = vld [vmem:[%s551_s1 + $0x10] sm:$0xff]  }
   0x2   :  { %376 = vmatprep.subr.bf16.mxu0 %v424_v0  ;;  %408 = vmatprep.subr.bf16.mxu1 %v424_v0  ;;  %v427_v3 = vld [vmem:[%s551_s1 + $0x18] sm:$0xff]   ;;  %v432_v4 = vld [vmem:[%s552_s0] sm:$0xff]   ;;  %v429_v7 = vld [vmem:[%s551_s1 + $0x28] sm:$0xff]  }
   0x3   :  { %377 = vmatpush3.bf16.msra.mxu0 %v424_v0  ;;  %416 = vmatpush3.bf16.msra.mxu1 %v424_v0  ;;  %v433_v5 = vld [vmem:[%s552_s0 + $0x20] sm:$0xff]   ;;  %v430_v8 = vld [vmem:[%s551_s1 + $0x30] sm:$0xff]   ;;  %v431_v9 = vld [vmem:[%s551_s1 + $0x38] sm:$0xff]  }
   0x4   :  { %378 = vmatprep.subr.bf16.mxu0 %v425_v1  ;;  %409 = vmatprep.subr.bf16.mxu1 %v425_v1  ;;  %v428_v6 = vld [vmem:[%s551_s1 + $0x20] sm:$0xff]   ;;  %v434_v10 = vld [vmem:[%s552_s0 + $0x8] sm:$0xff]   ;;  %v436_v12 = vld [vmem:[%s552_s0 + $0x10] sm:$0xff]  }
   0x5   :  { %392 = vmatprep.mubr.bf16.mxu0 %v432_v4  ;;  %400 = vmatprep.mubr.bf16.mxu1 %v433_v5  ;;  %v435_v11 = vld [vmem:[%s552_s0 + $0x28] sm:$0xff]   ;;  %v437_v13 = vld [vmem:[%s552_s0 + $0x30] sm:$0xff]   ;;  %v438_v14 = vld [vmem:[%s552_s0 + $0x18] sm:$0xff]  }
   0x6   :  { %v439_v15 = vld [vmem:[%s552_s0 + $0x38] sm:$0xff]  }
   0x7   :  { %379 = vmatpush3.bf16.msra.mxu0 %v425_v1  ;;  %417 = vmatpush3.bf16.msra.mxu1 %v425_v1 }
   0x8   :  { %380 = vmatprep.subr.bf16.mxu0 %v426_v2  ;;  %410 = vmatprep.subr.bf16.mxu1 %v426_v2 }
   0xb   :  { %381 = vmatpush3.bf16.msra.mxu0 %v426_v2  ;;  %418 = vmatpush3.bf16.msra.mxu1 %v426_v2 }
   0xc   :  { %382 = vmatprep.subr.bf16.mxu0 %v427_v3  ;;  %411 = vmatprep.subr.bf16.mxu1 %v427_v3 }
   0xf   :  { %383 = vmatpush3.bf16.msra.mxu0 %v427_v3  ;;  %419 = vmatpush3.bf16.msra.mxu1 %v427_v3 }
  0x10   :  { %384 = vmatprep.subr.bf16.mxu0 %v428_v6  ;;  %412 = vmatprep.subr.bf16.mxu1 %v428_v6 }
  0x13   :  { %385 = vmatpush3.bf16.msra.mxu0 %v428_v6  ;;  %420 = vmatpush3.bf16.msra.mxu1 %v428_v6 }
  0x14   :  { %386 = vmatprep.subr.bf16.mxu0 %v429_v7  ;;  %413 = vmatprep.subr.bf16.mxu1 %v429_v7 }
  0x17   :  { %387 = vmatpush3.bf16.msra.mxu0 %v429_v7  ;;  %421 = vmatpush3.bf16.msra.mxu1 %v429_v7 }
  0x18   :  { %388 = vmatprep.subr.bf16.mxu0 %v430_v8  ;;  %414 = vmatprep.subr.bf16.mxu1 %v430_v8 }
  0x1b   :  { %389 = vmatpush3.bf16.msra.mxu0 %v430_v8  ;;  %422 = vmatpush3.bf16.msra.mxu1 %v430_v8 }
  0x1c   :  { %390 = vmatprep.subr.bf16.mxu0 %v431_v9  ;;  %415 = vmatprep.subr.bf16.mxu1 %v431_v9 }
  0x1f   :  { %391 = vmatpush3.bf16.msra.mxu0 %v431_v9  ;;  %423 = vmatpush3.bf16.msra.mxu1 %v431_v9 }
  0x22   :  { %393 = vmatmul.mubr.bf16.vlgmr.msra.gmra.mrb[0].mxu0 %v434_v10  ;;  %401 = vmatmul.mubr.bf16.vlgmr.msra.gmra.mrb[0].mxu1 %v435_v11 }
  0x23   :  { %396 = vmatprep.mubr.bf16.mxu0 %v436_v12  ;;  %404 = vmatprep.mubr.bf16.mxu1 %v437_v13 }
  0x2a   :  { %397 = vmatmul.mubr.bf16.gmra.mrb[4].mxu0 %v438_v14  ;;  %405 = vmatmul.mubr.bf16.gmra.mrb[4].mxu1 %v439_v15 }
  0xf5   :  { %v394_v16 = vpop.f32.mrb[0].mxu0  ;;  %v402_v17 = vpop.f32.mrb[0].mxu1 }
  0xf6   :  { %326 = vst [vmem:[%s553_s2 + $0x10] sm:$0xff] %v394_v16  ;;  %334 = vst [vmem:[%s553_s2 + $0x50] sm:$0xff] %v402_v17  ;;  %v210_v18 = vpop.f32.mrb[1].mxu0  ;;  %v242_v19 = vpop.f32.mrb[1].mxu1 }
  0xf7   :  { %324 = vst [vmem:[%s553_s2] sm:$0xff] %v210_v18  ;;  %332 = vst [vmem:[%s553_s2 + $0x40] sm:$0xff] %v242_v19  ;;  %v395_v20 = vpop.f32.mrb[2].mxu0  ;;  %v403_v21 = vpop.f32.mrb[2].mxu1 }
  0xf8   :  { %327 = vst [vmem:[%s553_s2 + $0x18] sm:$0xff] %v395_v20  ;;  %335 = vst [vmem:[%s553_s2 + $0x58] sm:$0xff] %v403_v21  ;;  %v213_v22 = vpop.f32.mrb[3].mxu0  ;;  %v245_v23 = vpop.f32.mrb[3].mxu1 }
  0xf9   :  { %325 = vst [vmem:[%s553_s2 + $0x8] sm:$0xff] %v213_v22  ;;  %333 = vst [vmem:[%s553_s2 + $0x48] sm:$0xff] %v245_v23 }
  0xfd   :  { %v398_v24 = vpop.f32.mrb[4].mxu0  ;;  %v406_v25 = vpop.f32.mrb[4].mxu1 }
  0xfe   :  { %330 = vst [vmem:[%s553_s2 + $0x30] sm:$0xff] %v398_v24  ;;  %338 = vst [vmem:[%s553_s2 + $0x70] sm:$0xff] %v406_v25  ;;  %v226_v26 = vpop.f32.mrb[5].mxu0  ;;  %v258_v27 = vpop.f32.mrb[5].mxu1 }
  0xff   :  { %328 = vst [vmem:[%s553_s2 + $0x20] sm:$0xff] %v226_v26  ;;  %336 = vst [vmem:[%s553_s2 + $0x60] sm:$0xff] %v258_v27  ;;  %v399_v28 = vpop.f32.mrb[6].mxu0  ;;  %v407_v29 = vpop.f32.mrb[6].mxu1 }
 0x100   :  { %331 = vst [vmem:[%s553_s2 + $0x38] sm:$0xff] %v399_v28  ;;  %339 = vst [vmem:[%s553_s2 + $0x78] sm:$0xff] %v407_v29  ;;  %v229_v30 = vpop.f32.mrb[7].mxu0  ;;  %v261_v31 = vpop.f32.mrb[7].mxu1 }
 0x101   :  { %329 = vst [vmem:[%s553_s2 + $0x28] sm:$0xff] %v229_v30  ;;  %337 = vst [vmem:[%s553_s2 + $0x68] sm:$0xff] %v261_v31 }

// kernel: _lambda_.41
= control target key start
LH: loop header
LB: loop body
LE: loop exit
PB: predicated region body
PF: predicated region fallthrough
CT: control target
= control target key end

     0   :  { %vm14_vm0 = vcmask 122880   ;;  %vm34_vm1 = vcmask 130048   ;;  %v140_v0 = vmov 0.0   ;;  %s258_s0 = inlined_call_operand.vmem [shape: f32[128,16], index: 0, kind: input, shape index: {}]   ;;  %s259_s1 = inlined_call_operand.vmem [shape: f32[1,16], index: 1, kind: output, shape index: {0}]   ;;  %s260_s2 = inlined_call_operand.vmem [shape: f32[1,16], index: 2, kind: output, shape index: {1}]  }
   0x1   :  { %15 = vst.msk [vmem:[%s259_s1] sm:$0x1] %vm14_vm0, %v140_v0  ;;  %v17_v1 = vld [vmem:[%s258_s0] sm:$0xff]  ;;  %v18_v2 = vld [vmem:[%s258_s0 + $0x8] sm:$0xff]  ;;  %v19_v3 = vld [vmem:[%s258_s0 + $0x10] sm:$0xff] }
   0x2   :  { %16 = vst.msk [vmem:[%s260_s2] sm:$0x1] %vm14_vm0, %v140_v0  ;;  %v35_v4 = vsel %vm34_vm1, %v17_v1, 0.0  ;;  %v36_v5 = vsel %vm34_vm1, %v18_v2, 0.0  ;;  %v38_v6 = vsel %vm34_vm1, %v19_v3, 0.0  ;;  %v20_v7 = vld [vmem:[%s258_s0 + $0x18] sm:$0xff]  ;;  %v76_v15 = vmul.f32 %v17_v1, %v17_v1 }
   0x3   :  { %v37_v8 = vadd.f32 %v36_v5, %v35_v4  ;;  %v40_v9 = vsel %vm34_vm1, %v20_v7, 0.0  ;;  %v21_v10 = vld [vmem:[%s258_s0 + $0x20] sm:$0xff]  ;;  %v22_v13 = vld [vmem:[%s258_s0 + $0x28] sm:$0xff]  ;;  %v77_v16 = vmul.f32 %v18_v2, %v18_v2  ;;  %v78_v17 = vmul.f32 %v19_v3, %v19_v3  ;;  %v23_v19 = vld [vmem:[%s258_s0 + $0x30] sm:$0xff] }
   0x4   :  { %v42_v12 = vsel %vm34_vm1, %v21_v10, 0.0  ;;  %v44_v18 = vsel %vm34_vm1, %v22_v13, 0.0  ;;  %v79_v21 = vmul.f32 %v20_v7, %v20_v7  ;;  %v46_v22 = vsel %vm34_vm1, %v23_v19, 0.0  ;;  %v24_v24 = vld [vmem:[%s258_s0 + $0x38] sm:$0xff]  ;;  %v25_v31 = vld [vmem:[%s258_s0 + $0x40] sm:$0xff]  ;;  %v26_v37 = vld [vmem:[%s258_s0 + $0x48] sm:$0xff] }
   0x5   :  { %v39_v11 = vadd.f32 %v38_v6, %v37_v8  ;;  %v80_v23 = vmul.f32 %v21_v10, %v21_v10  ;;  %v92_v26 = vsel %vm34_vm1, %v76_v15, 0.0  ;;  %v93_v27 = vsel %vm34_vm1, %v77_v16, 0.0  ;;  %v27_v43 = vld [vmem:[%s258_s0 + $0x50] sm:$0xff]  ;;  %v28_v49 = vld [vmem:[%s258_s0 + $0x58] sm:$0xff]  ;;  %v29_v55 = vld [vmem:[%s258_s0 + $0x60] sm:$0xff] }
   0x6   :  { %v95_v28 = vsel %vm34_vm1, %v78_v17, 0.0  ;;  %v48_v29 = vsel %vm34_vm1, %v24_v24, 0.0  ;;  %v94_v30 = vadd.f32 %v93_v27, %v92_v26  ;;  %v81_v33 = vmul.f32 %v22_v13, %v22_v13  ;;  %v30_v61 = vld [vmem:[%s258_s0 + $0x68] sm:$0xff]  ;;  %v31_v3 = vld [vmem:[%s258_s0 + $0x70] sm:$0xff] }
   0x7   :  { %v41_v14 = vadd.f32 %v40_v9, %v39_v11  ;;  %v97_v34 = vsel %vm34_vm1, %v79_v21, 0.0  ;;  %v50_v35 = vsel %vm34_vm1, %v25_v31, 0.0  ;;  %v82_v39 = vmul.f32 %v23_v19, %v23_v19  ;;  %v32_v9 = vld [vmem:[%s258_s0 + $0x78] sm:$0xff] }
   0x8   :  { %v96_v36 = vadd.f32 %v95_v28, %v94_v30  ;;  %v99_v40 = vsel %vm34_vm1, %v80_v23, 0.0  ;;  %v52_v41 = vsel %vm34_vm1, %v26_v37, 0.0  ;;  %v83_v45 = vmul.f32 %v24_v24, %v24_v24 }
   0x9   :  { %v43_v20 = vadd.f32 %v42_v12, %v41_v14  ;;  %v101_v46 = vsel %vm34_vm1, %v81_v33, 0.0  ;;  %v54_v47 = vsel %vm34_vm1, %v27_v43, 0.0  ;;  %v84_v51 = vmul.f32 %v25_v31, %v25_v31 }
   0xa   :  { %v98_v42 = vadd.f32 %v97_v34, %v96_v36  ;;  %v103_v52 = vsel %vm34_vm1, %v82_v39, 0.0  ;;  %v56_v53 = vsel %vm34_vm1, %v28_v49, 0.0  ;;  %v85_v57 = vmul.f32 %v26_v37, %v26_v37  ;;  %v33_v36 = vld [vmem:[%s259_s1] sm:$0x1] }
   0xb   :  { %v45_v25 = vadd.f32 %v44_v18, %v43_v20  ;;  %v105_v58 = vsel %vm34_vm1, %v83_v45, 0.0  ;;  %v58_v59 = vsel %vm34_vm1, %v29_v55, 0.0  ;;  %v86_v63 = vmul.f32 %v27_v43, %v27_v43 }
   0xc   :  { %v100_v48 = vadd.f32 %v99_v40, %v98_v42  ;;  %v107_v0 = vsel %vm34_vm1, %v84_v51, 0.0  ;;  %v60_v1 = vsel %vm34_vm1, %v30_v61, 0.0  ;;  %v87_v5 = vmul.f32 %v28_v49, %v28_v49 }
   0xd   :  { %v47_v32 = vadd.f32 %v46_v22, %v45_v25  ;;  %v109_v6 = vsel %vm34_vm1, %v85_v57, 0.0  ;;  %v62_v7 = vsel %vm34_vm1, %v31_v3, 0.0  ;;  %v88_v11 = vmul.f32 %v29_v55, %v29_v55 }
   0xe   :  { %v102_v54 = vadd.f32 %v101_v46, %v100_v48  ;;  %v111_v12 = vsel %vm34_vm1, %v86_v63, 0.0  ;;  %v64_v13 = vsel %vm34_vm1, %v32_v9, 0.0  ;;  %v89_v16 = vmul.f32 %v30_v61, %v30_v61 }
   0xf   :  { %v49_v38 = vadd.f32 %v48_v29, %v47_v32  ;;  %v113_v17 = vsel %vm34_vm1, %v87_v5, 0.0  ;;  %v90_v20 = vmul.f32 %v31_v3, %v31_v3  ;;  %v115_v21 = vsel %vm34_vm1, %v88_v11, 0.0 }
  0x10   :  { %v104_v60 = vadd.f32 %v103_v52, %v102_v54  ;;  %v91_v24 = vmul.f32 %v32_v9, %v32_v9  ;;  %v117_v25 = vsel %vm34_vm1, %v89_v16, 0.0 }
  0x11   :  { %v51_v44 = vadd.f32 %v50_v35, %v49_v38  ;;  %v119_v28 = vsel %vm34_vm1, %v90_v20, 0.0 }
  0x12   :  { %v106_v2 = vadd.f32 %v105_v58, %v104_v60  ;;  %v121_v31 = vsel %vm34_vm1, %v91_v24, 0.0 }
  0x13   :  { %v53_v50 = vadd.f32 %v52_v41, %v51_v44  ;;  %v75_v44 = vld [vmem:[%s260_s2] sm:$0x1] }
  0x14   :  { %v108_v8 = vadd.f32 %v107_v0, %v106_v2 }
  0x15   :  { %v55_v56 = vadd.f32 %v54_v47, %v53_v50 }
  0x16   :  { %v110_v14 = vadd.f32 %v109_v6, %v108_v8 }
  0x17   :  { %v57_v62 = vadd.f32 %v56_v53, %v55_v56 }
  0x18   :  { %v112_v18 = vadd.f32 %v111_v12, %v110_v14 }
  0x19   :  { %v59_v4 = vadd.f32 %v58_v59, %v57_v62 }
  0x1a   :  { %v114_v22 = vadd.f32 %v113_v17, %v112_v18 }
  0x1b   :  { %v61_v10 = vadd.f32 %v60_v1, %v59_v4 }
  0x1c   :  { %v116_v26 = vadd.f32 %v115_v21, %v114_v22 }
  0x1d   :  { %v63_v15 = vadd.f32 %v62_v7, %v61_v10 }
  0x1e   :  { %v118_v29 = vadd.f32 %v117_v25, %v116_v26 }
  0x1f   :  { %v65_v19 = vadd.f32 %v64_v13, %v63_v15 }
  0x20   :  { %v120_v32 = vadd.f32 %v119_v28, %v118_v29 }
  0x21   :  { %v66_v23 = vrot.slane %v65_v19, 4 }
  0x22   :  { %v122_v34 = vadd.f32 %v121_v31, %v120_v32 }
  0x23   :  { %v67_v27 = vadd.f32 %v66_v23, %v65_v19 }
  0x24   :  { %v123_v37 = vrot.slane %v122_v34, 4 }
  0x25   :  { %v68_v30 = vrot.slane %v67_v27, 2 }
  0x26   :  { %v124_v39 = vadd.f32 %v123_v37, %v122_v34 }
  0x27   :  { %v69_v33 = vadd.f32 %v68_v30, %v67_v27 }
  0x28   :  { %v125_v41 = vrot.slane %v124_v39, 2 }
  0x29   :  { %v70_v35 = vrot.slane %v69_v33, 1 }
  0x2a   :  { %v126_v42 = vadd.f32 %v125_v41, %v124_v39 }
  0x2b   :  { %v71_v38 = vadd.f32 %v70_v35, %v69_v33 }
  0x2c   :  { %v127_v43 = vrot.slane %v126_v42, 1 }
  0x2d   :  { %v72_v40 = vadd.f32 %v71_v38, %v33_v36 }
  0x2e   :  { %v128_v45 = vadd.f32 %v127_v43, %v126_v42 }
  0x2f   :  { %74 = vst.msk [vmem:[%s259_s1] sm:$0x1] %vm14_vm0, %v72_v40 }
  0x30   :  { %v129_v46 = vadd.f32 %v128_v45, %v75_v44 }
  0x32   :  { %130 = vst.msk [vmem:[%s260_s2] sm:$0x1] %vm14_vm0, %v129_v46 }

// kernel: _lambda_.42
= control target key start
LH: loop header
LB: loop body
LE: loop exit
PB: predicated region body
PF: predicated region fallthrough
CT: control target
= control target key end

     0   :  { %vm76_vm0 = vcmask 130048   ;;  %s237_s0 = inlined_call_operand.vmem [shape: f32[128,16], index: 0, kind: input, shape index: {}]   ;;  %s238_s1 = inlined_call_operand.vmem [shape: f32[1,16], index: 1, kind: input, shape index: {}]   ;;  %s239_s2 = inlined_call_operand.vmem [shape: f32[1,16], index: 2, kind: input, shape index: {}]   ;;  %s240_s3 = inlined_call_operand.vmem [shape: f32[128,16], index: 3, kind: output, shape index: {}]  }
   0x1   :  { %v14_v0 = vld [vmem:[%s237_s0] sm:$0xff]  ;;  %v15_v4 = vld [vmem:[%s237_s0 + $0x8] sm:$0xff]  ;;  %v16_v5 = vld [vmem:[%s237_s0 + $0x10] sm:$0xff] }
   0x2   :  { %v97_v1 = vld [vmem:[%s238_s1] ss:$0 sm:$0xff]  ;;  %v17_v6 = vld [vmem:[%s237_s0 + $0x18] sm:$0xff]  ;;  %v19_v11 = vld [vmem:[%s237_s0 + $0x28] sm:$0xff] }
   0x3   :  { %v98_v2 = vld [vmem:[%s239_s2] ss:$0 sm:$0xff]  ;;  %v37_v3 = vmul.f32 %v97_v1, %v14_v0  ;;  %v38_v7 = vmul.f32 %v97_v1, %v15_v4  ;;  %v39_v8 = vmul.f32 %v97_v1, %v16_v5  ;;  %v40_v9 = vmul.f32 %v97_v1, %v17_v6  ;;  %v20_v12 = vld [vmem:[%s237_s0 + $0x30] sm:$0xff]  ;;  %v21_v17 = vld [vmem:[%s237_s0 + $0x38] sm:$0xff] }
   0x4   :  { %v18_v10 = vld [vmem:[%s237_s0 + $0x20] sm:$0xff]  ;;  %v42_v15 = vmul.f32 %v97_v1, %v19_v11  ;;  %v43_v16 = vmul.f32 %v97_v1, %v20_v12  ;;  %v23_v19 = vld [vmem:[%s237_s0 + $0x48] sm:$0xff]  ;;  %v44_v23 = vmul.f32 %v97_v1, %v21_v17  ;;  %v24_v24 = vld [vmem:[%s237_s0 + $0x50] sm:$0xff] }
   0x5   :  { %v60_v13 = vadd.f32 %v98_v2, %v37_v3  ;;  %v41_v14 = vmul.f32 %v97_v1, %v18_v10  ;;  %v22_v18 = vld [vmem:[%s237_s0 + $0x40] sm:$0xff]  ;;  %v61_v20 = vadd.f32 %v98_v2, %v38_v7  ;;  %v62_v21 = vadd.f32 %v98_v2, %v39_v8  ;;  %v25_v25 = vld [vmem:[%s237_s0 + $0x58] sm:$0xff]  ;;  %v27_v31 = vld [vmem:[%s237_s0 + $0x68] sm:$0xff] }
   0x6   :  { %v63_v22 = vadd.f32 %v98_v2, %v40_v9  ;;  %v26_v26 = vld [vmem:[%s237_s0 + $0x60] sm:$0xff]  ;;  %v65_v28 = vadd.f32 %v98_v2, %v42_v15  ;;  %v66_v29 = vadd.f32 %v98_v2, %v43_v16  ;;  %v45_v30 = vmul.f32 %v97_v1, %v22_v18  ;;  %v28_v32 = vld [vmem:[%s237_s0 + $0x70] sm:$0xff]  ;;  %v29_v33 = vld [vmem:[%s237_s0 + $0x78] sm:$0xff] }
   0x7   :  { %77 = vst.msk [vmem:[%s240_s3] sm:$0xff] %vm76_vm0, %v60_v13  ;;  %v64_v27 = vadd.f32 %v98_v2, %v41_v14  ;;  %78 = vst.msk [vmem:[%s240_s3 + $0x8] sm:$0xff] %vm76_vm0, %v61_v20  ;;  %v67_v34 = vadd.f32 %v98_v2, %v44_v23  ;;  %v46_v35 = vmul.f32 %v97_v1, %v23_v19 }
   0x8   :  { %79 = vst.msk [vmem:[%s240_s3 + $0x10] sm:$0xff] %vm76_vm0, %v62_v21  ;;  %80 = vst.msk [vmem:[%s240_s3 + $0x18] sm:$0xff] %vm76_vm0, %v63_v22  ;;  %v47_v36 = vmul.f32 %v97_v1, %v24_v24  ;;  %v48_v37 = vmul.f32 %v97_v1, %v25_v25  ;;  %v68_v38 = vadd.f32 %v98_v2, %v45_v30 }
   0x9   :  { %81 = vst.msk [vmem:[%s240_s3 + $0x20] sm:$0xff] %vm76_vm0, %v64_v27  ;;  %82 = vst.msk [vmem:[%s240_s3 + $0x28] sm:$0xff] %vm76_vm0, %v65_v28  ;;  %v49_v39 = vmul.f32 %v97_v1, %v26_v26  ;;  %v50_v40 = vmul.f32 %v97_v1, %v27_v31  ;;  %v51_v41 = vmul.f32 %v97_v1, %v28_v32 }
   0xa   :  { %83 = vst.msk [vmem:[%s240_s3 + $0x30] sm:$0xff] %vm76_vm0, %v66_v29  ;;  %84 = vst.msk [vmem:[%s240_s3 + $0x38] sm:$0xff] %vm76_vm0, %v67_v34  ;;  %v69_v42 = vadd.f32 %v98_v2, %v46_v35  ;;  %v70_v43 = vadd.f32 %v98_v2, %v47_v36  ;;  %v71_v44 = vadd.f32 %v98_v2, %v48_v37 }
   0xb   :  { %v52_v45 = vmul.f32 %v97_v1, %v29_v33  ;;  %85 = vst.msk [vmem:[%s240_s3 + $0x40] sm:$0xff] %vm76_vm0, %v68_v38  ;;  %v72_v46 = vadd.f32 %v98_v2, %v49_v39  ;;  %v73_v47 = vadd.f32 %v98_v2, %v50_v40  ;;  %v74_v48 = vadd.f32 %v98_v2, %v51_v41 }
   0xc   :  { %86 = vst.msk [vmem:[%s240_s3 + $0x48] sm:$0xff] %vm76_vm0, %v69_v42  ;;  %87 = vst.msk [vmem:[%s240_s3 + $0x50] sm:$0xff] %vm76_vm0, %v70_v43 }
   0xd   :  { %88 = vst.msk [vmem:[%s240_s3 + $0x58] sm:$0xff] %vm76_vm0, %v71_v44  ;;  %v75_v49 = vadd.f32 %v98_v2, %v52_v45  ;;  %89 = vst.msk [vmem:[%s240_s3 + $0x60] sm:$0xff] %vm76_vm0, %v72_v46 }
   0xe   :  { %90 = vst.msk [vmem:[%s240_s3 + $0x68] sm:$0xff] %vm76_vm0, %v73_v47  ;;  %91 = vst.msk [vmem:[%s240_s3 + $0x70] sm:$0xff] %vm76_vm0, %v74_v48 }
   0xf   :  { %92 = vst.msk [vmem:[%s240_s3 + $0x78] sm:$0xff] %vm76_vm0, %v75_v49 }

// kernel: _lambda_.43
= control target key start
LH: loop header
LB: loop body
LE: loop exit
PB: predicated region body
PF: predicated region fallthrough
CT: control target
= control target key end

     0   :  { %s421_s1 = inlined_call_operand.vmem [shape: bf16[256,128], index: 1, kind: input, shape index: {}]   ;;  %s422_s0 = inlined_call_operand.vmem [shape: bf16[32,256], index: 0, kind: input, shape index: {}]   ;;  %s423_s2 = inlined_call_operand.vmem [shape: f32[32,128], index: 2, kind: output, shape index: {}]  }
   0x1   :  { %v312_v0 = vld [vmem:[%s421_s1 + $0x40] sm:$0xff]   ;;  %v314_v2 = vld [vmem:[%s421_s1 + $0x48] sm:$0xff]   ;;  %v316_v4 = vld [vmem:[%s421_s1 + $0x50] sm:$0xff]  }
   0x2   :  { %v313_v1 = vld [vmem:[%s421_s1] sm:$0xff]   ;;  %268 = vmatprep.subr.bf16.mxu0 %v312_v0  ;;  %296 = vmatprep.subr.bf16.mxu1 %v312_v0  ;;  %v315_v3 = vld [vmem:[%s421_s1 + $0x8] sm:$0xff]   ;;  %v317_v5 = vld [vmem:[%s421_s1 + $0x10] sm:$0xff]  }
   0x3   :  { %269 = vmatpush3.bf16.msra.mxu0 %v313_v1  ;;  %304 = vmatpush3.bf16.msra.mxu1 %v313_v1  ;;  %v318_v6 = vld [vmem:[%s421_s1 + $0x58] sm:$0xff]   ;;  %v320_v8 = vld [vmem:[%s421_s1 + $0x60] sm:$0xff]   ;;  %v322_v10 = vld [vmem:[%s421_s1 + $0x68] sm:$0xff]  }
   0x4   :  { %270 = vmatprep.subr.bf16.mxu0 %v314_v2  ;;  %297 = vmatprep.subr.bf16.mxu1 %v314_v2  ;;  %v319_v7 = vld [vmem:[%s421_s1 + $0x18] sm:$0xff]   ;;  %v321_v9 = vld [vmem:[%s421_s1 + $0x20] sm:$0xff]   ;;  %v323_v13 = vld [vmem:[%s421_s1 + $0x28] sm:$0xff]  }
   0x5   :  { %v330_v11 = vld [vmem:[%s422_s0 + $0x4] ss:$8 sps:$4 sm:$0xff]   ;;  %v333_v12 = vld [vmem:[%s422_s0 + $0x14] ss:$8 sps:$4 sm:$0xff]   ;;  %v328_v18 = vld [vmem:[%s422_s0] ss:$8 sps:$4 sm:$0xff]  }
   0x6   :  { %v324_v14 = vld [vmem:[%s421_s1 + $0x70] sm:$0xff]   ;;  %208 = vmatprep.mubr.bf16.mxu0 %v330_v11  ;;  %216 = vmatprep.mubr.bf16.mxu1 %v333_v12  ;;  %v326_v16 = vld [vmem:[%s421_s1 + $0x78] sm:$0xff]  }
   0x7   :  { %271 = vmatpush3.bf16.msra.mxu0 %v315_v3  ;;  %305 = vmatpush3.bf16.msra.mxu1 %v315_v3  ;;  %v325_v15 = vld [vmem:[%s421_s1 + $0x30] sm:$0xff]   ;;  %v327_v17 = vld [vmem:[%s421_s1 + $0x38] sm:$0xff]  }
   0x8   :  { %272 = vmatprep.subr.bf16.mxu0 %v316_v4  ;;  %298 = vmatprep.subr.bf16.mxu1 %v316_v4  ;;  %v331_v19 = vld [vmem:[%s422_s0 + $0x10] ss:$8 sps:$4 sm:$0xff]  }
   0xb   :  { %273 = vmatpush3.bf16.msra.mxu0 %v317_v5  ;;  %306 = vmatpush3.bf16.msra.mxu1 %v317_v5 }
   0xc   :  { %274 = vmatprep.subr.bf16.mxu0 %v318_v6  ;;  %299 = vmatprep.subr.bf16.mxu1 %v318_v6 }
   0xf   :  { %275 = vmatpush3.bf16.msra.mxu0 %v319_v7  ;;  %307 = vmatpush3.bf16.msra.mxu1 %v319_v7 }
  0x10   :  { %276 = vmatprep.subr.bf16.mxu0 %v320_v8  ;;  %300 = vmatprep.subr.bf16.mxu1 %v320_v8 }
  0x13   :  { %277 = vmatpush3.bf16.msra.mxu0 %v321_v9  ;;  %308 = vmatpush3.bf16.msra.mxu1 %v321_v9 }
  0x14   :  { %278 = vmatprep.subr.bf16.mxu0 %v322_v10  ;;  %301 = vmatprep.subr.bf16.mxu1 %v322_v10 }
  0x17   :  { %279 = vmatpush3.bf16.msra.mxu0 %v323_v13  ;;  %309 = vmatpush3.bf16.msra.mxu1 %v323_v13 }
  0x18   :  { %280 = vmatprep.subr.bf16.mxu0 %v324_v14  ;;  %302 = vmatprep.subr.bf16.mxu1 %v324_v14 }
  0x1b   :  { %281 = vmatpush3.bf16.msra.mxu0 %v325_v15  ;;  %310 = vmatpush3.bf16.msra.mxu1 %v325_v15 }
  0x1c   :  { %282 = vmatprep.subr.bf16.mxu0 %v326_v16  ;;  %303 = vmatprep.subr.bf16.mxu1 %v326_v16 }
  0x1f   :  { %283 = vmatpush3.bf16.msra.mxu0 %v327_v17  ;;  %311 = vmatpush3.bf16.msra.mxu1 %v327_v17 }
  0x22   :  { %209 = vmatmul.mubr.bf16.vlgmr.msra.gmra.mrb[0].mxu0 %v328_v18  ;;  %217 = vmatmul.mubr.bf16.vlgmr.msra.gmra.mrb[0].mxu1 %v331_v19 }
  0xf5   :  { %v284_v20 = vpop.f32.mrb[0].mxu0  ;;  %v290_v21 = vpop.f32.mrb[0].mxu1 }
  0xf6   :  { %v285_v22 = vpop.f32.mrb[1].mxu0  ;;  %v291_v23 = vpop.f32.mrb[1].mxu1 }
  0xf7   :  { %v286_v24 = vadd.f32 %v285_v22, %v284_v20  ;;  %v292_v25 = vadd.f32 %v291_v23, %v290_v21  ;;  %v287_v26 = vpop.f32.mrb[2].mxu0  ;;  %v293_v27 = vpop.f32.mrb[2].mxu1 }
  0xf8   :  { %v288_v28 = vpop.f32.mrb[3].mxu0  ;;  %v294_v29 = vpop.f32.mrb[3].mxu1 }
  0xf9   :  { %240 = vst [vmem:[%s423_s2] sm:$0xff] %v286_v24  ;;  %242 = vst [vmem:[%s423_s2 + $0x10] sm:$0xff] %v292_v25  ;;  %v289_v30 = vadd.f32 %v288_v28, %v287_v26  ;;  %v295_v31 = vadd.f32 %v294_v29, %v293_v27 }
  0xfb   :  { %241 = vst [vmem:[%s423_s2 + $0x8] sm:$0xff] %v289_v30  ;;  %243 = vst [vmem:[%s423_s2 + $0x18] sm:$0xff] %v295_v31 }

// kernel: _lambda_.44
= control target key start
LH: loop header
LB: loop body
LE: loop exit
PB: predicated region body
PF: predicated region fallthrough
CT: control target
= control target key end

     0   :  { %vm14_vm0 = vcmask 253952   ;;  %vm22_vm1 = vcmask 261120   ;;  %v68_v0 = vmov 0.0   ;;  %s126_s0 = inlined_call_operand.vmem [shape: f32[32,32], index: 0, kind: input, shape index: {}]   ;;  %s127_s1 = inlined_call_operand.vmem [shape: f32[1,32], index: 1, kind: output, shape index: {0}]   ;;  %s128_s2 = inlined_call_operand.vmem [shape: f32[1,32], index: 2, kind: output, shape index: {1}]  }
   0x1   :  { %15 = vst.msk [vmem:[%s127_s1] sm:$0x1] %vm14_vm0, %v68_v0  ;;  %v17_v1 = vld [vmem:[%s126_s0] sm:$0xff]  ;;  %v18_v2 = vld [vmem:[%s126_s0 + $0x8] sm:$0xff]  ;;  %v19_v3 = vld [vmem:[%s126_s0 + $0x10] sm:$0xff] }
   0x2   :  { %16 = vst.msk [vmem:[%s128_s2] sm:$0x1] %vm14_vm0, %v68_v0  ;;  %v20_v4 = vld [vmem:[%s126_s0 + $0x18] sm:$0xff]  ;;  %v23_v5 = vsel %vm22_vm1, %v17_v1, 0.0  ;;  %v24_v6 = vsel %vm22_vm1, %v18_v2, 0.0  ;;  %v26_v7 = vsel %vm22_vm1, %v19_v3, 0.0  ;;  %v40_v8 = vmul.f32 %v17_v1, %v17_v1 }
   0x3   :  { %v25_v9 = vadd.f32 %v24_v6, %v23_v5  ;;  %v41_v10 = vmul.f32 %v18_v2, %v18_v2  ;;  %v42_v11 = vmul.f32 %v19_v3, %v19_v3  ;;  %v28_v12 = vsel %vm22_vm1, %v20_v4, 0.0 }
   0x4   :  { %v43_v13 = vmul.f32 %v20_v4, %v20_v4  ;;  %v44_v14 = vsel %vm22_vm1, %v40_v8, 0.0 }
   0x5   :  { %v27_v15 = vadd.f32 %v26_v7, %v25_v9  ;;  %v45_v16 = vsel %vm22_vm1, %v41_v10, 0.0  ;;  %v47_v17 = vsel %vm22_vm1, %v42_v11, 0.0 }
   0x6   :  { %v46_v18 = vadd.f32 %v45_v16, %v44_v14  ;;  %v49_v20 = vsel %vm22_vm1, %v43_v13, 0.0 }
   0x7   :  { %v29_v19 = vadd.f32 %v28_v12, %v27_v15 }
   0x8   :  { %v48_v21 = vadd.f32 %v47_v17, %v46_v18  ;;  %v21_v31 = vld [vmem:[%s127_s1] sm:$0x1] }
   0x9   :  { %v30_v22 = vrot.slane %v29_v19, 4  ;;  %v39_v36 = vld [vmem:[%s128_s2] sm:$0x1] }
   0xa   :  { %v50_v23 = vadd.f32 %v49_v20, %v48_v21 }
   0xb   :  { %v31_v24 = vadd.f32 %v30_v22, %v29_v19 }
   0xc   :  { %v51_v25 = vrot.slane %v50_v23, 4 }
   0xd   :  { %v32_v26 = vrot.slane %v31_v24, 2 }
   0xe   :  { %v52_v27 = vadd.f32 %v51_v25, %v50_v23 }
   0xf   :  { %v33_v28 = vadd.f32 %v32_v26, %v31_v24 }
  0x10   :  { %v53_v29 = vrot.slane %v52_v27, 2 }
  0x11   :  { %v34_v30 = vrot.slane %v33_v28, 1 }
  0x12   :  { %v54_v32 = vadd.f32 %v53_v29, %v52_v27 }
  0x13   :  { %v35_v33 = vadd.f32 %v34_v30, %v33_v28 }
  0x14   :  { %v55_v34 = vrot.slane %v54_v32, 1 }
  0x15   :  { %v36_v35 = vadd.f32 %v35_v33, %v21_v31 }
  0x16   :  { %v56_v37 = vadd.f32 %v55_v34, %v54_v32 }
  0x17   :  { %38 = vst.msk [vmem:[%s127_s1] sm:$0x1] %vm14_vm0, %v36_v35 }
  0x18   :  { %v57_v38 = vadd.f32 %v56_v37, %v39_v36 }
  0x1a   :  { %58 = vst.msk [vmem:[%s128_s2] sm:$0x1] %vm14_vm0, %v57_v38 }

// kernel: _lambda_.45
= control target key start
LH: loop header
LB: loop body
LE: loop exit
PB: predicated region body
PF: predicated region fallthrough
CT: control target
= control target key end

     0   :  { %vm40_vm0 = vcmask 261120   ;;  %s101_s0 = inlined_call_operand.vmem [shape: f32[32,32], index: 0, kind: input, shape index: {}]   ;;  %s102_s1 = inlined_call_operand.vmem [shape: f32[1,32], index: 1, kind: input, shape index: {}]   ;;  %s103_s2 = inlined_call_operand.vmem [shape: f32[1,32], index: 2, kind: input, shape index: {}]   ;;  %s104_s3 = inlined_call_operand.vmem [shape: f32[32,32], index: 3, kind: output, shape index: {}]  }
   0x1   :  { %v14_v0 = vld [vmem:[%s101_s0] sm:$0xff]  ;;  %v15_v4 = vld [vmem:[%s101_s0 + $0x8] sm:$0xff]  ;;  %v16_v5 = vld [vmem:[%s101_s0 + $0x10] sm:$0xff] }
   0x2   :  { %v49_v1 = vld [vmem:[%s102_s1] ss:$0 sm:$0xff]  ;;  %v17_v6 = vld [vmem:[%s101_s0 + $0x18] sm:$0xff] }
   0x3   :  { %v50_v2 = vld [vmem:[%s103_s2] ss:$0 sm:$0xff]  ;;  %v25_v3 = vmul.f32 %v49_v1, %v14_v0  ;;  %v26_v7 = vmul.f32 %v49_v1, %v15_v4  ;;  %v27_v8 = vmul.f32 %v49_v1, %v16_v5  ;;  %v28_v9 = vmul.f32 %v49_v1, %v17_v6 }
   0x5   :  { %v36_v10 = vadd.f32 %v50_v2, %v25_v3  ;;  %v37_v11 = vadd.f32 %v50_v2, %v26_v7  ;;  %v38_v12 = vadd.f32 %v50_v2, %v27_v8  ;;  %v39_v13 = vadd.f32 %v50_v2, %v28_v9 }
   0x7   :  { %41 = vst.msk [vmem:[%s104_s3] sm:$0xff] %vm40_vm0, %v36_v10  ;;  %42 = vst.msk [vmem:[%s104_s3 + $0x8] sm:$0xff] %vm40_vm0, %v37_v11 }
   0x8   :  { %43 = vst.msk [vmem:[%s104_s3 + $0x10] sm:$0xff] %vm40_vm0, %v38_v12  ;;  %44 = vst.msk [vmem:[%s104_s3 + $0x18] sm:$0xff] %vm40_vm0, %v39_v13 }

// kernel: _lambda_.47
= control target key start
LH: loop header
LB: loop body
LE: loop exit
PB: predicated region body
PF: predicated region fallthrough
CT: control target
= control target key end

     0   :  { %vm14_vm0 = vcmask 516096   ;;  %vm19_vm1 = vcmask 523264   ;;  %v50_v0 = vmov 0.0   ;;  %s91_s0 = inlined_call_operand.vmem [shape: f32[8,64], index: 0, kind: input, shape index: {}]   ;;  %s92_s1 = inlined_call_operand.vmem [shape: f32[1,64], index: 1, kind: output, shape index: {0}]   ;;  %s93_s2 = inlined_call_operand.vmem [shape: f32[1,64], index: 2, kind: output, shape index: {1}]  }
   0x1   :  { %15 = vst.msk [vmem:[%s92_s1] sm:$0x1] %vm14_vm0, %v50_v0  ;;  %v17_v1 = vld [vmem:[%s91_s0] sm:$0xff]  ;;  %16 = vst.msk [vmem:[%s93_s2] sm:$0x1] %vm14_vm0, %v50_v0 }
   0x2   :  { %v20_v2 = vsel %vm19_vm1, %v17_v1, 0.0  ;;  %v31_v3 = vmul.f32 %v17_v1, %v17_v1 }
   0x3   :  { %v21_v4 = vrot.slane %v20_v2, 4 }
   0x4   :  { %v32_v5 = vsel %vm19_vm1, %v31_v3, 0.0 }
   0x5   :  { %v22_v6 = vadd.f32 %v21_v4, %v20_v2  ;;  %v33_v7 = vrot.slane %v32_v5, 4 }
   0x7   :  { %v23_v8 = vrot.slane %v22_v6, 2  ;;  %v34_v9 = vadd.f32 %v33_v7, %v32_v5 }
   0x8   :  { %v18_v14 = vld [vmem:[%s92_s1] sm:$0x1] }
   0x9   :  { %v24_v10 = vadd.f32 %v23_v8, %v22_v6  ;;  %v35_v11 = vrot.slane %v34_v9, 2  ;;  %v30_v17 = vld [vmem:[%s93_s2] sm:$0x1] }
   0xb   :  { %v25_v12 = vrot.slane %v24_v10, 1  ;;  %v36_v13 = vadd.f32 %v35_v11, %v34_v9 }
   0xd   :  { %v26_v15 = vadd.f32 %v25_v12, %v24_v10  ;;  %v37_v16 = vrot.slane %v36_v13, 1 }
   0xf   :  { %v27_v18 = vadd.f32 %v26_v15, %v18_v14  ;;  %v38_v19 = vadd.f32 %v37_v16, %v36_v13 }
  0x11   :  { %29 = vst.msk [vmem:[%s92_s1] sm:$0x1] %vm14_vm0, %v27_v18  ;;  %v39_v20 = vadd.f32 %v38_v19, %v30_v17 }
  0x13   :  { %40 = vst.msk [vmem:[%s93_s2] sm:$0x1] %vm14_vm0, %v39_v20 }

// kernel: _lambda_.48
= control target key start
LH: loop header
LB: loop body
LE: loop exit
PB: predicated region body
PF: predicated region fallthrough
CT: control target
= control target key end

     0   :  { %vm31_vm0 = vcmask 523264   ;;  %s71_s0 = inlined_call_operand.vmem [shape: f32[8,64], index: 0, kind: input, shape index: {}]   ;;  %s72_s1 = inlined_call_operand.vmem [shape: f32[1,64], index: 1, kind: input, shape index: {}]   ;;  %s73_s2 = inlined_call_operand.vmem [shape: f32[1,64], index: 2, kind: input, shape index: {}]   ;;  %s74_s3 = inlined_call_operand.vmem [shape: f32[8,64], index: 3, kind: output, shape index: {}]  }
   0x1   :  { %v14_v0 = vld [vmem:[%s71_s0] sm:$0xff] }
   0x2   :  { %v37_v1 = vld [vmem:[%s72_s1] ss:$0 sm:$0xff] }
   0x3   :  { %v38_v2 = vld [vmem:[%s73_s2] ss:$0 sm:$0xff]  ;;  %v22_v3 = vmul.f32 %v37_v1, %v14_v0 }
   0x5   :  { %v30_v4 = vadd.f32 %v38_v2, %v22_v3 }
   0x7   :  { %32 = vst.msk [vmem:[%s74_s3] sm:$0xff] %vm31_vm0, %v30_v4 }

// kernel: _lambda_.46
= control target key start
LH: loop header
LB: loop body
LE: loop exit
PB: predicated region body
PF: predicated region fallthrough
CT: control target
= control target key end

     0   :  { %s617_s1 = inlined_call_operand.vmem [shape: bf16[512,128], index: 1, kind: input, shape index: {}]   ;;  %s618_s0 = inlined_call_operand.vmem [shape: bf16[8,512], index: 0, kind: input, shape index: {}]   ;;  %s619_s2 = inlined_call_operand.vmem [shape: f32[8,128], index: 2, kind: output, shape index: {}]  }
   0x1   :  { %v461_v0 = vld [vmem:[%s617_s1 + $0x40] sm:$0xff]   ;;  %v465_v4 = vld [vmem:[%s617_s1 + $0x48] sm:$0xff]   ;;  %v469_v8 = vld [vmem:[%s617_s1 + $0x50] sm:$0xff]  }
   0x2   :  { %v462_v1 = vld [vmem:[%s617_s1 + $0xc0] sm:$0xff]   ;;  %417 = vmatprep.subr.bf16.mxu0 %v461_v0  ;;  %v466_v5 = vld [vmem:[%s617_s1 + $0xc8] sm:$0xff]   ;;  %v470_v9 = vld [vmem:[%s617_s1 + $0xd0] sm:$0xff]  }
   0x3   :  { %v463_v2 = vld [vmem:[%s617_s1] sm:$0xff]   ;;  %439 = vmatprep.subr.bf16.mxu1 %v462_v1  ;;  %v467_v6 = vld [vmem:[%s617_s1 + $0x8] sm:$0xff]   ;;  %v471_v10 = vld [vmem:[%s617_s1 + $0x10] sm:$0xff]  }
   0x4   :  { %v464_v3 = vld [vmem:[%s617_s1 + $0x80] sm:$0xff]   ;;  %418 = vmatpush3.bf16.msra.mxu0 %v463_v2  ;;  %v468_v7 = vld [vmem:[%s617_s1 + $0x88] sm:$0xff]   ;;  %v472_v11 = vld [vmem:[%s617_s1 + $0x90] sm:$0xff]  }
   0x5   :  { %440 = vmatpush3.bf16.msra.mxu1 %v464_v3  ;;  %419 = vmatprep.subr.bf16.mxu0 %v465_v4  ;;  %v473_v12 = vld [vmem:[%s617_s1 + $0x58] sm:$0xff]   ;;  %v477_v16 = vld [vmem:[%s617_s1 + $0x60] sm:$0xff]   ;;  %v481_v20 = vld [vmem:[%s617_s1 + $0x68] sm:$0xff]  }
   0x6   :  { %441 = vmatprep.subr.bf16.mxu1 %v466_v5  ;;  %v474_v13 = vld [vmem:[%s617_s1 + $0xd8] sm:$0xff]   ;;  %v478_v17 = vld [vmem:[%s617_s1 + $0xe0] sm:$0xff]   ;;  %v482_v21 = vld [vmem:[%s617_s1 + $0xe8] sm:$0xff]  }
   0x7   :  { %v475_v14 = vld [vmem:[%s617_s1 + $0x18] sm:$0xff]   ;;  %v479_v18 = vld [vmem:[%s617_s1 + $0x20] sm:$0xff]   ;;  %v483_v22 = vld [vmem:[%s617_s1 + $0x28] sm:$0xff]  }
   0x8   :  { %420 = vmatpush3.bf16.msra.mxu0 %v467_v6  ;;  %v476_v15 = vld [vmem:[%s617_s1 + $0x98] sm:$0xff]   ;;  %v480_v19 = vld [vmem:[%s617_s1 + $0xa0] sm:$0xff]   ;;  %v484_v23 = vld [vmem:[%s617_s1 + $0xa8] sm:$0xff]  }
   0x9   :  { %442 = vmatpush3.bf16.msra.mxu1 %v468_v7  ;;  %421 = vmatprep.subr.bf16.mxu0 %v469_v8  ;;  %v485_v24 = vld [vmem:[%s617_s1 + $0x70] sm:$0xff]   ;;  %v489_v28 = vld [vmem:[%s617_s1 + $0x78] sm:$0xff]   ;;  %v18_v32 = vld [vmem:[%s618_s0] sm:$0xff] }
   0xa   :  { %443 = vmatprep.subr.bf16.mxu1 %v470_v9  ;;  %v486_v25 = vld [vmem:[%s617_s1 + $0xf0] sm:$0xff]   ;;  %v490_v29 = vld [vmem:[%s617_s1 + $0xf8] sm:$0xff]   ;;  %v19_v33 = vld [vmem:[%s618_s0 + $0x8] sm:$0xff]  ;;  %v381_v34 = vcombine.low %v18_v32, %v18_v32  ;;  %v382_v35 = vcombine.high %v18_v32, %v18_v32 }
   0xb   :  { %v487_v26 = vld [vmem:[%s617_s1 + $0x30] sm:$0xff]   ;;  %v491_v30 = vld [vmem:[%s617_s1 + $0x38] sm:$0xff]   ;;  %v383_v36 = vcombine.low %v19_v33, %v19_v33  ;;  %v384_v37 = vcombine.high %v19_v33, %v19_v33 }
   0xc   :  { %422 = vmatpush3.bf16.msra.mxu0 %v471_v10  ;;  %v488_v27 = vld [vmem:[%s617_s1 + $0xb0] sm:$0xff]   ;;  %v492_v31 = vld [vmem:[%s617_s1 + $0xb8] sm:$0xff]   ;;  %322 = vmatprep.mubr.bf16.mxu0 %v382_v35 }
   0xd   :  { %444 = vmatpush3.bf16.msra.mxu1 %v472_v11  ;;  %423 = vmatprep.subr.bf16.mxu0 %v473_v12 }
   0xe   :  { %445 = vmatprep.subr.bf16.mxu1 %v474_v13  ;;  %362 = vmatprep.mubr.bf16.mxu1 %v384_v37 }
  0x10   :  { %424 = vmatpush3.bf16.msra.mxu0 %v475_v14 }
  0x11   :  { %446 = vmatpush3.bf16.msra.mxu1 %v476_v15  ;;  %425 = vmatprep.subr.bf16.mxu0 %v477_v16 }
  0x12   :  { %447 = vmatprep.subr.bf16.mxu1 %v478_v17 }
  0x14   :  { %426 = vmatpush3.bf16.msra.mxu0 %v479_v18 }
  0x15   :  { %448 = vmatpush3.bf16.msra.mxu1 %v480_v19  ;;  %427 = vmatprep.subr.bf16.mxu0 %v481_v20 }
  0x16   :  { %449 = vmatprep.subr.bf16.mxu1 %v482_v21 }
  0x18   :  { %428 = vmatpush3.bf16.msra.mxu0 %v483_v22 }
  0x19   :  { %450 = vmatpush3.bf16.msra.mxu1 %v484_v23  ;;  %429 = vmatprep.subr.bf16.mxu0 %v485_v24 }
  0x1a   :  { %451 = vmatprep.subr.bf16.mxu1 %v486_v25 }
  0x1c   :  { %430 = vmatpush3.bf16.msra.mxu0 %v487_v26 }
  0x1d   :  { %452 = vmatpush3.bf16.msra.mxu1 %v488_v27  ;;  %431 = vmatprep.subr.bf16.mxu0 %v489_v28 }
  0x1e   :  { %453 = vmatprep.subr.bf16.mxu1 %v490_v29 }
  0x20   :  { %432 = vmatpush3.bf16.msra.mxu0 %v491_v30 }
  0x21   :  { %454 = vmatpush3.bf16.msra.mxu1 %v492_v31 }
  0x23   :  { %323 = vmatmul.mubr.bf16.vlgmr.msra.gmra.mrb[0].mxu0 %v381_v34 }
  0x24   :  { %363 = vmatmul.mubr.bf16.vlgmr.msra.gmra.mrb[0].mxu1 %v383_v36 }
  0xf6   :  { %v433_v38 = vpop.f32.mrb[0].mxu0 }
  0xf7   :  { %v455_v39 = vpop.f32.mrb[0].mxu1  ;;  %v434_v40 = vpop.f32.mrb[1].mxu0 }
  0xf8   :  { %v456_v41 = vpop.f32.mrb[1].mxu1  ;;  %v435_v42 = vadd.f32 %v434_v40, %v433_v38  ;;  %v436_v44 = vpop.f32.mrb[2].mxu0 }
  0xf9   :  { %v457_v43 = vadd.f32 %v456_v41, %v455_v39  ;;  %v458_v45 = vpop.f32.mrb[2].mxu1  ;;  %v437_v46 = vpop.f32.mrb[3].mxu0 }
  0xfa   :  { %v459_v47 = vpop.f32.mrb[3].mxu1 }
  0xfb   :  { %v365_v48 = vadd.f32 %v457_v43, %v435_v42 }
  0xfd   :  { %376 = vst [vmem:[%s619_s2] sm:$0xff] %v365_v48 }

// kernel: _lambda_.49
= control target key start
LH: loop header
LB: loop body
LE: loop exit
PB: predicated region body
PF: predicated region fallthrough
CT: control target
= control target key end

     0   :  { %s872_s9 = smov 0   ;;  %s874_s10 = smov 0   ;;  %s952_s0 = inlined_call_operand.vmem [shape: bf16[8,1024], index: 0, kind: input, shape index: {}]   ;;  %s953_s1 = inlined_call_operand.vmem [shape: bf16[1024,128], index: 1, kind: input, shape index: {}]   ;;  %s954_s2 = inlined_call_operand.vmem [shape: f32[8,128], index: 2, kind: output, shape index: {}]  }
   0x1   :  { %s876_s11 = smov 0  }
   0x2 LB: > { %s24_s12 = sadd.s32 1, %s850_s10  ;;  %p681_p0 = scmp.ge.s32.totalorder %s854_s11, 1  ;;  %s854_s11 = sphi %s876_s11, %s12_s11   ;;  %s850_s10 = sphi %s874_s10, %s956_s10   ;;  %s846_s9 = sphi %s872_s9, %s955_s9  }
   0x3   : > { %p25_p1 = scmp.ge.s32.totalorder %s24_s12, 2  ;;  %p156_p2 = scmp.lt.s32.totalorder %s854_s11, 3 }
   0x5   : > { %s958_s12 = smov (%p25_p1, %s24_s12), 0  ;;  %p157_p3 = pnand %p681_p0, %p156_p2 }
   0x6   : > { %s682_s13 = sshll.u32 (!%p157_p3), %s846_s9, 2  ;;  %s684_s14 = sshll.u32 (!%p157_p3), %s846_s9, 6 }
   0x7   : > { %160 = sbr.rel (%p157_p3) target bundleno = 287 (0x11f), region = 28  ;;  %p195_p4 = scmp.lt.s32.totalorder (!%p157_p3), %s682_s13, 7 }
   0x8   : > { %p203_p5 = scmp.lt.s32.totalorder (!%p157_p3), %s684_s14, 127  ;;  %p686_p6 = scmp.ne.s32.totalorder (!%p157_p3), %s846_s9, 0 }
   0xe   : > { %s960_s13 = smov (!%p195_p4, %s682_s13), 7  ;;  %s962_s14 = smov (!%p203_p5, %s684_s14), 127 }
   0xf   : > { %s683_s15 = sshll.u32 %s960_s13, 2  ;;  %s685_s19 = sshll.u32 %s962_s14, 2  ;;  %v856_v0 = vmov (!%p686_p6), 0.0  }
  0x10   : > { %s897_s18 = scalar_lea.vmem %s952_s0, %s683_s15  ;;  %s902_s22 = scalar_lea.vmem %s953_s1, %s685_s19  ;;  %223 = vst [vmem:[#allocation2] sm:$0xff] (!%p686_p6), %v856_v0 }
  0x11   : > { %222 = sbr.rel (%p686_p6) target bundleno = 24 (0x18), region = 32 }
  0x18 PF: > { %v796_v1 = vld [vmem:[%s902_s22 + $0x40] sm:$0xff]   ;;  %v800_v5 = vld [vmem:[%s902_s22 + $0x48] sm:$0xff]   ;;  %v804_v9 = vld [vmem:[%s902_s22 + $0x50] sm:$0xff]   ;;  %p723_p7 = scmp.ne.s32.totalorder %s846_s9, 1 }
  0x19   : > { %v797_v2 = vld [vmem:[%s902_s22 + $0xc0] sm:$0xff]   ;;  %727 = vmatprep.subr.bf16.mxu0 %v796_v1  ;;  %v801_v6 = vld [vmem:[%s902_s22 + $0xc8] sm:$0xff]   ;;  %v805_v10 = vld [vmem:[%s902_s22 + $0xd0] sm:$0xff]  }
  0x1a   : > { %v798_v3 = vld [vmem:[%s902_s22] sm:$0xff]   ;;  %749 = vmatprep.subr.bf16.mxu1 %v797_v2  ;;  %v802_v7 = vld [vmem:[%s902_s22 + $0x8] sm:$0xff]   ;;  %v806_v11 = vld [vmem:[%s902_s22 + $0x10] sm:$0xff]  }
  0x1b   : > { %v799_v4 = vld [vmem:[%s902_s22 + $0x80] sm:$0xff]   ;;  %728 = vmatpush3.bf16.msra.mxu0 %v798_v3  ;;  %v803_v8 = vld [vmem:[%s902_s22 + $0x88] sm:$0xff]   ;;  %v807_v12 = vld [vmem:[%s902_s22 + $0x90] sm:$0xff]  }
  0x1c   : > { %750 = vmatpush3.bf16.msra.mxu1 %v799_v4  ;;  %729 = vmatprep.subr.bf16.mxu0 %v800_v5  ;;  %v808_v13 = vld [vmem:[%s902_s22 + $0x58] sm:$0xff]   ;;  %v812_v17 = vld [vmem:[%s902_s22 + $0x60] sm:$0xff]   ;;  %v816_v21 = vld [vmem:[%s902_s22 + $0x68] sm:$0xff]  }
  0x1d   : > { %751 = vmatprep.subr.bf16.mxu1 %v801_v6  ;;  %v809_v14 = vld [vmem:[%s902_s22 + $0xd8] sm:$0xff]   ;;  %v813_v18 = vld [vmem:[%s902_s22 + $0xe0] sm:$0xff]   ;;  %v817_v22 = vld [vmem:[%s902_s22 + $0xe8] sm:$0xff]  }
  0x1e   : > { %v810_v15 = vld [vmem:[%s902_s22 + $0x18] sm:$0xff]   ;;  %v814_v19 = vld [vmem:[%s902_s22 + $0x20] sm:$0xff]   ;;  %v818_v23 = vld [vmem:[%s902_s22 + $0x28] sm:$0xff]  }
  0x1f   : > { %730 = vmatpush3.bf16.msra.mxu0 %v802_v7  ;;  %v811_v16 = vld [vmem:[%s902_s22 + $0x98] sm:$0xff]   ;;  %v815_v20 = vld [vmem:[%s902_s22 + $0xa0] sm:$0xff]   ;;  %v819_v24 = vld [vmem:[%s902_s22 + $0xa8] sm:$0xff]  }
  0x20   : > { %752 = vmatpush3.bf16.msra.mxu1 %v803_v8  ;;  %731 = vmatprep.subr.bf16.mxu0 %v804_v9  ;;  %v820_v25 = vld [vmem:[%s902_s22 + $0x70] sm:$0xff]   ;;  %v824_v29 = vld [vmem:[%s902_s22 + $0x78] sm:$0xff]   ;;  %v225_v33 = vld [vmem:[%s897_s18] sm:$0xff] }
  0x21   : > { %753 = vmatprep.subr.bf16.mxu1 %v805_v10  ;;  %v821_v26 = vld [vmem:[%s902_s22 + $0xf0] sm:$0xff]   ;;  %v825_v30 = vld [vmem:[%s902_s22 + $0xf8] sm:$0xff]   ;;  %v226_v34 = vld [vmem:[%s897_s18 + $0x8] sm:$0xff]  ;;  %v687_v35 = vcombine.low %v225_v33, %v225_v33  ;;  %v688_v36 = vcombine.high %v225_v33, %v225_v33 }
  0x22   : > { %v822_v27 = vld [vmem:[%s902_s22 + $0x30] sm:$0xff]   ;;  %v826_v31 = vld [vmem:[%s902_s22 + $0x38] sm:$0xff]   ;;  %v689_v37 = vcombine.low %v226_v34, %v226_v34  ;;  %v690_v38 = vcombine.high %v226_v34, %v226_v34  ;;  %v224_v47 = vld [vmem:[#allocation2] sm:$0xff] }
  0x23   : > { %732 = vmatpush3.bf16.msra.mxu0 %v806_v11  ;;  %v823_v28 = vld [vmem:[%s902_s22 + $0xb0] sm:$0xff]   ;;  %v827_v32 = vld [vmem:[%s902_s22 + $0xb8] sm:$0xff]   ;;  %529 = vmatprep.mubr.bf16.mxu0 %v688_v36 }
  0x24   : > { %754 = vmatpush3.bf16.msra.mxu1 %v807_v12  ;;  %733 = vmatprep.subr.bf16.mxu0 %v808_v13 }
  0x25   : > { %755 = vmatprep.subr.bf16.mxu1 %v809_v14  ;;  %569 = vmatprep.mubr.bf16.mxu1 %v690_v38 }
  0x27   : > { %734 = vmatpush3.bf16.msra.mxu0 %v810_v15 }
  0x28   : > { %756 = vmatpush3.bf16.msra.mxu1 %v811_v16  ;;  %735 = vmatprep.subr.bf16.mxu0 %v812_v17 }
  0x29   : > { %757 = vmatprep.subr.bf16.mxu1 %v813_v18 }
  0x2b   : > { %736 = vmatpush3.bf16.msra.mxu0 %v814_v19 }
  0x2c   : > { %758 = vmatpush3.bf16.msra.mxu1 %v815_v20  ;;  %737 = vmatprep.subr.bf16.mxu0 %v816_v21 }
  0x2d   : > { %759 = vmatprep.subr.bf16.mxu1 %v817_v22 }
  0x2f   : > { %738 = vmatpush3.bf16.msra.mxu0 %v818_v23 }
  0x30   : > { %760 = vmatpush3.bf16.msra.mxu1 %v819_v24  ;;  %739 = vmatprep.subr.bf16.mxu0 %v820_v25 }
  0x31   : > { %761 = vmatprep.subr.bf16.mxu1 %v821_v26 }
  0x33   : > { %740 = vmatpush3.bf16.msra.mxu0 %v822_v27 }
  0x34   : > { %762 = vmatpush3.bf16.msra.mxu1 %v823_v28  ;;  %741 = vmatprep.subr.bf16.mxu0 %v824_v29 }
  0x35   : > { %763 = vmatprep.subr.bf16.mxu1 %v825_v30 }
  0x37   : > { %742 = vmatpush3.bf16.msra.mxu0 %v826_v31 }
  0x38   : > { %764 = vmatpush3.bf16.msra.mxu1 %v827_v32 }
  0x3a   : > { %530 = vmatmul.mubr.bf16.vlgmr.msra.gmra.mrb[0].mxu0 %v687_v35 }
  0x3b   : > { %570 = vmatmul.mubr.bf16.vlgmr.msra.gmra.mrb[0].mxu1 %v689_v37 }
 0x10d   : > { %v743_v39 = vpop.f32.mrb[0].mxu0 }
 0x10e   : > { %v765_v40 = vpop.f32.mrb[0].mxu1  ;;  %v744_v41 = vpop.f32.mrb[1].mxu0 }
 0x10f   : > { %v766_v42 = vpop.f32.mrb[1].mxu1  ;;  %v745_v43 = vadd.f32 %v744_v41, %v743_v39  ;;  %v746_v45 = vpop.f32.mrb[2].mxu0 }
 0x110   : > { %v767_v44 = vadd.f32 %v766_v42, %v765_v40  ;;  %v768_v46 = vpop.f32.mrb[2].mxu1  ;;  %v747_v48 = vpop.f32.mrb[3].mxu0  ;;  %582 = sbr.rel (%p723_p7) target bundleno = 287 (0x11f), region = 36 }
 0x111   : > { %v769_v49 = vpop.f32.mrb[3].mxu1 }
 0x112   : > { %v572_v50 = vadd.f32 %v767_v44, %v745_v43 }
 0x114   : > { %v577_v51 = vadd.f32 %v572_v50, %v224_v47 }
 0x116   : > { %578 = vst [vmem:[#allocation2] sm:$0xff] %v577_v51 }
 0x11d   : > { %v583_v52 = vld [vmem:[#allocation2] sm:$0xff] }
 0x11e   : > { %584 = vst [vmem:[%s954_s2] sm:$0xff] %v583_v52 }
 0x11f PF: > { %s12_s11 = sadd.s32 1, %s854_s11   ;;  %s955_s9 = smov %s850_s10 }
 0x120   : > { %p9_p8 = scmp.ge.s32.totalorder %s12_s11, 4   ;;  %s956_s10 = smov %s958_s12 }
 0x122   :  { %11 = sbr.rel (!%p9_p8) target bundleno = 2 (0x2), region = 69 }

// kernel: _lambda_.50
= control target key start
LH: loop header
LB: loop body
LE: loop exit
PB: predicated region body
PF: predicated region fallthrough
CT: control target
= control target key end

     0   :  { %s332_s1 = inlined_call_operand.vmem [shape: bf16[256,128], index: 1, kind: input, shape index: {}]   ;;  %s333_s0 = inlined_call_operand.vmem [shape: bf16[8,256], index: 0, kind: input, shape index: {}]   ;;  %s334_s2 = inlined_call_operand.vmem [shape: f32[8,128], index: 2, kind: output, shape index: {}]  }
   0x1   :  { %v245_v0 = vld [vmem:[%s332_s1 + $0x40] sm:$0xff]   ;;  %v247_v2 = vld [vmem:[%s332_s1 + $0x48] sm:$0xff]   ;;  %v249_v4 = vld [vmem:[%s332_s1 + $0x50] sm:$0xff]  }
   0x2   :  { %v246_v1 = vld [vmem:[%s332_s1] sm:$0xff]   ;;  %223 = vmatprep.subr.bf16.mxu0 %v245_v0  ;;  %v248_v3 = vld [vmem:[%s332_s1 + $0x8] sm:$0xff]   ;;  %v250_v5 = vld [vmem:[%s332_s1 + $0x10] sm:$0xff]  }
   0x3   :  { %224 = vmatpush3.bf16.msra.mxu0 %v246_v1  ;;  %v251_v6 = vld [vmem:[%s332_s1 + $0x58] sm:$0xff]   ;;  %v253_v8 = vld [vmem:[%s332_s1 + $0x60] sm:$0xff]   ;;  %v255_v10 = vld [vmem:[%s332_s1 + $0x68] sm:$0xff]  }
   0x4   :  { %225 = vmatprep.subr.bf16.mxu0 %v247_v2  ;;  %v252_v7 = vld [vmem:[%s332_s1 + $0x18] sm:$0xff]   ;;  %v254_v9 = vld [vmem:[%s332_s1 + $0x20] sm:$0xff]   ;;  %v256_v13 = vld [vmem:[%s332_s1 + $0x28] sm:$0xff]  }
   0x5   :  { %v18_v11 = vld [vmem:[%s333_s0] sm:$0xff]  ;;  %v257_v14 = vld [vmem:[%s332_s1 + $0x70] sm:$0xff]   ;;  %v259_v16 = vld [vmem:[%s332_s1 + $0x78] sm:$0xff]  }
   0x6   :  { %v206_v12 = vcombine.high %v18_v11, %v18_v11  ;;  %v258_v15 = vld [vmem:[%s332_s1 + $0x30] sm:$0xff]   ;;  %v260_v17 = vld [vmem:[%s332_s1 + $0x38] sm:$0xff]   ;;  %v205_v18 = vcombine.low %v18_v11, %v18_v11 }
   0x7   :  { %226 = vmatpush3.bf16.msra.mxu0 %v248_v3 }
   0x8   :  { %227 = vmatprep.subr.bf16.mxu0 %v249_v4  ;;  %186 = vmatprep.mubr.bf16.mxu0 %v206_v12 }
   0xb   :  { %228 = vmatpush3.bf16.msra.mxu0 %v250_v5 }
   0xc   :  { %229 = vmatprep.subr.bf16.mxu0 %v251_v6 }
   0xf   :  { %230 = vmatpush3.bf16.msra.mxu0 %v252_v7 }
  0x10   :  { %231 = vmatprep.subr.bf16.mxu0 %v253_v8 }
  0x13   :  { %232 = vmatpush3.bf16.msra.mxu0 %v254_v9 }
  0x14   :  { %233 = vmatprep.subr.bf16.mxu0 %v255_v10 }
  0x17   :  { %234 = vmatpush3.bf16.msra.mxu0 %v256_v13 }
  0x18   :  { %235 = vmatprep.subr.bf16.mxu0 %v257_v14 }
  0x1b   :  { %236 = vmatpush3.bf16.msra.mxu0 %v258_v15 }
  0x1c   :  { %237 = vmatprep.subr.bf16.mxu0 %v259_v16 }
  0x1f   :  { %238 = vmatpush3.bf16.msra.mxu0 %v260_v17 }
  0x22   :  { %187 = vmatmul.mubr.bf16.vlgmr.msra.gmra.mrb[0].mxu0 %v205_v18 }
  0xf5   :  { %v239_v19 = vpop.f32.mrb[0].mxu0 }
  0xf6   :  { %v240_v20 = vpop.f32.mrb[1].mxu0 }
  0xf7   :  { %v241_v21 = vadd.f32 %v240_v20, %v239_v19  ;;  %v242_v22 = vpop.f32.mrb[2].mxu0 }
  0xf8   :  { %v243_v23 = vpop.f32.mrb[3].mxu0 }
  0xf9   :  { %200 = vst [vmem:[%s334_s2] sm:$0xff] %v241_v21 }

// kernel: _lambda_.72
= control target key start
LH: loop header
LB: loop body
LE: loop exit
PB: predicated region body
PF: predicated region fallthrough
CT: control target
= control target key end

     0   :  { %vm14_vm0 = vcmask 57344   ;;  %vm82_vm1 = vcmask 64512   ;;  %v428_v0 = vmov 0.0   ;;  %s1318_s0 = inlined_call_operand.vmem [shape: f32[512,8], index: 0, kind: input, shape index: {}]   ;;  %s1319_s1 = inlined_call_operand.vmem [shape: f32[1,8], index: 1, kind: output, shape index: {0}]   ;;  %s1320_s2 = inlined_call_operand.vmem [shape: f32[1,8], index: 2, kind: output, shape index: {1}]  }
   0x1   :  { %15 = vst.msk [vmem:[%s1319_s1] sm:$0x1] %vm14_vm0, %v428_v0  ;;  %16 = vst.msk [vmem:[%s1320_s2] sm:$0x1] %vm14_vm0, %v428_v0  ;;  %v455_v1 = vld [vmem:[%s1318_s0] sm:$0xff]  ;;  %v460_v2 = vld [vmem:[%s1318_s0 + $0x8] sm:$0xff] }
   0x2   :  { %v465_v3 = vld [vmem:[%s1318_s0 + $0x10] sm:$0xff]  ;;  %v83_v4 = vsel %vm82_vm1, %v455_v1, 0.0  ;;  %v84_v5 = vsel %vm82_vm1, %v460_v2, 0.0  ;;  %v476_v7 = vld [vmem:[%s1318_s0 + $0x18] sm:$0xff]  ;;  %v483_v10 = vld [vmem:[%s1318_s0 + $0x20] sm:$0xff] }
   0x3   :  { %v86_v6 = vsel %vm82_vm1, %v465_v3, 0.0  ;;  %v85_v8 = vadd.f32 %v84_v5, %v83_v4  ;;  %v88_v9 = vsel %vm82_vm1, %v476_v7, 0.0  ;;  %v90_v12 = vsel %vm82_vm1, %v483_v10, 0.0  ;;  %v490_v13 = vld [vmem:[%s1318_s0 + $0x28] sm:$0xff]  ;;  %v497_v16 = vld [vmem:[%s1318_s0 + $0x30] sm:$0xff]  ;;  %v502_v18 = vld [vmem:[%s1318_s0 + $0x38] sm:$0xff] }
   0x4   :  { %v92_v15 = vsel %vm82_vm1, %v490_v13, 0.0  ;;  %v507_v19 = vld [vmem:[%s1318_s0 + $0x40] sm:$0xff]  ;;  %v94_v20 = vsel %vm82_vm1, %v497_v16, 0.0  ;;  %v514_v21 = vld [vmem:[%s1318_s0 + $0x48] sm:$0xff]  ;;  %v519_v22 = vld [vmem:[%s1318_s0 + $0x50] sm:$0xff]  ;;  %v96_v25 = vsel %vm82_vm1, %v502_v18, 0.0 }
   0x5   :  { %v87_v11 = vadd.f32 %v86_v6, %v85_v8  ;;  %v524_v23 = vld [vmem:[%s1318_s0 + $0x58] sm:$0xff]  ;;  %v98_v26 = vsel %vm82_vm1, %v507_v19, 0.0  ;;  %v533_v27 = vld [vmem:[%s1318_s0 + $0x108] sm:$0xff]  ;;  %v538_v28 = vld [vmem:[%s1318_s0 + $0x110] sm:$0xff]  ;;  %v100_v30 = vsel %vm82_vm1, %v514_v21, 0.0  ;;  %v102_v31 = vsel %vm82_vm1, %v519_v22, 0.0 }
   0x6   :  { %v543_v29 = vld [vmem:[%s1318_s0 + $0x118] sm:$0xff]  ;;  %v551_v32 = vsel %vm82_vm1, %v524_v23, 0.0  ;;  %v556_v33 = vld [vmem:[%s1318_s0 + $0x120] sm:$0xff]  ;;  %v561_v34 = vld [vmem:[%s1318_s0 + $0x128] sm:$0xff]  ;;  %v570_v37 = vsel %vm82_vm1, %v533_v27, 0.0  ;;  %v574_v38 = vsel %vm82_vm1, %v538_v28, 0.0 }
   0x7   :  { %v89_v14 = vadd.f32 %v88_v9, %v87_v11  ;;  %v566_v35 = vld [vmem:[%s1318_s0 + $0x130] sm:$0xff]  ;;  %1339 = vst [vmem:[#allocation2_spill] sm:$0xff] %v570_v37  ;;  %1340 = vst [vmem:[#allocation3_spill] sm:$0xff] %v574_v38  ;;  %v578_v39 = vsel %vm82_vm1, %v543_v29, 0.0  ;;  %v583_v40 = vld [vmem:[%s1318_s0 + $0x138] sm:$0xff]  ;;  %v597_v43 = vsel %vm82_vm1, %v556_v33, 0.0  ;;  %v222_v37 = vmul.f32 %v465_v3, %v465_v3 }
   0x8   :  { %1341 = vst [vmem:[#allocation4_spill] sm:$0xff] %v578_v39  ;;  %v588_v41 = vld [vmem:[%s1318_s0 + $0x140] sm:$0xff]  ;;  %v593_v42 = vld [vmem:[%s1318_s0 + $0x148] sm:$0xff]  ;;  %1342 = vst [vmem:[#allocation5_spill] sm:$0xff] %v597_v43  ;;  %v601_v44 = vsel %vm82_vm1, %v561_v34, 0.0  ;;  %v605_v45 = vsel %vm82_vm1, %v566_v35, 0.0 }
   0x9   :  { %v91_v17 = vadd.f32 %v90_v12, %v89_v14  ;;  %1343 = vst [vmem:[#allocation6_spill] sm:$0xff] %v601_v44  ;;  %1344 = vst [vmem:[#allocation7_spill] sm:$0xff] %v605_v45  ;;  %v610_v46 = vld [vmem:[%s1318_s0 + $0x150] sm:$0xff]  ;;  %v615_v47 = vld [vmem:[%s1318_s0 + $0x158] sm:$0xff]  ;;  %v624_v50 = vsel %vm82_vm1, %v583_v40, 0.0  ;;  %v628_v51 = vsel %vm82_vm1, %v588_v41, 0.0 }
   0xa   :  { %v620_v48 = vld [vmem:[%s1318_s0 + $0x160] sm:$0xff]  ;;  %1345 = vst [vmem:[#allocation8_spill] sm:$0xff] %v624_v50  ;;  %1346 = vst [vmem:[#allocation9_spill] sm:$0xff] %v628_v51  ;;  %v632_v52 = vsel %vm82_vm1, %v593_v42, 0.0  ;;  %v637_v53 = vld [vmem:[%s1318_s0 + $0x168] sm:$0xff]  ;;  %v651_v56 = vsel %vm82_vm1, %v610_v46, 0.0 }
   0xb   :  { %v93_v24 = vadd.f32 %v92_v15, %v91_v17  ;;  %1347 = vst [vmem:[#allocation10_spill] sm:$0xff] %v632_v52  ;;  %v642_v54 = vld [vmem:[%s1318_s0 + $0x170] sm:$0xff]  ;;  %v647_v55 = vld [vmem:[%s1318_s0 + $0x178] sm:$0xff]  ;;  %1348 = vst [vmem:[#allocation11_spill] sm:$0xff] %v651_v56  ;;  %v655_v57 = vsel %vm82_vm1, %v615_v47, 0.0  ;;  %v659_v58 = vsel %vm82_vm1, %v620_v48, 0.0 }
   0xc   :  { %1349 = vst [vmem:[#allocation12_spill] sm:$0xff] %v655_v57  ;;  %1350 = vst [vmem:[#allocation13_spill] sm:$0xff] %v659_v58  ;;  %v664_v59 = vld [vmem:[%s1318_s0 + $0x180] sm:$0xff]  ;;  %v669_v60 = vld [vmem:[%s1318_s0 + $0x188] sm:$0xff]  ;;  %v678_v63 = vsel %vm82_vm1, %v637_v53, 0.0  ;;  %v682_v0 = vsel %vm82_vm1, %v642_v54, 0.0 }
   0xd   :  { %v95_v36 = vadd.f32 %v94_v20, %v93_v24  ;;  %v674_v61 = vld [vmem:[%s1318_s0 + $0x190] sm:$0xff]  ;;  %1351 = vst [vmem:[#allocation14_spill] sm:$0xff] %v678_v63  ;;  %1352 = vst [vmem:[#allocation15_spill] sm:$0xff] %v682_v0  ;;  %v686_v4 = vsel %vm82_vm1, %v647_v55, 0.0  ;;  %v691_v5 = vld [vmem:[%s1318_s0 + $0x198] sm:$0xff]  ;;  %v705_v9 = vsel %vm82_vm1, %v664_v59, 0.0 }
   0xe   :  { %1353 = vst [vmem:[#allocation16_spill] sm:$0xff] %v686_v4  ;;  %v696_v6 = vld [vmem:[%s1318_s0 + $0x1a0] sm:$0xff]  ;;  %v701_v8 = vld [vmem:[%s1318_s0 + $0x1a8] sm:$0xff]  ;;  %1354 = vst [vmem:[#allocation17_spill] sm:$0xff] %v705_v9  ;;  %v709_v11 = vsel %vm82_vm1, %v669_v60, 0.0  ;;  %v713_v12 = vsel %vm82_vm1, %v674_v61, 0.0 }
   0xf   :  { %v97_v49 = vadd.f32 %v96_v25, %v95_v36  ;;  %1355 = vst [vmem:[#allocation18_spill] sm:$0xff] %v709_v11  ;;  %1356 = vst [vmem:[#allocation19_spill] sm:$0xff] %v713_v12  ;;  %v718_v14 = vld [vmem:[%s1318_s0 + $0x60] sm:$0xff]  ;;  %v723_v15 = vld [vmem:[%s1318_s0 + $0x1b0] sm:$0xff]  ;;  %v737_v25 = vsel %vm82_vm1, %v691_v5, 0.0  ;;  %v745_v36 = vsel %vm82_vm1, %v701_v8, 0.0 }
  0x10   :  { %v728_v17 = vld [vmem:[%s1318_s0 + $0x1b8] sm:$0xff]  ;;  %v733_v20 = vld [vmem:[%s1318_s0 + $0x1c0] sm:$0xff]  ;;  %1357 = vst [vmem:[#allocation20_spill] sm:$0xff] %v737_v25  ;;  %1359 = vst [vmem:[#allocation22_spill] sm:$0xff] %v745_v36 }
  0x11   :  { %v99_v62 = vadd.f32 %v98_v26, %v97_v49  ;;  %v741_v26 = vsel %vm82_vm1, %v696_v6, 0.0  ;;  %v750_v49 = vld [vmem:[%s1318_s0 + $0x1c8] sm:$0xff]  ;;  %v768_v36 = vsel %vm82_vm1, %v728_v17, 0.0  ;;  %v772_v25 = vsel %vm82_vm1, %v733_v20, 0.0  ;;  %v777_v12 = vld [vmem:[%s1318_s0 + $0x1e0] sm:$0xff]  ;;  %v804_v0 = vld [vmem:[%s1318_s0 + $0x1f8] sm:$0xff] }
  0x12   :  { %1358 = vst [vmem:[#allocation21_spill] sm:$0xff] %v741_v26  ;;  %v764_v26 = vsel %vm82_vm1, %v723_v15, 0.0  ;;  %1361 = vst [vmem:[#allocation24_spill] sm:$0xff] %v768_v36  ;;  %v782_v11 = vld [vmem:[%s1318_s0 + $0x1e8] sm:$0xff]  ;;  %v791_v9 = vsel %vm82_vm1, %v750_v49, 0.0  ;;  %v826_v58 = vsel %vm82_vm1, %v804_v0, 0.0 }
  0x13   :  { %v101_v24 = vadd.f32 %v100_v30, %v99_v62  ;;  %v755_v30 = vld [vmem:[%s1318_s0 + $0x1d0] sm:$0xff]  ;;  %v760_v62 = vld [vmem:[%s1318_s0 + $0x1d8] sm:$0xff]  ;;  %1360 = vst [vmem:[#allocation23_spill] sm:$0xff] %v764_v26  ;;  %1362 = vst [vmem:[#allocation25_spill] sm:$0xff] %v772_v25 }
  0x14   :  { %v787_v26 = vld [vmem:[%s1318_s0 + $0x1f0] sm:$0xff]  ;;  %1364 = vst [vmem:[#allocation27_spill] sm:$0xff] %v791_v9  ;;  %v795_v25 = vsel %vm82_vm1, %v755_v30, 0.0  ;;  %v799_v4 = vsel %vm82_vm1, %v760_v62, 0.0  ;;  %1367 = vst [vmem:[#allocation30_spill] sm:$0xff] %v804_v0  ;;  %v814_v9 = vsel %vm82_vm1, %v782_v11, 0.0 }
  0x15   :  { %1363 = vst [vmem:[#allocation26_spill] sm:$0xff] %v787_v26  ;;  %v103_v36 = vadd.f32 %v102_v31, %v101_v24  ;;  %1365 = vst [vmem:[#allocation28_spill] sm:$0xff] %v795_v25  ;;  %v106_v31 = vsel %vm82_vm1, %v718_v14, 0.0  ;;  %v810_v24 = vsel %vm82_vm1, %v777_v12, 0.0  ;;  %v818_v25 = vsel %vm82_vm1, %v787_v26, 0.0  ;;  %v855_v56 = vld [vmem:[%s1318_s0 + $0x90] sm:$0xff] }
  0x16   :  { %1366 = vst [vmem:[#allocation29_spill] sm:$0xff] %v799_v4  ;;  %1368 = vst [vmem:[#allocation31_spill] sm:$0xff] %v810_v24  ;;  %v30_v4 = vld [vmem:[%s1318_s0 + $0x68] sm:$0xff]  ;;  %v860_v52 = vld [vmem:[%s1318_s0 + $0x98] sm:$0xff] }
  0x17   :  { %1369 = vst [vmem:[#allocation32_spill] sm:$0xff] %v814_v9  ;;  %1370 = vst [vmem:[#allocation33_spill] sm:$0xff] %v818_v25  ;;  %v105_v63 = vadd.f32 %v551_v32, %v103_v36  ;;  %v108_v24 = vsel %vm82_vm1, %v30_v4, 0.0  ;;  %v31_v9 = vld [vmem:[%s1318_s0 + $0x70] sm:$0xff]  ;;  %v835_v25 = vld [vmem:[%s1318_s0 + $0x78] sm:$0xff]  ;;  %v120_v39 = vsel %vm82_vm1, %v860_v52, 0.0 }
  0x18   :  { %1371 = vst [vmem:[#allocation34_spill] sm:$0xff] %v826_v58  ;;  %1372 = vst [vmem:[#allocation35_spill] sm:$0xff] %v835_v25  ;;  %v840_v32 = vld [vmem:[%s1318_s0 + $0x80] sm:$0xff]  ;;  %v845_v36 = vld [vmem:[%s1318_s0 + $0x88] sm:$0xff]  ;;  %v110_v58 = vsel %vm82_vm1, %v31_v9, 0.0 }
  0x19   :  { %v107_v57 = vadd.f32 %v106_v31, %v105_v63  ;;  %1373 = vst [vmem:[#allocation36_spill] sm:$0xff] %v840_v32  ;;  %1374 = vst [vmem:[#allocation37_spill] sm:$0xff] %v845_v36  ;;  %v220_v63 = vmul.f32 %v455_v1, %v455_v1  ;;  %v221_v31 = vmul.f32 %v460_v2, %v460_v2  ;;  %v865_v51 = vld [vmem:[%s1318_s0 + $0xa0] sm:$0xff]  ;;  %v112_v1 = vsel %vm82_vm1, %v835_v25, 0.0  ;;  %v876_v44 = vld [vmem:[%s1318_s0 + $0xa8] sm:$0xff] }
  0x1a   :  { %1375 = vst [vmem:[#allocation38_spill] sm:$0xff] %v855_v56  ;;  %1376 = vst [vmem:[#allocation39_spill] sm:$0xff] %v860_v52  ;;  %v114_v2 = vsel %vm82_vm1, %v840_v32, 0.0  ;;  %v116_v45 = vsel %vm82_vm1, %v845_v36, 0.0  ;;  %v881_v43 = vld [vmem:[%s1318_s0 + $0xb0] sm:$0xff]  ;;  %v122_v38 = vsel %vm82_vm1, %v865_v51, 0.0  ;;  %v223_v25 = vmul.f32 %v476_v7, %v476_v7 }
  0x1b   :  { %1377 = vst [vmem:[#allocation40_spill] sm:$0xff] %v865_v51  ;;  %v109_v50 = vadd.f32 %v108_v24, %v107_v57  ;;  %1378 = vst [vmem:[#allocation41_spill] sm:$0xff] %v876_v44  ;;  %v886_v57 = vld [vmem:[%s1318_s0 + $0xb8] sm:$0xff]  ;;  %v118_v24 = vsel %vm82_vm1, %v855_v56, 0.0  ;;  %v899_v36 = vld [vmem:[%s1318_s0 + $0xc0] sm:$0xff]  ;;  %v124_v51 = vsel %vm82_vm1, %v876_v44, 0.0 }
  0x1c   :  { %1379 = vst [vmem:[#allocation42_spill] sm:$0xff] %v881_v43  ;;  %1380 = vst [vmem:[#allocation43_spill] sm:$0xff] %v886_v57  ;;  %v904_v32 = vld [vmem:[%s1318_s0 + $0xc8] sm:$0xff]  ;;  %v909_v52 = vld [vmem:[%s1318_s0 + $0xd0] sm:$0xff]  ;;  %v915_v3 = vsel %vm82_vm1, %v881_v43, 0.0 }
  0x1d   :  { %1381 = vst [vmem:[#allocation44_spill] sm:$0xff] %v899_v36  ;;  %1382 = vst [vmem:[#allocation45_spill] sm:$0xff] %v904_v32  ;;  %v111_v56 = vadd.f32 %v110_v58, %v109_v50  ;;  %v922_v0 = vld [vmem:[%s1318_s0 + $0xd8] sm:$0xff]  ;;  %v927_v26 = vld [vmem:[%s1318_s0 + $0xe0] sm:$0xff]  ;;  %v931_v50 = vsel %vm82_vm1, %v886_v57, 0.0  ;;  %v935_v58 = vsel %vm82_vm1, %v899_v36, 0.0 }
  0x1e   :  { %1383 = vst [vmem:[#allocation46_spill] sm:$0xff] %v909_v52  ;;  %1384 = vst [vmem:[#allocation47_spill] sm:$0xff] %v922_v0  ;;  %v939_v7 = vsel %vm82_vm1, %v904_v32, 0.0  ;;  %v943_v43 = vsel %vm82_vm1, %v909_v52, 0.0  ;;  %v948_v44 = vld [vmem:[%s1318_s0 + $0xe8] sm:$0xff]  ;;  %v953_v57 = vld [vmem:[%s1318_s0 + $0xf0] sm:$0xff]  ;;  %v224_v52 = vmul.f32 %v483_v10, %v483_v10  ;;  %v228_v10 = vmul.f32 %v507_v19, %v507_v19 }
  0x1f   :  { %1385 = vst [vmem:[#allocation48_spill] sm:$0xff] %v927_v26  ;;  %1386 = vst [vmem:[#allocation49_spill] sm:$0xff] %v935_v58  ;;  %v113_v36 = vadd.f32 %v112_v1, %v111_v56  ;;  %v957_v58 = vsel %vm82_vm1, %v922_v0, 0.0  ;;  %v961_v32 = vsel %vm82_vm1, %v927_v26, 0.0  ;;  %v225_v56 = vmul.f32 %v490_v13, %v490_v13 }
  0x20   :  { %1387 = vst [vmem:[#allocation50_spill] sm:$0xff] %v939_v7  ;;  %1388 = vst [vmem:[#allocation51_spill] sm:$0xff] %v943_v43  ;;  %v967_v43 = vsel %vm82_vm1, %v948_v44, 0.0  ;;  %v971_v7 = vsel %vm82_vm1, %v953_v57, 0.0  ;;  %v226_v1 = vmul.f32 %v497_v16, %v497_v16  ;;  %v227_v26 = vmul.f32 %v502_v18, %v502_v18 }
  0x21   :  { %1389 = vst [vmem:[#allocation52_spill] sm:$0xff] %v948_v44  ;;  %1390 = vst [vmem:[#allocation53_spill] sm:$0xff] %v953_v57  ;;  %v115_v0 = vadd.f32 %v114_v2, %v113_v36  ;;  %v229_v44 = vmul.f32 %v514_v21, %v514_v21  ;;  %v230_v57 = vmul.f32 %v519_v22, %v519_v22 }
  0x22   :  { %1391 = vst [vmem:[#allocation54_spill] sm:$0xff] %v971_v7  ;;  %v231_v7 = vmul.f32 %v524_v23, %v524_v23  ;;  %v232_v13 = vmul.f32 %v718_v14, %v718_v14  ;;  %v989_v16 = vmul.f32 %v30_v4, %v30_v4  ;;  %v991_v2 = vmul.f32 %v31_v9, %v31_v9 }
  0x23   :  { %v117_v36 = vadd.f32 %v116_v45, %v115_v0  ;;  %v253_v18 = vmul.f32 %v533_v27, %v533_v27  ;;  %v254_v19 = vmul.f32 %v538_v28, %v538_v28  ;;  %v255_v21 = vmul.f32 %v543_v29, %v543_v29 }
  0x24   :  { %v256_v22 = vmul.f32 %v556_v33, %v556_v33  ;;  %v257_v23 = vmul.f32 %v561_v34, %v561_v34  ;;  %v258_v45 = vmul.f32 %v566_v35, %v566_v35  ;;  %v259_v4 = vmul.f32 %v583_v40, %v583_v40 }
  0x25   :  { %v119_v0 = vadd.f32 %v118_v24, %v117_v36  ;;  %v260_v27 = vmul.f32 %v588_v41, %v588_v41  ;;  %v261_v28 = vmul.f32 %v593_v42, %v593_v42  ;;  %v262_v29 = vmul.f32 %v610_v46, %v610_v46 }
  0x26   :  { %v263_v33 = vmul.f32 %v615_v47, %v615_v47  ;;  %v284_v34 = vsel %vm82_vm1, %v220_v63, 0.0  ;;  %v285_v35 = vsel %vm82_vm1, %v221_v31, 0.0  ;;  %v264_v40 = vmul.f32 %v620_v48, %v620_v48 }
  0x27   :  { %v121_v9 = vadd.f32 %v120_v39, %v119_v0  ;;  %v286_v14 = vadd.f32 %v285_v35, %v284_v34  ;;  %v287_v41 = vsel %vm82_vm1, %v222_v37, 0.0  ;;  %v265_v42 = vmul.f32 %v637_v53, %v637_v53  ;;  %v1392_v0 = vld [vmem:[#allocation26_spill] sm:$0xff] }
  0x28   :  { %v266_v46 = vmul.f32 %v642_v54, %v642_v54  ;;  %v267_v47 = vmul.f32 %v647_v55, %v647_v55  ;;  %v289_v63 = vsel %vm82_vm1, %v223_v25, 0.0  ;;  %v268_v39 = vmul.f32 %v664_v59, %v664_v59  ;;  %v1393_v34 = vld [vmem:[#allocation30_spill] sm:$0xff] }
  0x29   :  { %v123_v24 = vadd.f32 %v122_v38, %v121_v9  ;;  %v269_v48 = vmul.f32 %v669_v60, %v669_v60  ;;  %v288_v31 = vadd.f32 %v287_v41, %v286_v14  ;;  %v270_v37 = vmul.f32 %v674_v61, %v674_v61  ;;  %v1394_v41 = vld [vmem:[#allocation49_spill] sm:$0xff] }
  0x2a   :  { %v271_v53 = vmul.f32 %v691_v5, %v691_v5  ;;  %v272_v54 = vmul.f32 %v696_v6, %v696_v6  ;;  %v291_v55 = vsel %vm82_vm1, %v224_v52, 0.0  ;;  %v273_v38 = vmul.f32 %v701_v8, %v701_v8 }
  0x2b   :  { %v125_v25 = vadd.f32 %v124_v51, %v123_v24  ;;  %v274_v59 = vmul.f32 %v723_v15, %v723_v15  ;;  %v290_v60 = vadd.f32 %v289_v63, %v288_v31  ;;  %v275_v36 = vmul.f32 %v728_v17, %v728_v17 }
  0x2c   :  { %v276_v61 = vmul.f32 %v733_v20, %v733_v20  ;;  %v277_v5 = vmul.f32 %v750_v49, %v750_v49  ;;  %v293_v6 = vsel %vm82_vm1, %v225_v56, 0.0  ;;  %v278_v52 = vmul.f32 %v755_v30, %v755_v30 }
  0x2d   :  { %v127_v51 = vadd.f32 %v915_v3, %v125_v25  ;;  %v279_v8 = vmul.f32 %v760_v62, %v760_v62  ;;  %v292_v15 = vadd.f32 %v291_v55, %v290_v60  ;;  %v280_v17 = vmul.f32 %v777_v12, %v777_v12  ;;  %v1396_v25 = vld [vmem:[#allocation51_spill] sm:$0xff] }
  0x2e   :  { %v281_v20 = vmul.f32 %v782_v11, %v782_v11  ;;  %v282_v49 = vmul.f32 %v1392_v0, %v1392_v0  ;;  %v295_v56 = vsel %vm82_vm1, %v226_v1, 0.0  ;;  %v283_v30 = vmul.f32 %v1393_v34, %v1393_v34  ;;  %v1398_v34 = vld [vmem:[#allocation54_spill] sm:$0xff] }
  0x2f   :  { %v129_v3 = vadd.f32 %v931_v50, %v127_v51  ;;  %v294_v35 = vadd.f32 %v293_v6, %v292_v15  ;;  %v297_v62 = vsel %vm82_vm1, %v227_v26, 0.0  ;;  %v299_v9 = vsel %vm82_vm1, %v228_v10, 0.0 }
  0x30   :  { %v301_v12 = vsel %vm82_vm1, %v229_v44, 0.0  ;;  %v303_v14 = vsel %vm82_vm1, %v230_v57, 0.0  ;;  %v305_v11 = vsel %vm82_vm1, %v231_v7, 0.0  ;;  %v307_v1 = vsel %vm82_vm1, %v232_v13, 0.0  ;;  %v1395_v7 = vld [vmem:[#allocation50_spill] sm:$0xff] }
  0x31   :  { %v131_v63 = vadd.f32 %v1394_v41, %v129_v3  ;;  %v296_v24 = vadd.f32 %v295_v56, %v294_v35  ;;  %v1072_v50 = vsel %vm82_vm1, %v253_v18, 0.0  ;;  %v1075_v31 = vsel %vm82_vm1, %v254_v19, 0.0  ;;  %v1397_v56 = vld [vmem:[#allocation35_spill] sm:$0xff] }
  0x32   :  { %v1078_v26 = vsel %vm82_vm1, %v255_v21, 0.0  ;;  %v1081_v44 = vsel %vm82_vm1, %v256_v22, 0.0  ;;  %v1084_v57 = vsel %vm82_vm1, %v257_v23, 0.0  ;;  %v1088_v13 = vsel %vm82_vm1, %v258_v45, 0.0 }
  0x33   :  { %v133_v10 = vadd.f32 %v1395_v7, %v131_v63  ;;  %v298_v55 = vadd.f32 %v297_v62, %v296_v24  ;;  %v1091_v18 = vsel %vm82_vm1, %v259_v4, 0.0  ;;  %v1094_v19 = vsel %vm82_vm1, %v260_v27, 0.0  ;;  %v1399_v62 = vld [vmem:[#allocation36_spill] sm:$0xff] }
  0x34   :  { %v1097_v21 = vsel %vm82_vm1, %v261_v28, 0.0  ;;  %v1100_v22 = vsel %vm82_vm1, %v262_v29, 0.0  ;;  %v1103_v23 = vsel %vm82_vm1, %v263_v33, 0.0  ;;  %v1107_v45 = vsel %vm82_vm1, %v264_v40, 0.0 }
  0x35   :  { %v135_v60 = vadd.f32 %v1396_v25, %v133_v10  ;;  %v300_v6 = vadd.f32 %v299_v9, %v298_v55  ;;  %v1110_v4 = vsel %vm82_vm1, %v265_v42, 0.0  ;;  %v1113_v27 = vsel %vm82_vm1, %v266_v46, 0.0  ;;  %v1401_v10 = vld [vmem:[#allocation38_spill] sm:$0xff] }
  0x36   :  { %v1116_v28 = vsel %vm82_vm1, %v267_v47, 0.0  ;;  %v1119_v29 = vsel %vm82_vm1, %v268_v39, 0.0  ;;  %v1122_v33 = vsel %vm82_vm1, %v269_v48, 0.0  ;;  %v1126_v40 = vsel %vm82_vm1, %v270_v37, 0.0  ;;  %v1402_v25 = vld [vmem:[#allocation2_spill] sm:$0xff] }
  0x37   :  { %v137_v51 = vadd.f32 %v957_v58, %v135_v60  ;;  %v302_v15 = vadd.f32 %v301_v12, %v300_v6  ;;  %v1129_v42 = vsel %vm82_vm1, %v271_v53, 0.0  ;;  %v1132_v46 = vsel %vm82_vm1, %v272_v54, 0.0 }
  0x38   :  { %v1135_v47 = vsel %vm82_vm1, %v273_v38, 0.0  ;;  %v1138_v39 = vsel %vm82_vm1, %v274_v59, 0.0  ;;  %v1141_v48 = vsel %vm82_vm1, %v275_v36, 0.0  ;;  %v1145_v37 = vsel %vm82_vm1, %v276_v61, 0.0 }
  0x39   :  { %v139_v58 = vadd.f32 %v961_v32, %v137_v51  ;;  %v304_v0 = vadd.f32 %v303_v14, %v302_v15  ;;  %v1148_v53 = vsel %vm82_vm1, %v277_v5, 0.0  ;;  %v1151_v54 = vsel %vm82_vm1, %v278_v52, 0.0  ;;  %v1165_v32 = vld [vmem:[%s1318_s0 + $0xf8] sm:$0xff]  ;;  %v1403_v51 = vld [vmem:[#allocation39_spill] sm:$0xff] }
  0x3a   :  { %v1154_v38 = vsel %vm82_vm1, %v279_v8, 0.0  ;;  %v1157_v59 = vsel %vm82_vm1, %v280_v17, 0.0  ;;  %v1160_v36 = vsel %vm82_vm1, %v281_v20, 0.0  ;;  %v1169_v52 = vsel %vm82_vm1, %v282_v49, 0.0 }
  0x3b   :  { %v141_v61 = vadd.f32 %v967_v43, %v139_v58  ;;  %v306_v5 = vadd.f32 %v305_v11, %v304_v0  ;;  %v1172_v8 = vsel %vm82_vm1, %v283_v30, 0.0  ;;  %v144_v17 = vsel %vm82_vm1, %v1165_v32, 0.0  ;;  %v1183_v43 = vld [vmem:[%s1318_s0 + $0x100] sm:$0xff]  ;;  %v1404_v58 = vld [vmem:[#allocation3_spill] sm:$0xff] }
  0x3c   :  { %v235_v20 = vmul.f32 %v1397_v56, %v1397_v56  ;;  %v309_v3 = vsel %vm82_vm1, %v989_v16, 0.0  ;;  %v146_v30 = vsel %vm82_vm1, %v1183_v43, 0.0  ;;  %v236_v9 = vmul.f32 %v1399_v62, %v1399_v62  ;;  %v1400_v16 = vld [vmem:[#allocation37_spill] sm:$0xff] }
  0x3d   :  { %v143_v49 = vadd.f32 %v1398_v34, %v141_v61  ;;  %v308_v35 = vadd.f32 %v307_v1, %v306_v5  ;;  %v311_v12 = vsel %vm82_vm1, %v991_v2, 0.0  ;;  %v237_v41 = vmul.f32 %v1400_v16, %v1400_v16  ;;  %v1405_v5 = vld [vmem:[#allocation40_spill] sm:$0xff]  ;;  %v1408_v62 = vld [vmem:[#allocation5_spill] sm:$0xff] }
  0x3e   :  { %v313_v63 = vsel %vm82_vm1, %v235_v20, 0.0  ;;  %v238_v1 = vmul.f32 %v1401_v10, %v1401_v10  ;;  %v315_v55 = vsel %vm82_vm1, %v236_v9, 0.0  ;;  %v239_v2 = vmul.f32 %v1403_v51, %v1403_v51  ;;  %v1406_v20 = vld [vmem:[#allocation4_spill] sm:$0xff] }
  0x3f   :  { %v145_v14 = vadd.f32 %v144_v17, %v143_v49  ;;  %v310_v11 = vadd.f32 %v309_v3, %v308_v35  ;;  %v317_v15 = vsel %vm82_vm1, %v237_v41, 0.0  ;;  %v240_v17 = vmul.f32 %v1405_v5, %v1405_v5  ;;  %v1407_v49 = vld [vmem:[#allocation41_spill] sm:$0xff]  ;;  %v1410_v41 = vld [vmem:[#allocation6_spill] sm:$0xff] }
  0x40   :  { %v319_v56 = vsel %vm82_vm1, %v238_v1, 0.0  ;;  %v241_v35 = vmul.f32 %v1407_v49, %v1407_v49 }
  0x41   :  { %v147_v24 = vadd.f32 %v146_v30, %v145_v14  ;;  %v312_v7 = vadd.f32 %v311_v12, %v310_v11  ;;  %v321_v30 = vsel %vm82_vm1, %v239_v2, 0.0  ;;  %v1409_v14 = vld [vmem:[#allocation42_spill] sm:$0xff]  ;;  %v323_v16 = vsel %vm82_vm1, %v240_v17, 0.0 }
  0x42   :  { %v242_v11 = vmul.f32 %v1409_v14, %v1409_v14  ;;  %v325_v1 = vsel %vm82_vm1, %v241_v35, 0.0 }
  0x43   :  { %v149_v60 = vadd.f32 %v1402_v25, %v147_v24  ;;  %v314_v6 = vadd.f32 %v313_v63, %v312_v7  ;;  %v1411_v7 = vld [vmem:[#allocation43_spill] sm:$0xff] }
  0x44   :  { %v243_v10 = vmul.f32 %v1411_v7, %v1411_v7  ;;  %v327_v2 = vsel %vm82_vm1, %v242_v11, 0.0 }
  0x45   :  { %v151_v0 = vadd.f32 %v1404_v58, %v149_v60  ;;  %v316_v61 = vadd.f32 %v315_v55, %v314_v6  ;;  %v1412_v55 = vld [vmem:[#allocation7_spill] sm:$0xff]  ;;  %v1413_v6 = vld [vmem:[#allocation44_spill] sm:$0xff] }
  0x46   :  { %v244_v51 = vmul.f32 %v1413_v6, %v1413_v6  ;;  %v329_v17 = vsel %vm82_vm1, %v243_v10, 0.0 }
  0x47   :  { %v153_v3 = vadd.f32 %v1406_v20, %v151_v0  ;;  %v318_v34 = vadd.f32 %v317_v15, %v316_v61  ;;  %v1414_v15 = vld [vmem:[#allocation8_spill] sm:$0xff]  ;;  %v1415_v61 = vld [vmem:[#allocation45_spill] sm:$0xff] }
  0x48   :  { %v245_v5 = vmul.f32 %v1415_v61, %v1415_v61  ;;  %v331_v35 = vsel %vm82_vm1, %v244_v51, 0.0 }
  0x49   :  { %v155_v9 = vadd.f32 %v1408_v62, %v153_v3  ;;  %v320_v12 = vadd.f32 %v319_v56, %v318_v34  ;;  %v1416_v56 = vld [vmem:[#allocation9_spill] sm:$0xff]  ;;  %v1417_v34 = vld [vmem:[#allocation46_spill] sm:$0xff] }
  0x4a   :  { %v246_v49 = vmul.f32 %v1417_v34, %v1417_v34  ;;  %v333_v11 = vsel %vm82_vm1, %v245_v5, 0.0 }
  0x4b   :  { %v157_v63 = vadd.f32 %v1410_v41, %v155_v9  ;;  %v322_v24 = vadd.f32 %v321_v30, %v320_v12  ;;  %v1418_v30 = vld [vmem:[#allocation10_spill] sm:$0xff]  ;;  %v1419_v12 = vld [vmem:[#allocation47_spill] sm:$0xff] }
  0x4c   :  { %v247_v14 = vmul.f32 %v1419_v12, %v1419_v12  ;;  %v335_v10 = vsel %vm82_vm1, %v246_v49, 0.0  ;;  %v1427_v49 = vld [vmem:[#allocation15_spill] sm:$0xff]  ;;  %v1428_v12 = vld [vmem:[#allocation16_spill] sm:$0xff] }
  0x4d   :  { %v159_v25 = vadd.f32 %v1412_v55, %v157_v63  ;;  %v324_v60 = vadd.f32 %v323_v16, %v322_v24  ;;  %v1420_v16 = vld [vmem:[#allocation11_spill] sm:$0xff]  ;;  %v1421_v24 = vld [vmem:[#allocation48_spill] sm:$0xff] }
  0x4e   :  { %v248_v7 = vmul.f32 %v1421_v24, %v1421_v24  ;;  %v337_v51 = vsel %vm82_vm1, %v247_v14, 0.0 }
  0x4f   :  { %v161_v58 = vadd.f32 %v1414_v15, %v159_v25  ;;  %v326_v0 = vadd.f32 %v325_v1, %v324_v60  ;;  %v1422_v1 = vld [vmem:[#allocation12_spill] sm:$0xff] }
  0x50   :  { %v1423_v60 = vld [vmem:[#allocation52_spill] sm:$0xff]  ;;  %v339_v5 = vsel %vm82_vm1, %v248_v7, 0.0  ;;  %v1430_v7 = vld [vmem:[#allocation18_spill] sm:$0xff] }
  0x51   :  { %v163_v20 = vadd.f32 %v1416_v56, %v161_v58  ;;  %v328_v3 = vadd.f32 %v327_v2, %v326_v0  ;;  %v249_v6 = vmul.f32 %v1423_v60, %v1423_v60  ;;  %v1424_v2 = vld [vmem:[#allocation13_spill] sm:$0xff] }
  0x52   :  { %v1425_v0 = vld [vmem:[#allocation53_spill] sm:$0xff] }
  0x53   :  { %v165_v62 = vadd.f32 %v1418_v30, %v163_v20  ;;  %v330_v9 = vadd.f32 %v329_v17, %v328_v3  ;;  %v250_v61 = vmul.f32 %v1425_v0, %v1425_v0  ;;  %v1426_v17 = vld [vmem:[#allocation14_spill] sm:$0xff]  ;;  %v251_v3 = vmul.f32 %v1165_v32, %v1165_v32 }
  0x54   :  { %v341_v34 = vsel %vm82_vm1, %v249_v6, 0.0  ;;  %v1432_v6 = vld [vmem:[#allocation20_spill] sm:$0xff]  ;;  %v1434_v0 = vld [vmem:[#allocation22_spill] sm:$0xff] }
  0x55   :  { %v167_v41 = vadd.f32 %v1420_v16, %v165_v62  ;;  %v332_v63 = vadd.f32 %v331_v35, %v330_v9  ;;  %v252_v62 = vmul.f32 %v1183_v43, %v1183_v43  ;;  %v343_v9 = vsel %vm82_vm1, %v250_v61, 0.0 }
  0x56   :  { %v345_v16 = vsel %vm82_vm1, %v251_v3, 0.0  ;;  %v1436_v3 = vld [vmem:[#allocation24_spill] sm:$0xff] }
  0x57   :  { %v169_v55 = vadd.f32 %v1422_v1, %v167_v41  ;;  %v334_v25 = vadd.f32 %v333_v11, %v332_v63  ;;  %v1429_v41 = vld [vmem:[#allocation17_spill] sm:$0xff]  ;;  %v347_v32 = vsel %vm82_vm1, %v252_v62, 0.0  ;;  %v1438_v62 = vld [vmem:[#allocation27_spill] sm:$0xff] }
  0x59   :  { %v171_v15 = vadd.f32 %v1424_v2, %v169_v55  ;;  %v336_v58 = vadd.f32 %v335_v10, %v334_v25  ;;  %v1431_v55 = vld [vmem:[#allocation19_spill] sm:$0xff]  ;;  %v1433_v2 = vld [vmem:[#allocation21_spill] sm:$0xff] }
  0x5b   :  { %v173_v56 = vadd.f32 %v1426_v17, %v171_v15  ;;  %v338_v20 = vadd.f32 %v337_v51, %v336_v58  ;;  %v1435_v17 = vld [vmem:[#allocation23_spill] sm:$0xff] }
  0x5d   :  { %v175_v35 = vadd.f32 %v1427_v49, %v173_v56  ;;  %v340_v30 = vadd.f32 %v339_v5, %v338_v20 }
  0x5f   :  { %v177_v14 = vadd.f32 %v1428_v12, %v175_v35  ;;  %v342_v11 = vadd.f32 %v341_v34, %v340_v30  ;;  %v1437_v35 = vld [vmem:[#allocation25_spill] sm:$0xff]  ;;  %v1439_v12 = vld [vmem:[#allocation28_spill] sm:$0xff] }
  0x61   :  { %v179_v63 = vadd.f32 %v1429_v41, %v177_v14  ;;  %v344_v24 = vadd.f32 %v343_v9, %v342_v11  ;;  %v1440_v11 = vld [vmem:[#allocation29_spill] sm:$0xff]  ;;  %v1441_v41 = vld [vmem:[#allocation31_spill] sm:$0xff] }
  0x63   :  { %v181_v10 = vadd.f32 %v1430_v7, %v179_v63  ;;  %v346_v1 = vadd.f32 %v345_v16, %v344_v24  ;;  %v1442_v24 = vld [vmem:[#allocation32_spill] sm:$0xff]  ;;  %v1443_v7 = vld [vmem:[#allocation33_spill] sm:$0xff] }
  0x65   :  { %v183_v25 = vadd.f32 %v1431_v55, %v181_v10  ;;  %v348_v60 = vadd.f32 %v347_v32, %v346_v1  ;;  %v1444_v1 = vld [vmem:[#allocation34_spill] sm:$0xff] }
  0x67   :  { %v185_v43 = vadd.f32 %v1432_v6, %v183_v25  ;;  %v350_v51 = vadd.f32 %v1072_v50, %v348_v60 }
  0x69   :  { %v187_v15 = vadd.f32 %v1433_v2, %v185_v43  ;;  %v352_v58 = vadd.f32 %v1075_v31, %v350_v51 }
  0x6b   :  { %v189_v61 = vadd.f32 %v1434_v0, %v187_v15  ;;  %v354_v5 = vadd.f32 %v1078_v26, %v352_v58 }
  0x6d   :  { %v191_v56 = vadd.f32 %v1435_v17, %v189_v61  ;;  %v356_v20 = vadd.f32 %v1081_v44, %v354_v5 }
  0x6f   :  { %v193_v34 = vadd.f32 %v1436_v3, %v191_v56  ;;  %v358_v49 = vadd.f32 %v1084_v57, %v356_v20 }
  0x71   :  { %v195_v30 = vadd.f32 %v1437_v35, %v193_v34  ;;  %v360_v50 = vadd.f32 %v1088_v13, %v358_v49 }
  0x73   :  { %v197_v9 = vadd.f32 %v1438_v62, %v195_v30  ;;  %v362_v31 = vadd.f32 %v1091_v18, %v360_v50 }
  0x75   :  { %v199_v14 = vadd.f32 %v1439_v12, %v197_v9  ;;  %v364_v26 = vadd.f32 %v1094_v19, %v362_v31 }
  0x77   :  { %v201_v16 = vadd.f32 %v1440_v11, %v199_v14  ;;  %v366_v44 = vadd.f32 %v1097_v21, %v364_v26 }
  0x79   :  { %v203_v63 = vadd.f32 %v1441_v41, %v201_v16  ;;  %v368_v57 = vadd.f32 %v1100_v22, %v366_v44 }
  0x7b   :  { %v205_v32 = vadd.f32 %v1442_v24, %v203_v63  ;;  %v370_v13 = vadd.f32 %v1103_v23, %v368_v57 }
  0x7d   :  { %v207_v10 = vadd.f32 %v1443_v7, %v205_v32  ;;  %v372_v18 = vadd.f32 %v1107_v45, %v370_v13  ;;  %v81_v45 = vld [vmem:[%s1319_s1] sm:$0x1] }
  0x7f   :  { %v209_v55 = vadd.f32 %v1444_v1, %v207_v10  ;;  %v374_v19 = vadd.f32 %v1110_v4, %v372_v18 }
  0x81   :  { %v210_v25 = vrot.slane %v209_v55, 4  ;;  %v376_v60 = vadd.f32 %v1113_v27, %v374_v19 }
  0x83   :  { %v211_v21 = vadd.f32 %v210_v25, %v209_v55  ;;  %v378_v6 = vadd.f32 %v1116_v28, %v376_v60 }
  0x85   :  { %v212_v43 = vrot.slane %v211_v21, 2  ;;  %v380_v22 = vadd.f32 %v1119_v29, %v378_v6 }
  0x87   :  { %v213_v51 = vadd.f32 %v212_v43, %v211_v21  ;;  %v382_v23 = vadd.f32 %v1122_v33, %v380_v22 }
  0x89   :  { %v214_v2 = vrot.slane %v213_v51, 1  ;;  %v384_v15 = vadd.f32 %v1126_v40, %v382_v23 }
  0x8b   :  { %v215_v4 = vadd.f32 %v214_v2, %v213_v51  ;;  %v386_v58 = vadd.f32 %v1129_v42, %v384_v15 }
  0x8d   :  { %v216_v27 = vadd.f32 %v215_v4, %v81_v45  ;;  %v388_v0 = vadd.f32 %v1132_v46, %v386_v58 }
  0x8f   :  { %218 = vst.msk [vmem:[%s1319_s1] sm:$0x1] %vm14_vm0, %v216_v27  ;;  %v390_v28 = vadd.f32 %v1135_v47, %v388_v0 }
  0x91   :  { %v392_v29 = vadd.f32 %v1138_v39, %v390_v28 }
  0x93   :  { %v394_v33 = vadd.f32 %v1141_v48, %v392_v29 }
  0x95   :  { %v396_v40 = vadd.f32 %v1145_v37, %v394_v33  ;;  %v219_v37 = vld [vmem:[%s1320_s2] sm:$0x1] }
  0x97   :  { %v398_v61 = vadd.f32 %v1148_v53, %v396_v40 }
  0x99   :  { %v400_v42 = vadd.f32 %v1151_v54, %v398_v61 }
  0x9b   :  { %v402_v5 = vadd.f32 %v1154_v38, %v400_v42 }
  0x9d   :  { %v404_v46 = vadd.f32 %v1157_v59, %v402_v5 }
  0x9f   :  { %v406_v17 = vadd.f32 %v1160_v36, %v404_v46 }
  0xa1   :  { %v408_v56 = vadd.f32 %v1169_v52, %v406_v17 }
  0xa3   :  { %v410_v47 = vadd.f32 %v1172_v8, %v408_v56 }
  0xa5   :  { %v411_v20 = vrot.slane %v410_v47, 4 }
  0xa7   :  { %v412_v39 = vadd.f32 %v411_v20, %v410_v47 }
  0xa9   :  { %v413_v3 = vrot.slane %v412_v39, 2 }
  0xab   :  { %v414_v48 = vadd.f32 %v413_v3, %v412_v39 }
  0xad   :  { %v415_v34 = vrot.slane %v414_v48, 1 }
  0xaf   :  { %v416_v53 = vadd.f32 %v415_v34, %v414_v48 }
  0xb1   :  { %v417_v54 = vadd.f32 %v416_v53, %v219_v37 }
  0xb3   :  { %418 = vst.msk [vmem:[%s1320_s2] sm:$0x1] %vm14_vm0, %v417_v54 }

// kernel: _lambda_.73
= control target key start
LH: loop header
LB: loop body
LE: loop exit
PB: predicated region body
PF: predicated region fallthrough
CT: control target
= control target key end

     0   :  { %vm220_vm0 = vcmask 64512   ;;  %s897_s0 = inlined_call_operand.vmem [shape: f32[512,8], index: 0, kind: input, shape index: {}]   ;;  %s898_s1 = inlined_call_operand.vmem [shape: f32[1,8], index: 1, kind: input, shape index: {}]   ;;  %s899_s2 = inlined_call_operand.vmem [shape: f32[1,8], index: 2, kind: input, shape index: {}]   ;;  %s900_s3 = inlined_call_operand.vmem [shape: f32[512,8], index: 3, kind: output, shape index: {}]  }
   0x1   :  { %v14_v0 = vld [vmem:[%s897_s0] sm:$0xff]  ;;  %v15_v4 = vld [vmem:[%s897_s0 + $0x8] sm:$0xff]  ;;  %v16_v5 = vld [vmem:[%s897_s0 + $0x10] sm:$0xff] }
   0x2   :  { %v317_v1 = vld [vmem:[%s898_s1] ss:$0 sm:$0xff]  ;;  %v17_v6 = vld [vmem:[%s897_s0 + $0x18] sm:$0xff]  ;;  %v19_v11 = vld [vmem:[%s897_s0 + $0x28] sm:$0xff] }
   0x3   :  { %v322_v2 = vld [vmem:[%s899_s2] ss:$0 sm:$0xff]  ;;  %v85_v3 = vmul.f32 %v317_v1, %v14_v0  ;;  %v86_v7 = vmul.f32 %v317_v1, %v15_v4  ;;  %v87_v8 = vmul.f32 %v317_v1, %v16_v5  ;;  %v88_v9 = vmul.f32 %v317_v1, %v17_v6  ;;  %v20_v12 = vld [vmem:[%s897_s0 + $0x30] sm:$0xff]  ;;  %v21_v17 = vld [vmem:[%s897_s0 + $0x38] sm:$0xff] }
   0x4   :  { %v18_v10 = vld [vmem:[%s897_s0 + $0x20] sm:$0xff]  ;;  %v90_v15 = vmul.f32 %v317_v1, %v19_v11  ;;  %v91_v16 = vmul.f32 %v317_v1, %v20_v12  ;;  %v23_v19 = vld [vmem:[%s897_s0 + $0x48] sm:$0xff]  ;;  %v92_v23 = vmul.f32 %v317_v1, %v21_v17  ;;  %v24_v24 = vld [vmem:[%s897_s0 + $0x50] sm:$0xff] }
   0x5   :  { %v156_v13 = vadd.f32 %v322_v2, %v85_v3  ;;  %v89_v14 = vmul.f32 %v317_v1, %v18_v10  ;;  %v22_v18 = vld [vmem:[%s897_s0 + $0x40] sm:$0xff]  ;;  %v157_v20 = vadd.f32 %v322_v2, %v86_v7  ;;  %v158_v21 = vadd.f32 %v322_v2, %v87_v8  ;;  %v25_v25 = vld [vmem:[%s897_s0 + $0x58] sm:$0xff]  ;;  %v27_v31 = vld [vmem:[%s897_s0 + $0x68] sm:$0xff] }
   0x6   :  { %v159_v22 = vadd.f32 %v322_v2, %v88_v9  ;;  %v26_v26 = vld [vmem:[%s897_s0 + $0x60] sm:$0xff]  ;;  %v161_v28 = vadd.f32 %v322_v2, %v90_v15  ;;  %v162_v29 = vadd.f32 %v322_v2, %v91_v16  ;;  %v93_v30 = vmul.f32 %v317_v1, %v22_v18  ;;  %v28_v32 = vld [vmem:[%s897_s0 + $0x70] sm:$0xff]  ;;  %v29_v33 = vld [vmem:[%s897_s0 + $0x78] sm:$0xff] }
   0x7   :  { %221 = vst.msk [vmem:[%s900_s3] sm:$0xff] %vm220_vm0, %v156_v13  ;;  %v160_v27 = vadd.f32 %v322_v2, %v89_v14  ;;  %222 = vst.msk [vmem:[%s900_s3 + $0x8] sm:$0xff] %vm220_vm0, %v157_v20  ;;  %v163_v34 = vadd.f32 %v322_v2, %v92_v23  ;;  %v94_v35 = vmul.f32 %v317_v1, %v23_v19  ;;  %v30_v38 = vld [vmem:[%s897_s0 + $0x80] sm:$0xff]  ;;  %v31_v43 = vld [vmem:[%s897_s0 + $0x88] sm:$0xff] }
   0x8   :  { %223 = vst.msk [vmem:[%s900_s3 + $0x10] sm:$0xff] %vm220_vm0, %v158_v21  ;;  %224 = vst.msk [vmem:[%s900_s3 + $0x18] sm:$0xff] %vm220_vm0, %v159_v22  ;;  %v95_v36 = vmul.f32 %v317_v1, %v24_v24  ;;  %v96_v37 = vmul.f32 %v317_v1, %v25_v25  ;;  %v164_v39 = vadd.f32 %v322_v2, %v93_v30  ;;  %v32_v44 = vld [vmem:[%s897_s0 + $0x90] sm:$0xff]  ;;  %v33_v45 = vld [vmem:[%s897_s0 + $0x98] sm:$0xff] }
   0x9   :  { %225 = vst.msk [vmem:[%s900_s3 + $0x20] sm:$0xff] %vm220_vm0, %v160_v27  ;;  %226 = vst.msk [vmem:[%s900_s3 + $0x28] sm:$0xff] %vm220_vm0, %v161_v28  ;;  %v97_v40 = vmul.f32 %v317_v1, %v26_v26  ;;  %v98_v41 = vmul.f32 %v317_v1, %v27_v31  ;;  %v99_v42 = vmul.f32 %v317_v1, %v28_v32  ;;  %v34_v50 = vld [vmem:[%s897_s0 + $0xa0] sm:$0xff]  ;;  %v35_v51 = vld [vmem:[%s897_s0 + $0xa8] sm:$0xff] }
   0xa   :  { %227 = vst.msk [vmem:[%s900_s3 + $0x30] sm:$0xff] %vm220_vm0, %v162_v29  ;;  %228 = vst.msk [vmem:[%s900_s3 + $0x38] sm:$0xff] %vm220_vm0, %v163_v34  ;;  %v165_v46 = vadd.f32 %v322_v2, %v94_v35  ;;  %v166_v47 = vadd.f32 %v322_v2, %v95_v36  ;;  %v167_v48 = vadd.f32 %v322_v2, %v96_v37  ;;  %v36_v52 = vld [vmem:[%s897_s0 + $0xb0] sm:$0xff]  ;;  %v37_v57 = vld [vmem:[%s897_s0 + $0xb8] sm:$0xff] }
   0xb   :  { %v100_v49 = vmul.f32 %v317_v1, %v29_v33  ;;  %229 = vst.msk [vmem:[%s900_s3 + $0x40] sm:$0xff] %vm220_vm0, %v164_v39  ;;  %v168_v53 = vadd.f32 %v322_v2, %v97_v40  ;;  %v169_v54 = vadd.f32 %v322_v2, %v98_v41  ;;  %v170_v55 = vadd.f32 %v322_v2, %v99_v42  ;;  %v38_v62 = vld [vmem:[%s897_s0 + $0xc0] sm:$0xff]  ;;  %v39_v5 = vld [vmem:[%s897_s0 + $0xc8] sm:$0xff]  ;;  %v40_v6 = vld [vmem:[%s897_s0 + $0xd0] sm:$0xff] }
   0xc   :  { %v101_v56 = vmul.f32 %v317_v1, %v30_v38  ;;  %230 = vst.msk [vmem:[%s900_s3 + $0x48] sm:$0xff] %vm220_vm0, %v165_v46  ;;  %231 = vst.msk [vmem:[%s900_s3 + $0x50] sm:$0xff] %vm220_vm0, %v166_v47  ;;  %v102_v59 = vmul.f32 %v317_v1, %v31_v43  ;;  %v103_v60 = vmul.f32 %v317_v1, %v32_v44  ;;  %v41_v7 = vld [vmem:[%s897_s0 + $0xd8] sm:$0xff]  ;;  %v42_v12 = vld [vmem:[%s897_s0 + $0xe0] sm:$0xff] }
   0xd   :  { %232 = vst.msk [vmem:[%s900_s3 + $0x58] sm:$0xff] %vm220_vm0, %v167_v48  ;;  %v171_v58 = vadd.f32 %v322_v2, %v100_v49  ;;  %v104_v61 = vmul.f32 %v317_v1, %v33_v45  ;;  %233 = vst.msk [vmem:[%s900_s3 + $0x60] sm:$0xff] %vm220_vm0, %v168_v53  ;;  %v105_v0 = vmul.f32 %v317_v1, %v34_v50  ;;  %v43_v13 = vld [vmem:[%s897_s0 + $0xe8] sm:$0xff]  ;;  %v44_v14 = vld [vmem:[%s897_s0 + $0xf0] sm:$0xff] }
   0xe   :  { %234 = vst.msk [vmem:[%s900_s3 + $0x68] sm:$0xff] %vm220_vm0, %v169_v54  ;;  %235 = vst.msk [vmem:[%s900_s3 + $0x70] sm:$0xff] %vm220_vm0, %v170_v55  ;;  %v172_v63 = vadd.f32 %v322_v2, %v101_v56  ;;  %v106_v3 = vmul.f32 %v317_v1, %v35_v51  ;;  %v107_v4 = vmul.f32 %v317_v1, %v36_v52  ;;  %v45_v19 = vld [vmem:[%s897_s0 + $0xf8] sm:$0xff]  ;;  %v46_v24 = vld [vmem:[%s897_s0 + $0x100] sm:$0xff] }
   0xf   :  { %236 = vst.msk [vmem:[%s900_s3 + $0x78] sm:$0xff] %vm220_vm0, %v171_v58  ;;  %v173_v8 = vadd.f32 %v322_v2, %v102_v59  ;;  %v174_v9 = vadd.f32 %v322_v2, %v103_v60  ;;  %v175_v10 = vadd.f32 %v322_v2, %v104_v61  ;;  %v108_v11 = vmul.f32 %v317_v1, %v37_v57  ;;  %v47_v29 = vld [vmem:[%s897_s0 + $0x108] sm:$0xff]  ;;  %v48_v30 = vld [vmem:[%s897_s0 + $0x110] sm:$0xff]  ;;  %v49_v31 = vld [vmem:[%s897_s0 + $0x118] sm:$0xff] }
  0x10   :  { %237 = vst.msk [vmem:[%s900_s3 + $0x80] sm:$0xff] %vm220_vm0, %v172_v63  ;;  %v176_v15 = vadd.f32 %v322_v2, %v105_v0  ;;  %v177_v16 = vadd.f32 %v322_v2, %v106_v3  ;;  %v178_v17 = vadd.f32 %v322_v2, %v107_v4  ;;  %v109_v18 = vmul.f32 %v317_v1, %v38_v62  ;;  %v50_v36 = vld [vmem:[%s897_s0 + $0x120] sm:$0xff]  ;;  %v51_v37 = vld [vmem:[%s897_s0 + $0x128] sm:$0xff]  ;;  %v52_v38 = vld [vmem:[%s897_s0 + $0x130] sm:$0xff] }
  0x11   :  { %238 = vst.msk [vmem:[%s900_s3 + $0x88] sm:$0xff] %vm220_vm0, %v173_v8  ;;  %239 = vst.msk [vmem:[%s900_s3 + $0x90] sm:$0xff] %vm220_vm0, %v174_v9  ;;  %v179_v20 = vadd.f32 %v322_v2, %v108_v11  ;;  %v110_v21 = vmul.f32 %v317_v1, %v39_v5  ;;  %v111_v22 = vmul.f32 %v317_v1, %v40_v6  ;;  %v53_v43 = vld [vmem:[%s897_s0 + $0x138] sm:$0xff]  ;;  %v54_v48 = vld [vmem:[%s897_s0 + $0x140] sm:$0xff] }
  0x12   :  { %240 = vst.msk [vmem:[%s900_s3 + $0x98] sm:$0xff] %vm220_vm0, %v175_v10  ;;  %v112_v23 = vmul.f32 %v317_v1, %v41_v7  ;;  %241 = vst.msk [vmem:[%s900_s3 + $0xa0] sm:$0xff] %vm220_vm0, %v176_v15  ;;  %v180_v25 = vadd.f32 %v322_v2, %v109_v18  ;;  %v113_v26 = vmul.f32 %v317_v1, %v42_v12  ;;  %v55_v53 = vld [vmem:[%s897_s0 + $0x148] sm:$0xff]  ;;  %v56_v54 = vld [vmem:[%s897_s0 + $0x150] sm:$0xff] }
  0x13   :  { %242 = vst.msk [vmem:[%s900_s3 + $0xa8] sm:$0xff] %vm220_vm0, %v177_v16  ;;  %243 = vst.msk [vmem:[%s900_s3 + $0xb0] sm:$0xff] %vm220_vm0, %v178_v17  ;;  %v114_v27 = vmul.f32 %v317_v1, %v43_v13  ;;  %v115_v28 = vmul.f32 %v317_v1, %v44_v14  ;;  %v181_v32 = vadd.f32 %v322_v2, %v110_v21  ;;  %v57_v55 = vld [vmem:[%s897_s0 + $0x158] sm:$0xff]  ;;  %v58_v60 = vld [vmem:[%s897_s0 + $0x160] sm:$0xff] }
  0x14   :  { %244 = vst.msk [vmem:[%s900_s3 + $0xb8] sm:$0xff] %vm220_vm0, %v179_v20  ;;  %v182_v33 = vadd.f32 %v322_v2, %v111_v22  ;;  %v183_v34 = vadd.f32 %v322_v2, %v112_v23  ;;  %v116_v35 = vmul.f32 %v317_v1, %v45_v19  ;;  %245 = vst.msk [vmem:[%s900_s3 + $0xc0] sm:$0xff] %vm220_vm0, %v180_v25  ;;  %v59_v61 = vld [vmem:[%s897_s0 + $0x168] sm:$0xff]  ;;  %v60_v62 = vld [vmem:[%s897_s0 + $0x170] sm:$0xff] }
  0x15   :  { %v184_v39 = vadd.f32 %v322_v2, %v113_v26  ;;  %v185_v40 = vadd.f32 %v322_v2, %v114_v27  ;;  %v186_v41 = vadd.f32 %v322_v2, %v115_v28  ;;  %v117_v42 = vmul.f32 %v317_v1, %v46_v24  ;;  %246 = vst.msk [vmem:[%s900_s3 + $0xc8] sm:$0xff] %vm220_vm0, %v181_v32  ;;  %v61_v5 = vld [vmem:[%s897_s0 + $0x178] sm:$0xff]  ;;  %v62_v10 = vld [vmem:[%s897_s0 + $0x180] sm:$0xff]  ;;  %v63_v15 = vld [vmem:[%s897_s0 + $0x188] sm:$0xff] }
  0x16   :  { %247 = vst.msk [vmem:[%s900_s3 + $0xd0] sm:$0xff] %vm220_vm0, %v182_v33  ;;  %248 = vst.msk [vmem:[%s900_s3 + $0xd8] sm:$0xff] %vm220_vm0, %v183_v34  ;;  %v187_v44 = vadd.f32 %v322_v2, %v116_v35  ;;  %v118_v45 = vmul.f32 %v317_v1, %v47_v29  ;;  %v119_v46 = vmul.f32 %v317_v1, %v48_v30  ;;  %v64_v16 = vld [vmem:[%s897_s0 + $0x190] sm:$0xff]  ;;  %v65_v17 = vld [vmem:[%s897_s0 + $0x198] sm:$0xff] }
  0x17   :  { %v120_v47 = vmul.f32 %v317_v1, %v49_v31  ;;  %249 = vst.msk [vmem:[%s900_s3 + $0xe0] sm:$0xff] %vm220_vm0, %v184_v39  ;;  %250 = vst.msk [vmem:[%s900_s3 + $0xe8] sm:$0xff] %vm220_vm0, %v185_v40  ;;  %v188_v49 = vadd.f32 %v322_v2, %v117_v42  ;;  %v121_v50 = vmul.f32 %v317_v1, %v50_v36  ;;  %v66_v22 = vld [vmem:[%s897_s0 + $0x1a0] sm:$0xff]  ;;  %v67_v23 = vld [vmem:[%s897_s0 + $0x1a8] sm:$0xff] }
  0x18   :  { %251 = vst.msk [vmem:[%s900_s3 + $0xf0] sm:$0xff] %vm220_vm0, %v186_v41  ;;  %v122_v51 = vmul.f32 %v317_v1, %v51_v37  ;;  %v123_v52 = vmul.f32 %v317_v1, %v52_v38  ;;  %252 = vst.msk [vmem:[%s900_s3 + $0xf8] sm:$0xff] %vm220_vm0, %v187_v44  ;;  %v189_v56 = vadd.f32 %v322_v2, %v118_v45  ;;  %v68_v24 = vld [vmem:[%s897_s0 + $0x1b0] sm:$0xff]  ;;  %v69_v29 = vld [vmem:[%s897_s0 + $0x1b8] sm:$0xff] }
  0x19   :  { %v190_v57 = vadd.f32 %v322_v2, %v119_v46  ;;  %v191_v58 = vadd.f32 %v322_v2, %v120_v47  ;;  %v124_v59 = vmul.f32 %v317_v1, %v53_v43  ;;  %253 = vst.msk [vmem:[%s900_s3 + $0x100] sm:$0xff] %vm220_vm0, %v188_v49  ;;  %v192_v63 = vadd.f32 %v322_v2, %v121_v50  ;;  %v70_v34 = vld [vmem:[%s897_s0 + $0x1c0] sm:$0xff]  ;;  %v71_v39 = vld [vmem:[%s897_s0 + $0x1c8] sm:$0xff]  ;;  %v72_v40 = vld [vmem:[%s897_s0 + $0x1d0] sm:$0xff] }
  0x1a   :  { %v193_v0 = vadd.f32 %v322_v2, %v122_v51  ;;  %v194_v3 = vadd.f32 %v322_v2, %v123_v52  ;;  %v125_v4 = vmul.f32 %v317_v1, %v54_v48  ;;  %254 = vst.msk [vmem:[%s900_s3 + $0x108] sm:$0xff] %vm220_vm0, %v189_v56  ;;  %v126_v7 = vmul.f32 %v317_v1, %v55_v53  ;;  %v73_v41 = vld [vmem:[%s897_s0 + $0x1d8] sm:$0xff]  ;;  %v74_v46 = vld [vmem:[%s897_s0 + $0x1e0] sm:$0xff]  ;;  %v75_v47 = vld [vmem:[%s897_s0 + $0x1e8] sm:$0xff] }
  0x1b   :  { %255 = vst.msk [vmem:[%s900_s3 + $0x110] sm:$0xff] %vm220_vm0, %v190_v57  ;;  %256 = vst.msk [vmem:[%s900_s3 + $0x118] sm:$0xff] %vm220_vm0, %v191_v58  ;;  %v195_v6 = vadd.f32 %v322_v2, %v124_v59  ;;  %v127_v8 = vmul.f32 %v317_v1, %v56_v54  ;;  %v128_v9 = vmul.f32 %v317_v1, %v57_v55  ;;  %v76_v48 = vld [vmem:[%s897_s0 + $0x1f0] sm:$0xff]  ;;  %v77_v53 = vld [vmem:[%s897_s0 + $0x1f8] sm:$0xff] }
  0x1c   :  { %257 = vst.msk [vmem:[%s900_s3 + $0x120] sm:$0xff] %vm220_vm0, %v192_v63  ;;  %258 = vst.msk [vmem:[%s900_s3 + $0x128] sm:$0xff] %vm220_vm0, %v193_v0  ;;  %v196_v11 = vadd.f32 %v322_v2, %v125_v4  ;;  %v129_v12 = vmul.f32 %v317_v1, %v58_v60  ;;  %v130_v13 = vmul.f32 %v317_v1, %v59_v61 }
  0x1d   :  { %259 = vst.msk [vmem:[%s900_s3 + $0x130] sm:$0xff] %vm220_vm0, %v194_v3  ;;  %v131_v14 = vmul.f32 %v317_v1, %v60_v62  ;;  %260 = vst.msk [vmem:[%s900_s3 + $0x138] sm:$0xff] %vm220_vm0, %v195_v6  ;;  %v197_v18 = vadd.f32 %v322_v2, %v126_v7  ;;  %v198_v19 = vadd.f32 %v322_v2, %v127_v8 }
  0x1e   :  { %v199_v20 = vadd.f32 %v322_v2, %v128_v9  ;;  %v132_v21 = vmul.f32 %v317_v1, %v61_v5  ;;  %261 = vst.msk [vmem:[%s900_s3 + $0x140] sm:$0xff] %vm220_vm0, %v196_v11  ;;  %v200_v25 = vadd.f32 %v322_v2, %v129_v12  ;;  %v201_v26 = vadd.f32 %v322_v2, %v130_v13 }
  0x1f   :  { %v202_v27 = vadd.f32 %v322_v2, %v131_v14  ;;  %v133_v28 = vmul.f32 %v317_v1, %v62_v10  ;;  %262 = vst.msk [vmem:[%s900_s3 + $0x148] sm:$0xff] %vm220_vm0, %v197_v18  ;;  %263 = vst.msk [vmem:[%s900_s3 + $0x150] sm:$0xff] %vm220_vm0, %v198_v19  ;;  %v134_v31 = vmul.f32 %v317_v1, %v63_v15 }
  0x20   :  { %264 = vst.msk [vmem:[%s900_s3 + $0x158] sm:$0xff] %vm220_vm0, %v199_v20  ;;  %v203_v30 = vadd.f32 %v322_v2, %v132_v21  ;;  %v135_v32 = vmul.f32 %v317_v1, %v64_v16  ;;  %v136_v33 = vmul.f32 %v317_v1, %v65_v17  ;;  %265 = vst.msk [vmem:[%s900_s3 + $0x160] sm:$0xff] %vm220_vm0, %v200_v25 }
  0x21   :  { %266 = vst.msk [vmem:[%s900_s3 + $0x168] sm:$0xff] %vm220_vm0, %v201_v26  ;;  %267 = vst.msk [vmem:[%s900_s3 + $0x170] sm:$0xff] %vm220_vm0, %v202_v27  ;;  %v204_v35 = vadd.f32 %v322_v2, %v133_v28  ;;  %v137_v36 = vmul.f32 %v317_v1, %v66_v22  ;;  %v138_v37 = vmul.f32 %v317_v1, %v67_v23 }
  0x22   :  { %v139_v38 = vmul.f32 %v317_v1, %v68_v24  ;;  %268 = vst.msk [vmem:[%s900_s3 + $0x178] sm:$0xff] %vm220_vm0, %v203_v30  ;;  %v205_v42 = vadd.f32 %v322_v2, %v134_v31  ;;  %v206_v43 = vadd.f32 %v322_v2, %v135_v32  ;;  %v207_v44 = vadd.f32 %v322_v2, %v136_v33 }
  0x23   :  { %v140_v45 = vmul.f32 %v317_v1, %v69_v29  ;;  %269 = vst.msk [vmem:[%s900_s3 + $0x180] sm:$0xff] %vm220_vm0, %v204_v35  ;;  %v208_v49 = vadd.f32 %v322_v2, %v137_v36  ;;  %v209_v50 = vadd.f32 %v322_v2, %v138_v37  ;;  %v141_v52 = vmul.f32 %v317_v1, %v70_v34 }
  0x24   :  { %v210_v51 = vadd.f32 %v322_v2, %v139_v38  ;;  %270 = vst.msk [vmem:[%s900_s3 + $0x188] sm:$0xff] %vm220_vm0, %v205_v42  ;;  %271 = vst.msk [vmem:[%s900_s3 + $0x190] sm:$0xff] %vm220_vm0, %v206_v43  ;;  %v142_v55 = vmul.f32 %v317_v1, %v71_v39  ;;  %v143_v56 = vmul.f32 %v317_v1, %v72_v40 }
  0x25   :  { %272 = vst.msk [vmem:[%s900_s3 + $0x198] sm:$0xff] %vm220_vm0, %v207_v44  ;;  %v211_v54 = vadd.f32 %v322_v2, %v140_v45  ;;  %v144_v57 = vmul.f32 %v317_v1, %v73_v41  ;;  %273 = vst.msk [vmem:[%s900_s3 + $0x1a0] sm:$0xff] %vm220_vm0, %v208_v49  ;;  %v212_v58 = vadd.f32 %v322_v2, %v141_v52 }
  0x26   :  { %274 = vst.msk [vmem:[%s900_s3 + $0x1a8] sm:$0xff] %vm220_vm0, %v209_v50  ;;  %275 = vst.msk [vmem:[%s900_s3 + $0x1b0] sm:$0xff] %vm220_vm0, %v210_v51  ;;  %v145_v59 = vmul.f32 %v317_v1, %v74_v46  ;;  %v146_v60 = vmul.f32 %v317_v1, %v75_v47  ;;  %v147_v61 = vmul.f32 %v317_v1, %v76_v48 }
  0x27   :  { %276 = vst.msk [vmem:[%s900_s3 + $0x1b8] sm:$0xff] %vm220_vm0, %v211_v54  ;;  %v213_v62 = vadd.f32 %v322_v2, %v142_v55  ;;  %v214_v63 = vadd.f32 %v322_v2, %v143_v56  ;;  %v215_v0 = vadd.f32 %v322_v2, %v144_v57  ;;  %v148_v3 = vmul.f32 %v317_v1, %v77_v53 }
  0x28   :  { %277 = vst.msk [vmem:[%s900_s3 + $0x1c0] sm:$0xff] %vm220_vm0, %v212_v58  ;;  %v216_v4 = vadd.f32 %v322_v2, %v145_v59  ;;  %v217_v5 = vadd.f32 %v322_v2, %v146_v60  ;;  %v218_v6 = vadd.f32 %v322_v2, %v147_v61 }
  0x29   :  { %278 = vst.msk [vmem:[%s900_s3 + $0x1c8] sm:$0xff] %vm220_vm0, %v213_v62  ;;  %279 = vst.msk [vmem:[%s900_s3 + $0x1d0] sm:$0xff] %vm220_vm0, %v214_v63  ;;  %v219_v1 = vadd.f32 %v322_v2, %v148_v3 }
  0x2a   :  { %280 = vst.msk [vmem:[%s900_s3 + $0x1d8] sm:$0xff] %vm220_vm0, %v215_v0  ;;  %281 = vst.msk [vmem:[%s900_s3 + $0x1e0] sm:$0xff] %vm220_vm0, %v216_v4 }
  0x2b   :  { %282 = vst.msk [vmem:[%s900_s3 + $0x1e8] sm:$0xff] %vm220_vm0, %v217_v5  ;;  %283 = vst.msk [vmem:[%s900_s3 + $0x1f0] sm:$0xff] %vm220_vm0, %v218_v6 }
  0x2c   :  { %284 = vst.msk [vmem:[%s900_s3 + $0x1f8] sm:$0xff] %vm220_vm0, %v219_v1 }

// kernel: _lambda_.74
= control target key start
LH: loop header
LB: loop body
LE: loop exit
PB: predicated region body
PF: predicated region fallthrough
CT: control target
= control target key end

     0   :  { %s1900_s1 = inlined_call_operand.vmem [shape: bf16[128,128], index: 1, kind: input, shape index: {}]   ;;  %s1901_s0 = inlined_call_operand.vmem [shape: bf16[512,128], index: 0, kind: input, shape index: {}]   ;;  %s1902_s2 = inlined_call_operand.vmem [shape: f32[1,128], index: 2, kind: input, shape index: {}]   ;;  %s1903_s3 = inlined_call_operand.vmem [shape: f32[512,128], index: 3, kind: output, shape index: {}]  }
   0x1   :  { %v1331_v0 = vld [vmem:[%s1900_s1] sm:$0xff]   ;;  %v1332_v1 = vld [vmem:[%s1900_s1 + $0x8] sm:$0xff]   ;;  %v1333_v2 = vld [vmem:[%s1900_s1 + $0x10] sm:$0xff]  }
   0x2   :  { %1235 = vmatprep.subr.bf16.mxu0 %v1331_v0  ;;  %1315 = vmatprep.subr.bf16.mxu1 %v1331_v0  ;;  %v1334_v3 = vld [vmem:[%s1900_s1 + $0x18] sm:$0xff]   ;;  %v1339_v4 = vld [vmem:[%s1901_s0] sm:$0xff]   ;;  %v1336_v7 = vld [vmem:[%s1900_s1 + $0x28] sm:$0xff]  }
   0x3   :  { %1236 = vmatpush3.bf16.msra.mxu0 %v1331_v0  ;;  %1323 = vmatpush3.bf16.msra.mxu1 %v1331_v0  ;;  %v1340_v5 = vld [vmem:[%s1901_s0 + $0x80] sm:$0xff]   ;;  %v1337_v8 = vld [vmem:[%s1900_s1 + $0x30] sm:$0xff]   ;;  %v1338_v9 = vld [vmem:[%s1900_s1 + $0x38] sm:$0xff]  }
   0x4   :  { %1237 = vmatprep.subr.bf16.mxu0 %v1332_v1  ;;  %1316 = vmatprep.subr.bf16.mxu1 %v1332_v1  ;;  %v1335_v6 = vld [vmem:[%s1900_s1 + $0x20] sm:$0xff]   ;;  %v1341_v10 = vld [vmem:[%s1901_s0 + $0x8] sm:$0xff]   ;;  %v1343_v12 = vld [vmem:[%s1901_s0 + $0x10] sm:$0xff]  }
   0x5   :  { %1251 = vmatprep.mubr.bf16.mxu0 %v1339_v4  ;;  %1283 = vmatprep.mubr.bf16.mxu1 %v1340_v5  ;;  %v1342_v11 = vld [vmem:[%s1901_s0 + $0x88] sm:$0xff]   ;;  %v1344_v13 = vld [vmem:[%s1901_s0 + $0x90] sm:$0xff]   ;;  %v1345_v14 = vld [vmem:[%s1901_s0 + $0x18] sm:$0xff]  }
   0x6   :  { %v1346_v15 = vld [vmem:[%s1901_s0 + $0x98] sm:$0xff]   ;;  %v1347_v16 = vld [vmem:[%s1901_s0 + $0x20] sm:$0xff]   ;;  %v1349_v18 = vld [vmem:[%s1901_s0 + $0x28] sm:$0xff]  }
   0x7   :  { %1238 = vmatpush3.bf16.msra.mxu0 %v1332_v1  ;;  %1324 = vmatpush3.bf16.msra.mxu1 %v1332_v1  ;;  %v1348_v17 = vld [vmem:[%s1901_s0 + $0xa0] sm:$0xff]   ;;  %v1350_v19 = vld [vmem:[%s1901_s0 + $0xa8] sm:$0xff]   ;;  %v1351_v20 = vld [vmem:[%s1901_s0 + $0x30] sm:$0xff]  }
   0x8   :  { %1239 = vmatprep.subr.bf16.mxu0 %v1333_v2  ;;  %1317 = vmatprep.subr.bf16.mxu1 %v1333_v2  ;;  %v1352_v21 = vld [vmem:[%s1901_s0 + $0xb0] sm:$0xff]   ;;  %v1353_v22 = vld [vmem:[%s1901_s0 + $0x38] sm:$0xff]   ;;  %v1355_v24 = vld [vmem:[%s1901_s0 + $0x40] sm:$0xff]  }
   0x9   :  { %v1354_v23 = vld [vmem:[%s1901_s0 + $0xb8] sm:$0xff]   ;;  %v1356_v25 = vld [vmem:[%s1901_s0 + $0xc0] sm:$0xff]   ;;  %v1357_v26 = vld [vmem:[%s1901_s0 + $0x48] sm:$0xff]  }
   0xa   :  { %v1358_v27 = vld [vmem:[%s1901_s0 + $0xc8] sm:$0xff]   ;;  %v1359_v28 = vld [vmem:[%s1901_s0 + $0x50] sm:$0xff]   ;;  %v1361_v30 = vld [vmem:[%s1901_s0 + $0x58] sm:$0xff]  }
   0xb   :  { %1240 = vmatpush3.bf16.msra.mxu0 %v1333_v2  ;;  %1325 = vmatpush3.bf16.msra.mxu1 %v1333_v2  ;;  %v1360_v29 = vld [vmem:[%s1901_s0 + $0xd0] sm:$0xff]   ;;  %v1362_v31 = vld [vmem:[%s1901_s0 + $0xd8] sm:$0xff]   ;;  %v1363_v32 = vld [vmem:[%s1901_s0 + $0x60] sm:$0xff]  }
   0xc   :  { %1241 = vmatprep.subr.bf16.mxu0 %v1334_v3  ;;  %1318 = vmatprep.subr.bf16.mxu1 %v1334_v3  ;;  %v1364_v33 = vld [vmem:[%s1901_s0 + $0xe0] sm:$0xff]   ;;  %v1365_v34 = vld [vmem:[%s1901_s0 + $0x68] sm:$0xff]   ;;  %v1367_v36 = vld [vmem:[%s1901_s0 + $0x70] sm:$0xff]  }
   0xd   :  { %v1366_v35 = vld [vmem:[%s1901_s0 + $0xe8] sm:$0xff]   ;;  %v1368_v37 = vld [vmem:[%s1901_s0 + $0xf0] sm:$0xff]   ;;  %v1369_v38 = vld [vmem:[%s1901_s0 + $0x78] sm:$0xff]  }
   0xe   :  { %v1370_v39 = vld [vmem:[%s1901_s0 + $0xf8] sm:$0xff]   ;;  %v1642_v40 = vld [vmem:[%s1902_s2] ss:$0 sm:$0xff] }
   0xf   :  { %1242 = vmatpush3.bf16.msra.mxu0 %v1334_v3  ;;  %1326 = vmatpush3.bf16.msra.mxu1 %v1334_v3 }
  0x10   :  { %1243 = vmatprep.subr.bf16.mxu0 %v1335_v6  ;;  %1319 = vmatprep.subr.bf16.mxu1 %v1335_v6 }
  0x13   :  { %1244 = vmatpush3.bf16.msra.mxu0 %v1335_v6  ;;  %1327 = vmatpush3.bf16.msra.mxu1 %v1335_v6 }
  0x14   :  { %1245 = vmatprep.subr.bf16.mxu0 %v1336_v7  ;;  %1320 = vmatprep.subr.bf16.mxu1 %v1336_v7 }
  0x17   :  { %1246 = vmatpush3.bf16.msra.mxu0 %v1336_v7  ;;  %1328 = vmatpush3.bf16.msra.mxu1 %v1336_v7 }
  0x18   :  { %1247 = vmatprep.subr.bf16.mxu0 %v1337_v8  ;;  %1321 = vmatprep.subr.bf16.mxu1 %v1337_v8 }
  0x1b   :  { %1248 = vmatpush3.bf16.msra.mxu0 %v1337_v8  ;;  %1329 = vmatpush3.bf16.msra.mxu1 %v1337_v8 }
  0x1c   :  { %1249 = vmatprep.subr.bf16.mxu0 %v1338_v9  ;;  %1322 = vmatprep.subr.bf16.mxu1 %v1338_v9 }
  0x1f   :  { %1250 = vmatpush3.bf16.msra.mxu0 %v1338_v9  ;;  %1330 = vmatpush3.bf16.msra.mxu1 %v1338_v9 }
  0x22   :  { %1252 = vmatmul.mubr.bf16.vlgmr.msra.gmra.mrb[0].mxu0 %v1341_v10  ;;  %1284 = vmatmul.mubr.bf16.vlgmr.msra.gmra.mrb[0].mxu1 %v1342_v11 }
  0x23   :  { %1255 = vmatprep.mubr.bf16.mxu0 %v1343_v12  ;;  %1287 = vmatprep.mubr.bf16.mxu1 %v1344_v13 }
  0x2a   :  { %1256 = vmatmul.mubr.bf16.gmra.mrb[4].mxu0 %v1345_v14  ;;  %1288 = vmatmul.mubr.bf16.gmra.mrb[4].mxu1 %v1346_v15 }
  0x2b   :  { %1259 = vmatprep.mubr.bf16.mxu0 %v1347_v16  ;;  %1291 = vmatprep.mubr.bf16.mxu1 %v1348_v17 }
  0x32   :  { %1260 = vmatmul.mubr.bf16.gmra.mrb[8].mxu0 %v1349_v18  ;;  %1292 = vmatmul.mubr.bf16.gmra.mrb[8].mxu1 %v1350_v19 }
  0x33   :  { %1263 = vmatprep.mubr.bf16.mxu0 %v1351_v20  ;;  %1295 = vmatprep.mubr.bf16.mxu1 %v1352_v21 }
  0x3a   :  { %1264 = vmatmul.mubr.bf16.gmra.mrb[12].mxu0 %v1353_v22  ;;  %1296 = vmatmul.mubr.bf16.gmra.mrb[12].mxu1 %v1354_v23 }
  0x3b   :  { %1267 = vmatprep.mubr.bf16.mxu0 %v1355_v24  ;;  %1299 = vmatprep.mubr.bf16.mxu1 %v1356_v25 }
  0x42   :  { %1268 = vmatmul.mubr.bf16.gmra.mrb[16].mxu0 %v1357_v26  ;;  %1300 = vmatmul.mubr.bf16.gmra.mrb[16].mxu1 %v1358_v27 }
  0x43   :  { %1271 = vmatprep.mubr.bf16.mxu0 %v1359_v28  ;;  %1303 = vmatprep.mubr.bf16.mxu1 %v1360_v29 }
  0x4a   :  { %1272 = vmatmul.mubr.bf16.gmra.mrb[20].mxu0 %v1361_v30  ;;  %1304 = vmatmul.mubr.bf16.gmra.mrb[20].mxu1 %v1362_v31 }
  0x4b   :  { %1275 = vmatprep.mubr.bf16.mxu0 %v1363_v32  ;;  %1307 = vmatprep.mubr.bf16.mxu1 %v1364_v33 }
  0x52   :  { %1276 = vmatmul.mubr.bf16.gmra.mrb[24].mxu0 %v1365_v34  ;;  %1308 = vmatmul.mubr.bf16.gmra.mrb[24].mxu1 %v1366_v35 }
  0x53   :  { %1279 = vmatprep.mubr.bf16.mxu0 %v1367_v36  ;;  %1311 = vmatprep.mubr.bf16.mxu1 %v1368_v37 }
  0x5a   :  { %1280 = vmatmul.mubr.bf16.gmra.mrb[28].mxu0 %v1369_v38  ;;  %1312 = vmatmul.mubr.bf16.gmra.mrb[28].mxu1 %v1370_v39 }
  0xf5   :  { %v1253_v41 = vpop.f32.mrb[0].mxu0  ;;  %v1285_v42 = vpop.f32.mrb[0].mxu1 }
  0xf6   :  { %v960_v43 = vadd.f32 %v1253_v41, %v1642_v40  ;;  %v992_v44 = vadd.f32 %v1285_v42, %v1642_v40  ;;  %v501_v45 = vpop.f32.mrb[1].mxu0  ;;  %v629_v46 = vpop.f32.mrb[1].mxu1 }
  0xf7   :  { %v958_v47 = vadd.f32 %v1642_v40, %v501_v45  ;;  %v990_v48 = vadd.f32 %v1642_v40, %v629_v46  ;;  %v1254_v49 = vpop.f32.mrb[2].mxu0  ;;  %v1286_v50 = vpop.f32.mrb[2].mxu1 }
  0xf8   :  { %1371 = vtanh.f32 %v960_v43  ;;  %v961_v51 = vadd.f32 %v1254_v49, %v1642_v40  ;;  %v504_v52 = vpop.f32.mrb[3].mxu0  ;;  %v632_v53 = vpop.f32.mrb[3].mxu1  ;;  %v993_v54 = vadd.f32 %v1286_v50, %v1642_v40 }
  0xf9   :  { %1373 = vtanh.f32 %v992_v44  ;;  %v959_v55 = vadd.f32 %v1642_v40, %v504_v52  ;;  %v991_v56 = vadd.f32 %v1642_v40, %v632_v53 }
  0xfa   :  { %1375 = vtanh.f32 %v958_v47 }
  0xfb   :  { %1377 = vtanh.f32 %v990_v48 }
  0xfc   :  { %1379 = vtanh.f32 %v961_v51 }
  0xfd   :  { %1381 = vtanh.f32 %v993_v54  ;;  %v1257_v57 = vpop.f32.mrb[4].mxu0  ;;  %v1289_v58 = vpop.f32.mrb[4].mxu1 }
  0xfe   :  { %1383 = vtanh.f32 %v959_v55  ;;  %v964_v59 = vadd.f32 %v1257_v57, %v1642_v40  ;;  %v996_v60 = vadd.f32 %v1289_v58, %v1642_v40  ;;  %v517_v61 = vpop.f32.mrb[5].mxu0  ;;  %v645_v62 = vpop.f32.mrb[5].mxu1 }
  0xff   :  { %1385 = vtanh.f32 %v991_v56  ;;  %v962_v63 = vadd.f32 %v1642_v40, %v517_v61  ;;  %v994_v0 = vadd.f32 %v1642_v40, %v645_v62  ;;  %v1258_v1 = vpop.f32.mrb[6].mxu0  ;;  %v1290_v2 = vpop.f32.mrb[6].mxu1 }
 0x100   :  { %1387 = vtanh.f32 %v964_v59  ;;  %v965_v3 = vadd.f32 %v1258_v1, %v1642_v40  ;;  %v520_v4 = vpop.f32.mrb[7].mxu0  ;;  %v648_v5 = vpop.f32.mrb[7].mxu1  ;;  %v997_v6 = vadd.f32 %v1290_v2, %v1642_v40 }
 0x101   :  { %1389 = vtanh.f32 %v996_v60  ;;  %v963_v8 = vadd.f32 %v1642_v40, %v520_v4  ;;  %v995_v10 = vadd.f32 %v1642_v40, %v648_v5 }
 0x102   :  { %v1372_v7 = vpop.eup %1371  ;;  %1391 = vtanh.f32 %v962_v63 }
 0x103   :  { %v1374_v9 = vpop.eup %1373  ;;  %1088 = vst [vmem:[%s1903_s3 + $0x10] sm:$0xff] %v1372_v7  ;;  %1393 = vtanh.f32 %v994_v0 }
 0x104   :  { %v1376_v11 = vpop.eup %1375  ;;  %1120 = vst [vmem:[%s1903_s3 + $0x110] sm:$0xff] %v1374_v9  ;;  %1395 = vtanh.f32 %v965_v3 }
 0x105   :  { %v1378_v12 = vpop.eup %1377  ;;  %1086 = vst [vmem:[%s1903_s3] sm:$0xff] %v1376_v11  ;;  %1397 = vtanh.f32 %v997_v6  ;;  %v1261_v13 = vpop.f32.mrb[8].mxu0 }
 0x106   :  { %v1293_v14 = vpop.f32.mrb[8].mxu1  ;;  %v1380_v15 = vpop.eup %1379  ;;  %1118 = vst [vmem:[%s1903_s3 + $0x100] sm:$0xff] %v1378_v12  ;;  %1399 = vtanh.f32 %v963_v8  ;;  %v968_v16 = vadd.f32 %v1261_v13, %v1642_v40 }
 0x107   :  { %v1000_v17 = vadd.f32 %v1293_v14, %v1642_v40  ;;  %v533_v18 = vpop.f32.mrb[9].mxu0  ;;  %v661_v19 = vpop.f32.mrb[9].mxu1  ;;  %1089 = vst [vmem:[%s1903_s3 + $0x18] sm:$0xff] %v1380_v15  ;;  %1401 = vtanh.f32 %v995_v10 }
 0x108   :  { %v1382_v20 = vpop.eup %1381  ;;  %v966_v21 = vadd.f32 %v1642_v40, %v533_v18  ;;  %v998_v22 = vadd.f32 %v1642_v40, %v661_v19  ;;  %v1262_v23 = vpop.f32.mrb[10].mxu0  ;;  %1403 = vtanh.f32 %v968_v16 }
 0x109   :  { %v1294_v24 = vpop.f32.mrb[10].mxu1  ;;  %v1384_v25 = vpop.eup %1383  ;;  %1121 = vst [vmem:[%s1903_s3 + $0x118] sm:$0xff] %v1382_v20  ;;  %v969_v26 = vadd.f32 %v1262_v23, %v1642_v40  ;;  %1405 = vtanh.f32 %v1000_v17 }
 0x10a   :  { %v536_v27 = vpop.f32.mrb[11].mxu0  ;;  %v664_v28 = vpop.f32.mrb[11].mxu1  ;;  %1087 = vst [vmem:[%s1903_s3 + $0x8] sm:$0xff] %v1384_v25  ;;  %v1001_v30 = vadd.f32 %v1294_v24, %v1642_v40  ;;  %1407 = vtanh.f32 %v966_v21 }
 0x10b   :  { %v1386_v29 = vpop.eup %1385  ;;  %v967_v32 = vadd.f32 %v1642_v40, %v536_v27  ;;  %1409 = vtanh.f32 %v998_v22  ;;  %v999_v34 = vadd.f32 %v1642_v40, %v664_v28 }
 0x10c   :  { %v1388_v31 = vpop.eup %1387  ;;  %1119 = vst [vmem:[%s1903_s3 + $0x108] sm:$0xff] %v1386_v29  ;;  %1411 = vtanh.f32 %v969_v26 }
 0x10d   :  { %v1390_v33 = vpop.eup %1389  ;;  %1092 = vst [vmem:[%s1903_s3 + $0x30] sm:$0xff] %v1388_v31  ;;  %1413 = vtanh.f32 %v1001_v30  ;;  %v1265_v37 = vpop.f32.mrb[12].mxu0 }
 0x10e   :  { %v1392_v35 = vpop.eup %1391  ;;  %1124 = vst [vmem:[%s1903_s3 + $0x130] sm:$0xff] %v1390_v33  ;;  %v1297_v38 = vpop.f32.mrb[12].mxu1  ;;  %1415 = vtanh.f32 %v967_v32  ;;  %v972_v41 = vadd.f32 %v1265_v37, %v1642_v40 }
 0x10f   :  { %v1394_v36 = vpop.eup %1393  ;;  %1090 = vst [vmem:[%s1903_s3 + $0x20] sm:$0xff] %v1392_v35  ;;  %v1004_v42 = vadd.f32 %v1297_v38, %v1642_v40  ;;  %v549_v43 = vpop.f32.mrb[13].mxu0  ;;  %1417 = vtanh.f32 %v999_v34 }
 0x110   :  { %v1396_v39 = vpop.eup %1395  ;;  %1122 = vst [vmem:[%s1903_s3 + $0x120] sm:$0xff] %v1394_v36  ;;  %v677_v44 = vpop.f32.mrb[13].mxu1  ;;  %v970_v46 = vadd.f32 %v1642_v40, %v549_v43  ;;  %1419 = vtanh.f32 %v972_v41 }
 0x111   :  { %v1398_v45 = vpop.eup %1397  ;;  %1093 = vst [vmem:[%s1903_s3 + $0x38] sm:$0xff] %v1396_v39  ;;  %v1002_v47 = vadd.f32 %v1642_v40, %v677_v44  ;;  %v1266_v48 = vpop.f32.mrb[14].mxu0  ;;  %1421 = vtanh.f32 %v1004_v42 }
 0x112   :  { %v1298_v49 = vpop.f32.mrb[14].mxu1  ;;  %v1400_v50 = vpop.eup %1399  ;;  %1125 = vst [vmem:[%s1903_s3 + $0x138] sm:$0xff] %v1398_v45  ;;  %v973_v51 = vadd.f32 %v1266_v48, %v1642_v40  ;;  %1423 = vtanh.f32 %v970_v46 }
 0x113   :  { %v552_v52 = vpop.f32.mrb[15].mxu0  ;;  %v680_v53 = vpop.f32.mrb[15].mxu1  ;;  %1091 = vst [vmem:[%s1903_s3 + $0x28] sm:$0xff] %v1400_v50  ;;  %v1005_v55 = vadd.f32 %v1298_v49, %v1642_v40  ;;  %1425 = vtanh.f32 %v1002_v47 }
 0x114   :  { %v1402_v54 = vpop.eup %1401  ;;  %v971_v57 = vadd.f32 %v1642_v40, %v552_v52  ;;  %v1003_v59 = vadd.f32 %v1642_v40, %v680_v53  ;;  %1427 = vtanh.f32 %v973_v51 }
 0x115   :  { %v1404_v56 = vpop.eup %1403  ;;  %1123 = vst [vmem:[%s1903_s3 + $0x128] sm:$0xff] %v1402_v54  ;;  %1429 = vtanh.f32 %v1005_v55  ;;  %v1269_v62 = vpop.f32.mrb[16].mxu0 }
 0x116   :  { %v1406_v58 = vpop.eup %1405  ;;  %1096 = vst [vmem:[%s1903_s3 + $0x50] sm:$0xff] %v1404_v56  ;;  %v1301_v63 = vpop.f32.mrb[16].mxu1  ;;  %1431 = vtanh.f32 %v971_v57  ;;  %v976_v1 = vadd.f32 %v1269_v62, %v1642_v40 }
 0x117   :  { %v1408_v60 = vpop.eup %1407  ;;  %1128 = vst [vmem:[%s1903_s3 + $0x150] sm:$0xff] %v1406_v58  ;;  %v1008_v2 = vadd.f32 %v1301_v63, %v1642_v40  ;;  %v565_v3 = vpop.f32.mrb[17].mxu0  ;;  %1433 = vtanh.f32 %v1003_v59 }
 0x118   :  { %v1410_v61 = vpop.eup %1409  ;;  %1094 = vst [vmem:[%s1903_s3 + $0x40] sm:$0xff] %v1408_v60  ;;  %v693_v4 = vpop.f32.mrb[17].mxu1  ;;  %v974_v6 = vadd.f32 %v1642_v40, %v565_v3  ;;  %1435 = vtanh.f32 %v976_v1 }
 0x119   :  { %v1412_v0 = vpop.eup %1411  ;;  %1126 = vst [vmem:[%s1903_s3 + $0x140] sm:$0xff] %v1410_v61  ;;  %v1006_v7 = vadd.f32 %v1642_v40, %v693_v4  ;;  %v1270_v8 = vpop.f32.mrb[18].mxu0  ;;  %1437 = vtanh.f32 %v1008_v2 }
 0x11a   :  { %v1414_v5 = vpop.eup %1413  ;;  %1097 = vst [vmem:[%s1903_s3 + $0x58] sm:$0xff] %v1412_v0  ;;  %v1302_v9 = vpop.f32.mrb[18].mxu1  ;;  %v977_v11 = vadd.f32 %v1270_v8, %v1642_v40  ;;  %1439 = vtanh.f32 %v974_v6 }
 0x11b   :  { %v1416_v10 = vpop.eup %1415  ;;  %1129 = vst [vmem:[%s1903_s3 + $0x158] sm:$0xff] %v1414_v5  ;;  %v568_v12 = vpop.f32.mrb[19].mxu0  ;;  %v1009_v15 = vadd.f32 %v1302_v9, %v1642_v40  ;;  %1441 = vtanh.f32 %v1006_v7 }
 0x11c   :  { %v696_v13 = vpop.f32.mrb[19].mxu1  ;;  %v1418_v14 = vpop.eup %1417  ;;  %1095 = vst [vmem:[%s1903_s3 + $0x48] sm:$0xff] %v1416_v10  ;;  %v975_v17 = vadd.f32 %v1642_v40, %v568_v12  ;;  %1443 = vtanh.f32 %v977_v11 }
 0x11d   :  { %v1420_v16 = vpop.eup %1419  ;;  %1127 = vst [vmem:[%s1903_s3 + $0x148] sm:$0xff] %v1418_v14  ;;  %v1007_v19 = vadd.f32 %v1642_v40, %v696_v13  ;;  %1445 = vtanh.f32 %v1009_v15  ;;  %v1273_v22 = vpop.f32.mrb[20].mxu0 }
 0x11e   :  { %v1422_v18 = vpop.eup %1421  ;;  %1100 = vst [vmem:[%s1903_s3 + $0x70] sm:$0xff] %v1420_v16  ;;  %v1305_v23 = vpop.f32.mrb[20].mxu1  ;;  %1447 = vtanh.f32 %v975_v17  ;;  %v980_v25 = vadd.f32 %v1273_v22, %v1642_v40 }
 0x11f   :  { %v1424_v20 = vpop.eup %1423  ;;  %1132 = vst [vmem:[%s1903_s3 + $0x170] sm:$0xff] %v1422_v18  ;;  %v1012_v26 = vadd.f32 %v1305_v23, %v1642_v40  ;;  %v581_v27 = vpop.f32.mrb[21].mxu0  ;;  %1449 = vtanh.f32 %v1007_v19 }
 0x120   :  { %v1426_v21 = vpop.eup %1425  ;;  %1098 = vst [vmem:[%s1903_s3 + $0x60] sm:$0xff] %v1424_v20  ;;  %v709_v28 = vpop.f32.mrb[21].mxu1  ;;  %v978_v30 = vadd.f32 %v1642_v40, %v581_v27  ;;  %1451 = vtanh.f32 %v980_v25 }
 0x121   :  { %v1428_v24 = vpop.eup %1427  ;;  %1130 = vst [vmem:[%s1903_s3 + $0x160] sm:$0xff] %v1426_v21  ;;  %v1010_v31 = vadd.f32 %v1642_v40, %v709_v28  ;;  %v1274_v32 = vpop.f32.mrb[22].mxu0  ;;  %1453 = vtanh.f32 %v1012_v26 }
 0x122   :  { %v1430_v29 = vpop.eup %1429  ;;  %1101 = vst [vmem:[%s1903_s3 + $0x78] sm:$0xff] %v1428_v24  ;;  %v1306_v33 = vpop.f32.mrb[22].mxu1  ;;  %v981_v35 = vadd.f32 %v1274_v32, %v1642_v40  ;;  %1455 = vtanh.f32 %v978_v30 }
 0x123   :  { %v1432_v34 = vpop.eup %1431  ;;  %1133 = vst [vmem:[%s1903_s3 + $0x178] sm:$0xff] %v1430_v29  ;;  %v584_v36 = vpop.f32.mrb[23].mxu0  ;;  %v1013_v39 = vadd.f32 %v1306_v33, %v1642_v40  ;;  %1457 = vtanh.f32 %v1010_v31 }
 0x124   :  { %v712_v37 = vpop.f32.mrb[23].mxu1  ;;  %v1434_v38 = vpop.eup %1433  ;;  %1099 = vst [vmem:[%s1903_s3 + $0x68] sm:$0xff] %v1432_v34  ;;  %v979_v42 = vadd.f32 %v1642_v40, %v584_v36  ;;  %1459 = vtanh.f32 %v981_v35 }
 0x125   :  { %v1436_v41 = vpop.eup %1435  ;;  %1131 = vst [vmem:[%s1903_s3 + $0x168] sm:$0xff] %v1434_v38  ;;  %v1011_v44 = vadd.f32 %v1642_v40, %v712_v37  ;;  %1461 = vtanh.f32 %v1013_v39  ;;  %v1277_v47 = vpop.f32.mrb[24].mxu0 }
 0x126   :  { %v1438_v43 = vpop.eup %1437  ;;  %1104 = vst [vmem:[%s1903_s3 + $0x90] sm:$0xff] %v1436_v41  ;;  %v1309_v48 = vpop.f32.mrb[24].mxu1  ;;  %1463 = vtanh.f32 %v979_v42  ;;  %v984_v50 = vadd.f32 %v1277_v47, %v1642_v40 }
 0x127   :  { %v1440_v45 = vpop.eup %1439  ;;  %1136 = vst [vmem:[%s1903_s3 + $0x190] sm:$0xff] %v1438_v43  ;;  %v1016_v51 = vadd.f32 %v1309_v48, %v1642_v40  ;;  %v597_v52 = vpop.f32.mrb[25].mxu0  ;;  %1465 = vtanh.f32 %v1011_v44 }
 0x128   :  { %v1442_v46 = vpop.eup %1441  ;;  %1102 = vst [vmem:[%s1903_s3 + $0x80] sm:$0xff] %v1440_v45  ;;  %v725_v53 = vpop.f32.mrb[25].mxu1  ;;  %v982_v55 = vadd.f32 %v1642_v40, %v597_v52  ;;  %1467 = vtanh.f32 %v984_v50 }
 0x129   :  { %v1444_v49 = vpop.eup %1443  ;;  %1134 = vst [vmem:[%s1903_s3 + $0x180] sm:$0xff] %v1442_v46  ;;  %v1014_v56 = vadd.f32 %v1642_v40, %v725_v53  ;;  %v1278_v57 = vpop.f32.mrb[26].mxu0  ;;  %1469 = vtanh.f32 %v1016_v51 }
 0x12a   :  { %v1446_v54 = vpop.eup %1445  ;;  %1105 = vst [vmem:[%s1903_s3 + $0x98] sm:$0xff] %v1444_v49  ;;  %v1310_v58 = vpop.f32.mrb[26].mxu1  ;;  %v985_v60 = vadd.f32 %v1278_v57, %v1642_v40  ;;  %1471 = vtanh.f32 %v982_v55 }
 0x12b   :  { %v1448_v59 = vpop.eup %1447  ;;  %1137 = vst [vmem:[%s1903_s3 + $0x198] sm:$0xff] %v1446_v54  ;;  %v600_v61 = vpop.f32.mrb[27].mxu0  ;;  %v1017_v0 = vadd.f32 %v1310_v58, %v1642_v40  ;;  %1473 = vtanh.f32 %v1014_v56 }
 0x12c   :  { %v728_v62 = vpop.f32.mrb[27].mxu1  ;;  %v1450_v63 = vpop.eup %1449  ;;  %1103 = vst [vmem:[%s1903_s3 + $0x88] sm:$0xff] %v1448_v59  ;;  %v983_v2 = vadd.f32 %v1642_v40, %v600_v61  ;;  %1475 = vtanh.f32 %v985_v60 }
 0x12d   :  { %v1452_v1 = vpop.eup %1451  ;;  %1135 = vst [vmem:[%s1903_s3 + $0x188] sm:$0xff] %v1450_v63  ;;  %v1015_v4 = vadd.f32 %v1642_v40, %v728_v62  ;;  %1477 = vtanh.f32 %v1017_v0  ;;  %v1281_v7 = vpop.f32.mrb[28].mxu0 }
 0x12e   :  { %v1454_v3 = vpop.eup %1453  ;;  %1108 = vst [vmem:[%s1903_s3 + $0xb0] sm:$0xff] %v1452_v1  ;;  %v1313_v8 = vpop.f32.mrb[28].mxu1  ;;  %1479 = vtanh.f32 %v983_v2  ;;  %v988_v10 = vadd.f32 %v1281_v7, %v1642_v40 }
 0x12f   :  { %v1456_v5 = vpop.eup %1455  ;;  %1140 = vst [vmem:[%s1903_s3 + $0x1b0] sm:$0xff] %v1454_v3  ;;  %v1020_v11 = vadd.f32 %v1313_v8, %v1642_v40  ;;  %v613_v12 = vpop.f32.mrb[29].mxu0  ;;  %1481 = vtanh.f32 %v1015_v4 }
 0x130   :  { %v1458_v6 = vpop.eup %1457  ;;  %1106 = vst [vmem:[%s1903_s3 + $0xa0] sm:$0xff] %v1456_v5  ;;  %v741_v13 = vpop.f32.mrb[29].mxu1  ;;  %v986_v15 = vadd.f32 %v1642_v40, %v613_v12  ;;  %1483 = vtanh.f32 %v988_v10 }
 0x131   :  { %v1460_v9 = vpop.eup %1459  ;;  %1138 = vst [vmem:[%s1903_s3 + $0x1a0] sm:$0xff] %v1458_v6  ;;  %v1018_v16 = vadd.f32 %v1642_v40, %v741_v13  ;;  %v1282_v17 = vpop.f32.mrb[30].mxu0  ;;  %1485 = vtanh.f32 %v1020_v11 }
 0x132   :  { %v1462_v14 = vpop.eup %1461  ;;  %1109 = vst [vmem:[%s1903_s3 + $0xb8] sm:$0xff] %v1460_v9  ;;  %v1314_v18 = vpop.f32.mrb[30].mxu1  ;;  %v989_v20 = vadd.f32 %v1282_v17, %v1642_v40  ;;  %1487 = vtanh.f32 %v986_v15 }
 0x133   :  { %v1464_v19 = vpop.eup %1463  ;;  %1141 = vst [vmem:[%s1903_s3 + $0x1b8] sm:$0xff] %v1462_v14  ;;  %v616_v21 = vpop.f32.mrb[31].mxu0  ;;  %v1021_v24 = vadd.f32 %v1314_v18, %v1642_v40  ;;  %1489 = vtanh.f32 %v1018_v16 }
 0x134   :  { %v744_v22 = vpop.f32.mrb[31].mxu1  ;;  %v1466_v23 = vpop.eup %1465  ;;  %1107 = vst [vmem:[%s1903_s3 + $0xa8] sm:$0xff] %v1464_v19  ;;  %v987_v26 = vadd.f32 %v1642_v40, %v616_v21  ;;  %1491 = vtanh.f32 %v989_v20 }
 0x135   :  { %v1468_v25 = vpop.eup %1467  ;;  %1139 = vst [vmem:[%s1903_s3 + $0x1a8] sm:$0xff] %v1466_v23  ;;  %v1019_v28 = vadd.f32 %v1642_v40, %v744_v22  ;;  %1493 = vtanh.f32 %v1021_v24 }
 0x136   :  { %v1470_v27 = vpop.eup %1469  ;;  %1112 = vst [vmem:[%s1903_s3 + $0xd0] sm:$0xff] %v1468_v25  ;;  %1495 = vtanh.f32 %v987_v26 }
 0x137   :  { %v1472_v29 = vpop.eup %1471  ;;  %1144 = vst [vmem:[%s1903_s3 + $0x1d0] sm:$0xff] %v1470_v27  ;;  %1497 = vtanh.f32 %v1019_v28 }
 0x138   :  { %v1474_v30 = vpop.eup %1473  ;;  %1110 = vst [vmem:[%s1903_s3 + $0xc0] sm:$0xff] %v1472_v29 }
 0x139   :  { %v1476_v31 = vpop.eup %1475  ;;  %1142 = vst [vmem:[%s1903_s3 + $0x1c0] sm:$0xff] %v1474_v30 }
 0x13a   :  { %v1478_v32 = vpop.eup %1477  ;;  %1113 = vst [vmem:[%s1903_s3 + $0xd8] sm:$0xff] %v1476_v31 }
 0x13b   :  { %v1480_v40 = vpop.eup %1479  ;;  %1145 = vst [vmem:[%s1903_s3 + $0x1d8] sm:$0xff] %v1478_v32 }
 0x13c   :  { %v1482_v33 = vpop.eup %1481  ;;  %1111 = vst [vmem:[%s1903_s3 + $0xc8] sm:$0xff] %v1480_v40 }
 0x13d   :  { %v1484_v34 = vpop.eup %1483  ;;  %1143 = vst [vmem:[%s1903_s3 + $0x1c8] sm:$0xff] %v1482_v33 }
 0x13e   :  { %v1486_v35 = vpop.eup %1485  ;;  %1116 = vst [vmem:[%s1903_s3 + $0xf0] sm:$0xff] %v1484_v34 }
 0x13f   :  { %v1488_v36 = vpop.eup %1487  ;;  %1148 = vst [vmem:[%s1903_s3 + $0x1f0] sm:$0xff] %v1486_v35 }
 0x140   :  { %v1490_v37 = vpop.eup %1489  ;;  %1114 = vst [vmem:[%s1903_s3 + $0xe0] sm:$0xff] %v1488_v36 }
 0x141   :  { %v1492_v38 = vpop.eup %1491  ;;  %1146 = vst [vmem:[%s1903_s3 + $0x1e0] sm:$0xff] %v1490_v37 }
 0x142   :  { %v1494_v39 = vpop.eup %1493  ;;  %1117 = vst [vmem:[%s1903_s3 + $0xf8] sm:$0xff] %v1492_v38 }
 0x143   :  { %v1496_v41 = vpop.eup %1495  ;;  %1149 = vst [vmem:[%s1903_s3 + $0x1f8] sm:$0xff] %v1494_v39 }
 0x144   :  { %v1498_v42 = vpop.eup %1497  ;;  %1115 = vst [vmem:[%s1903_s3 + $0xe8] sm:$0xff] %v1496_v41 }
 0x145   :  { %1147 = vst [vmem:[%s1903_s3 + $0x1e8] sm:$0xff] %v1498_v42 }

</bundles_post_ra>
